<compile_context>
chip_gen: v5e
topology: v5e:2x2
jax: 0.10.0
libtpu: 0.0.40
codegen_flags: <defaults>
</compile_context>

<pallas_src>
import functools

import numpy as np

import jax
import jax.numpy as jnp
from jax import lax
from jax.experimental import pallas as pl
from jax.experimental.pallas import tpu as pltpu

GATES = 4  # PyTorch LSTM gate order: i, f, g, o


# --------------------------- fused forward kernel -------------------------- #
def fused_convlstm_kernel(x_ref, conv_ref, rnn_ref, o_ref, *, meta):
    """Entire ConvLSTM forward in one kernel (grid=()); intermediates stay on-chip."""
    f32 = jnp.float32
    K = meta["ksize"]
    conv_blocks = meta["conv_blocks"]      # (row_off, cout, cin, relu) per conv layer
    lstm_layers = meta["lstm_layers"]
    n_lstm = len(lstm_layers)

    def sigm(v):                           # logistic == 0.5*tanh(0.5*x)+0.5  (EUP + fma)
        return 0.5 * jnp.tanh(0.5 * v) + 0.5

    x = x_ref[...].astype(f32)             # (B, S, Fin), channel-minor raw layout
    B = x.shape[0]
    assert conv_blocks[0][2] == x.shape[2]

    # ------------------------------ conv stack ----------------------------- #
    # One matmul per (layer, batch): taps + bias folded via the augmented
    # im2col weight [W | b] against [patches ; 1].  The first layer folds the
    # PyTorch transpose into its contraction (contract over channel-minor axis).
    feats = []
    for b in range(B):                     # tiny static batch, unrolled
        r0, cout0, cin0, relu0 = conv_blocks[0]
        l_out = x.shape[1] - K + 1
        wb = conv_ref[r0:r0 + cout0, 0:K * cin0 + 1]              # (Cout, K*Cin+1)
        patch = jnp.concatenate(
            [x[b, k:k + l_out, :] for k in range(K)]
            + [jnp.ones((l_out, 1), f32)], axis=1)                # (L, K*Cin+1)
        y = lax.dot_general(wb, patch, (((1,), (1,)), ((), ())),
                            preferred_element_type=f32)           # (Cout, L)
        if relu0:
            y = jnp.maximum(y, 0.0)
        for (r, cout, cin, relu) in conv_blocks[1:]:
            l_out = y.shape[1] - K + 1
            wb = conv_ref[r:r + cout, 0:K * cin + 1]
            patch = jnp.concatenate(
                [y[:, k:k + l_out] for k in range(K)]
                + [jnp.ones((1, l_out), f32)], axis=0)            # (K*Cin+1, L)
            y = jnp.dot(wb, patch, preferred_element_type=f32)
            if relu:
                y = jnp.maximum(y, 0.0)
        feats.append(y)        # (C_last, L_last) == (T, I): channels act as time

    T, I0 = feats[0].shape
    assert I0 == lstm_layers[0]["in_size"], (
        "conv output length must equal the first LSTM input size (module constraint)")

    # --------- LSTM layer 0: input projections hoisted out of the loop ------ #
    lay0 = lstm_layers[0]
    H0 = lay0["hidden"]
    feats_all = jnp.concatenate(feats, axis=0)                    # (B*T, I), batch-major
    pre0_full = []
    for g in range(GATES):
        wih_g = rnn_ref[lay0["wih_off"][g]:lay0["wih_off"][g] + I0, 0:H0]
        b_g = rnn_ref[lay0["b_off"][g]:lay0["b_off"][g] + 1, 0:H0]
        pre0_full.append(
            jnp.dot(feats_all, wih_g, preferred_element_type=f32) + b_g)  # (B*T, H0)
    # Per-step (B, H0) gate inputs, assembled once before the recurrence
    # (pure layout work, off the h->h dependence chain).
    pre0_steps = [
        [jnp.concatenate(
            [pre0_full[g][b * T + t:b * T + t + 1, :] for b in range(B)], axis=0)
         for g in range(GATES)]
        for t in range(T)]

    # ----------------- load recurrent / input weights once ------------------ #
    whh, wih, bias = [], [], []
    for li, lay in enumerate(lstm_layers):
        H = lay["hidden"]
        I = lay["in_size"]
        whh.append([rnn_ref[lay["whh_off"][g]:lay["whh_off"][g] + H, 0:H]
                    for g in range(GATES)])
        if li == 0:
            wih.append(None)
            bias.append(None)               # bias folded into pre0
        else:
            wih.append([rnn_ref[lay["wih_off"][g]:lay["wih_off"][g] + I, 0:H]
                        for g in range(GATES)])
            bias.append([rnn_ref[lay["b_off"][g]:lay["b_off"][g] + 1, 0:H]
                         for g in range(GATES)])

    # -------------- interleaved, fully-unrolled recurrences ----------------- #
    hs = [jnp.zeros((B, lay["hidden"]), f32) for lay in lstm_layers]
    cs = [jnp.zeros((B, lay["hidden"]), f32) for lay in lstm_layers]
    for t in range(T):                      # static unroll (short trip count)
        for li in range(n_lstm):
            h_prev = hs[li]
            if li == 0:
                px = pre0_steps[t]          # hoisted, lane-0-aligned (B, H) blocks
            else:
                x_in = hs[li - 1]           # this step's h from the layer below
                px = [jnp.dot(x_in, wih[li][g], preferred_element_type=f32)
                      + bias[li][g] for g in range(GATES)]
            gi = sigm(px[0] + jnp.dot(h_prev, whh[li][0], preferred_element_type=f32))
            gf = sigm(px[1] + jnp.dot(h_prev, whh[li][1], preferred_element_type=f32))
            gg = jnp.tanh(px[2] + jnp.dot(h_prev, whh[li][2], preferred_element_type=f32))
            go = sigm(px[3] + jnp.dot(h_prev, whh[li][3], preferred_element_type=f32))
            cs[li] = gf * cs[li] + gi * gg
            hs[li] = go * jnp.tanh(cs[li])
    # TODO(synk): dropout between layers is eval-mode identity (no training-mode mask).

    # --------------------------------- FC ---------------------------------- #
    Hl = meta["fc_in"]
    O = meta["fc_out"]
    fcw = rnn_ref[meta["fc_w_off"]:meta["fc_w_off"] + Hl, 0:O]    # (H, O)
    fcb = rnn_ref[meta["fc_b_off"]:meta["fc_b_off"] + 1, 0:O]     # (1, O)
    out = jnp.dot(hs[-1], fcw, preferred_element_type=f32) + fcb
    o_ref[...] = out.astype(o_ref.dtype)


# ------------------------- one-time host-side prepack ---------------------- #
def prepack_params(params):
    """Pack every weight/bias into two contiguous f32 buffers (done ONCE, numpy).

    conv_pack: per conv layer, a [W_im2col | bias] block (Cout, K*Cin+1),
               W_im2col[o, k*Cin + c] = w[o, c, k]; 8-aligned row offsets,
               width padded to a multiple of 128 lanes.
    rnn_pack:  per LSTM layer, per gate (i,f,g,o): W_ih_g^T (I,H), W_hh_g^T (H,H),
               (b_ih+b_hh)_g (1,H); then fc_w^T (H,O) and fc_b (1,O);
               8-aligned row offsets, width = max block width.
    Returns (conv_pack, rnn_pack, meta) with static offsets in `meta`.
    """
    def _ceil(a, m):
        return int(-(-int(a) // m) * m)

    ksize = int(params["conv1d_w"].shape[2])

    conv_list = [(np.asarray(params["conv1d_w"], np.float32),
                  np.asarray(params["conv1d_b"], np.float32), False)]
    for (w, b) in params["conv_layers"]:
        conv_list.append((np.asarray(w, np.float32),
                          np.asarray(b, np.float32), True))

    conv_blocks, conv_meta = [], []
    for (w, b, relu) in conv_list:
        cout, cin, k = w.shape
        wcat = np.transpose(w, (0, 2, 1)).reshape(cout, k * cin)   # [o, k*Cin + c]
        conv_blocks.append(np.concatenate([wcat, b.reshape(cout, 1)], axis=1))
        conv_meta.append((int(cout), int(cin), bool(relu)))

    conv_width = _ceil(max(blk.shape[1] for blk in conv_blocks), 128)
    conv_offs, rows = [], 0
    for blk in conv_blocks:
        conv_offs.append(rows)
        rows += _ceil(blk.shape[0], 8)
    conv_pack = np.zeros((rows, conv_width), np.float32)
    for off, blk in zip(conv_offs, conv_blocks):
        conv_pack[off:off + blk.shape[0], :blk.shape[1]] = blk

    # LSTM (per-gate split) + FC pack.
    entries = []

    def add(a):
        entries.append(np.asarray(a, np.float32))
        return len(entries) - 1

    lstm_tmp = []
    for (w_ih, w_hh, b_ih, b_hh) in params["lstm_layers"]:
        w_ih = np.asarray(w_ih, np.float32)
        w_hh = np.asarray(w_hh, np.float32)
        bsum = np.asarray(b_ih, np.float32) + np.asarray(b_hh, np.float32)
        hidden = int(w_hh.shape[1])
        in_size = int(w_ih.shape[1])
        wih_i, whh_i, b_i = [], [], []
        for g in range(GATES):                      # PyTorch gate order: i, f, g, o
            sl = slice(g * hidden, (g + 1) * hidden)
            wih_i.append(add(w_ih[sl, :].T))        # (I, H)
            whh_i.append(add(w_hh[sl, :].T))        # (H, H)
            b_i.append(add(bsum[sl].reshape(1, hidden)))
        lstm_tmp.append((in_size, hidden, wih_i, whh_i, b_i))

    fc_w = np.asarray(params["fc_w"], np.float32)
    fc_b = np.asarray(params["fc_b"], np.float32)
    out_features, h_last = int(fc_w.shape[0]), int(fc_w.shape[1])
    fcw_i = add(fc_w.T)                             # (H, O)
    fcb_i = add(fc_b.reshape(1, out_features))

    rnn_width = max(e.shape[1] for e in entries)
    offs, rows = [], 0
    for e in entries:
        offs.append(rows)
        rows += _ceil(e.shape[0], 8)
    rnn_pack = np.zeros((rows, rnn_width), np.float32)
    for off, e in zip(offs, entries):
        rnn_pack[off:off + e.shape[0], :e.shape[1]] = e

    meta = {
        "ksize": ksize,
        "conv_blocks": tuple(
            (int(conv_offs[i]), conv_meta[i][0], conv_meta[i][1], conv_meta[i][2])
            for i in range(len(conv_blocks))),
        "lstm_layers": tuple(
            dict(in_size=in_size, hidden=hidden,
                 wih_off=tuple(int(offs[j]) for j in wih_i),
                 whh_off=tuple(int(offs[j]) for j in whh_i),
                 b_off=tuple(int(offs[j]) for j in b_i))
            for (in_size, hidden, wih_i, whh_i, b_i) in lstm_tmp),
        "fc_w_off": int(offs[fcw_i]),
        "fc_b_off": int(offs[fcb_i]),
        "fc_in": h_last,
        "fc_out": out_features,
    }
    return jnp.asarray(conv_pack), jnp.asarray(rnn_pack), meta


def make_forward(meta):
    """Jitted forward: just the pallas_call (all weight prep done in prepack)."""
    kern = functools.partial(fused_convlstm_kernel, meta=meta)

    @jax.jit
    def forward(x, conv_pack, rnn_pack):
        B = x.shape[0]
        return pl.pallas_call(
            kern,
            out_shape=jax.ShapeDtypeStruct((B, meta["fc_out"]), jnp.float32),
            in_specs=[pl.BlockSpec(memory_space=pltpu.MemorySpace.VMEM)] * 3,
            out_specs=pl.BlockSpec(memory_space=pltpu.MemorySpace.VMEM),
        )(x, conv_pack, rnn_pack)

    return forward


# --------------------------- Pure-JAX reference ---------------------------- #
def _ref_conv1d(x, w, b, relu):
    B, Cin, L = x.shape
    Cout, _, K = w.shape
    Lout = L - K + 1
    y = jnp.zeros((B, Cout, Lout), jnp.float32)
    for k in range(K):
        y = y + jnp.einsum("oc,bcl->bol", w[:, :, k], x[:, :, k:k + Lout])
    y = y + b[None, :, None]
    return jnp.maximum(y, 0.0) if relu else y


def _ref_lstm(x, w_ih, w_hh, b_ih, b_hh):
    B, T, I = x.shape
    H = w_hh.shape[1]
    h = jnp.zeros((B, H), jnp.float32)
    c = jnp.zeros((B, H), jnp.float32)
    outs = []
    for t in range(T):
        gates = x[:, t] @ w_ih.T + h @ w_hh.T + b_ih + b_hh
        i = jax.nn.sigmoid(gates[:, :H])
        f = jax.nn.sigmoid(gates[:, H:2 * H])
        g = jnp.tanh(gates[:, 2 * H:3 * H])
        o = jax.nn.sigmoid(gates[:, 3 * H:4 * H])
        c = f * c + i * g
        h = o * jnp.tanh(c)
        outs.append(h)
    return jnp.stack(outs, axis=1)


def _ref_forward(x, params):
    x = jnp.transpose(x, (0, 2, 1)).astype(jnp.float32)
    x = _ref_conv1d(x, params["conv1d_w"], params["conv1d_b"], relu=False)
    for (w, b) in params["conv_layers"]:
        x = _ref_conv1d(x, w, b, relu=True)
    for (w_ih, w_hh, b_ih, b_hh) in params["lstm_layers"]:
        x = _ref_lstm(x, w_ih, w_hh, b_ih, b_hh)
    return x[:, -1, :] @ params["fc_w"].T + params["fc_b"]


# ---------------------------------- main ----------------------------------- #
if __name__ == "__main__":
    # Module configuration.  The PyTorch module hard-codes conv1d = Conv1d(15, 32, 3),
    # so input_features must be 32 and the conv output length must equal
    # conv_hidden_sizes[-1] for the LSTM input size to line up.
    input_features = 32
    conv_hidden_sizes = [16, 8]
    kernel_size = 3
    lstm_hidden_sizes = [16, 16]
    output_features = 4

    B, S, F_in = 2, 14, 15   # conv length chain: 14 -> 12 -> 10 -> 8 == conv_hidden_sizes[-1]

    key = jax.random.PRNGKey(0)

    def nrm(k, shape, scale=0.1):
        return scale * jax.random.normal(k, shape, jnp.float32)

    keys = jax.random.split(key, 32)
    ki = iter(keys)

    params = {}
    # nn.Conv1d(15, 32, 3)
    params["conv1d_w"] = nrm(next(ki), (32, 15, 3))
    params["conv1d_b"] = nrm(next(ki), (32,))
    # conv_layers
    conv_params = []
    prev = input_features
    for h in conv_hidden_sizes:
        conv_params.append((nrm(next(ki), (h, prev, kernel_size)),
                            nrm(next(ki), (h,))))
        prev = h
    params["conv_layers"] = conv_params
    # lstm_layers (PyTorch LSTM param shapes: W_ih (4H, I), W_hh (4H, H), b (4H,))
    lstm_params = []
    prev = conv_hidden_sizes[-1]
    for h in lstm_hidden_sizes:
        lstm_params.append((nrm(next(ki), (4 * h, prev)),
                            nrm(next(ki), (4 * h, h)),
                            nrm(next(ki), (4 * h,)),
                            nrm(next(ki), (4 * h,))))
        prev = h
    params["lstm_layers"] = lstm_params
    # fc
    params["fc_w"] = nrm(next(ki), (output_features, lstm_hidden_sizes[-1]))
    params["fc_b"] = nrm(next(ki), (output_features,))

    x = jax.random.normal(next(ki), (B, S, F_in), jnp.float32)

    # One-time host-side prepack; the jitted forward does nothing but the pallas_call.
    conv_pack, rnn_pack, meta = prepack_params(params)
    forward = make_forward(meta)

    out = jax.block_until_ready(forward(x, conv_pack, rnn_pack))
    ref = jax.block_until_ready(_ref_forward(x, params))

    assert out.shape == (B, output_features), out.shape
    assert jnp.allclose(out, ref, rtol=1e-4, atol=1e-4), (out, ref)

    print("KERNEL_OK")
</pallas_src>

<mosaic_0001>
module attributes {stable_mosaic.version = 11 : i64} {
  func.func @fused_convlstm_kernel(%arg0: memref<2x14x15xf32, #tpu.memory_space<vmem>>, %arg1: memref<56x128xf32, #tpu.memory_space<vmem>>, %arg2: memref<312x16xf32, #tpu.memory_space<vmem>>, %arg3: memref<2x4xf32, #tpu.memory_space<vmem>>) attributes {dimension_semantics = [], scalar_prefetch = 0 : i64, scratch_operands = 0 : i64, tpu.core_type = #tpu.core_type<tc>} {
    %c0 = arith.constant 0 : index
    %c0_0 = arith.constant 0 : index
    %c0_1 = arith.constant 0 : index
    %0 = vector.load %arg0[%c0, %c0_0, %c0_1] : memref<2x14x15xf32, #tpu.memory_space<vmem>>, vector<2x14x15xf32>
    %c0_2 = arith.constant 0 : index
    %c0_3 = arith.constant 0 : index
    %1 = vector.load %arg1[%c0_2, %c0_3] : memref<56x128xf32, #tpu.memory_space<vmem>>, vector<32x46xf32>
    %2 = vector.extract_strided_slice %0 {offsets = [0, 0, 0], sizes = [1, 12, 15], strides = [1, 1, 1]} : vector<2x14x15xf32> to vector<1x12x15xf32>
    %3 = vector.shape_cast %2 : vector<1x12x15xf32> to vector<12x15xf32>
    %4 = vector.extract_strided_slice %0 {offsets = [0, 1, 0], sizes = [1, 12, 15], strides = [1, 1, 1]} : vector<2x14x15xf32> to vector<1x12x15xf32>
    %5 = vector.shape_cast %4 : vector<1x12x15xf32> to vector<12x15xf32>
    %6 = vector.extract_strided_slice %0 {offsets = [0, 2, 0], sizes = [1, 12, 15], strides = [1, 1, 1]} : vector<2x14x15xf32> to vector<1x12x15xf32>
    %7 = vector.shape_cast %6 : vector<1x12x15xf32> to vector<12x15xf32>
    %cst = arith.constant 1.000000e+00 : f32
    %8 = vector.broadcast %cst : f32 to vector<12x1xf32>
    %9 = tpu.concatenate %3, %5, %7, %8 in 1 : vector<12x15xf32>, vector<12x15xf32>, vector<12x15xf32>, vector<12x1xf32> -> vector<12x46xf32>
    %cst_4 = arith.constant dense<0.000000e+00> : vector<32x12xf32>
    %10 = tpu.matmul %1, %9, %cst_4 {dimension_numbers = #tpu.dot_dimension_numbers<[1], [1], [0], [0], [0, 0, 1, 0], [], []>} : vector<32x46xf32>, vector<12x46xf32>, vector<32x12xf32> -> vector<32x12xf32>
    %c32 = arith.constant 32 : index
    %c0_5 = arith.constant 0 : index
    %11 = vector.load %arg1[%c32, %c0_5] : memref<56x128xf32, #tpu.memory_space<vmem>>, vector<16x97xf32>
    %12 = vector.extract_strided_slice %10 {offsets = [0, 0], sizes = [32, 10], strides = [1, 1]} : vector<32x12xf32> to vector<32x10xf32>
    %13 = vector.extract_strided_slice %10 {offsets = [0, 1], sizes = [32, 10], strides = [1, 1]} : vector<32x12xf32> to vector<32x10xf32>
    %14 = vector.extract_strided_slice %10 {offsets = [0, 2], sizes = [32, 10], strides = [1, 1]} : vector<32x12xf32> to vector<32x10xf32>
    %cst_6 = arith.constant 1.000000e+00 : f32
    %15 = vector.broadcast %cst_6 : f32 to vector<1x10xf32>
    %16 = tpu.concatenate %12, %13, %14, %15 in 0 : vector<32x10xf32>, vector<32x10xf32>, vector<32x10xf32>, vector<1x10xf32> -> vector<97x10xf32>
    %cst_7 = arith.constant dense<0.000000e+00> : vector<16x10xf32>
    %17 = tpu.matmul %11, %16, %cst_7 {dimension_numbers = #tpu.dot_dimension_numbers<[1], [0], [0], [1], [0, 0, 1, 1], [], []>} : vector<16x97xf32>, vector<97x10xf32>, vector<16x10xf32> -> vector<16x10xf32>
    %cst_8 = arith.constant 0.000000e+00 : f32
    %18 = vector.broadcast %cst_8 : f32 to vector<16x10xf32>
    %19 = arith.maximumf %17, %18 : vector<16x10xf32>
    %c48 = arith.constant 48 : index
    %c0_9 = arith.constant 0 : index
    %20 = vector.load %arg1[%c48, %c0_9] : memref<56x128xf32, #tpu.memory_space<vmem>>, vector<8x49xf32>
    %21 = vector.extract_strided_slice %19 {offsets = [0, 0], sizes = [16, 8], strides = [1, 1]} : vector<16x10xf32> to vector<16x8xf32>
    %22 = vector.extract_strided_slice %19 {offsets = [0, 1], sizes = [16, 8], strides = [1, 1]} : vector<16x10xf32> to vector<16x8xf32>
    %23 = vector.extract_strided_slice %19 {offsets = [0, 2], sizes = [16, 8], strides = [1, 1]} : vector<16x10xf32> to vector<16x8xf32>
    %cst_10 = arith.constant 1.000000e+00 : f32
    %24 = vector.broadcast %cst_10 : f32 to vector<1x8xf32>
    %25 = tpu.concatenate %21, %22, %23, %24 in 0 : vector<16x8xf32>, vector<16x8xf32>, vector<16x8xf32>, vector<1x8xf32> -> vector<49x8xf32>
    %cst_11 = arith.constant dense<0.000000e+00> : vector<8x8xf32>
    %26 = tpu.matmul %20, %25, %cst_11 {dimension_numbers = #tpu.dot_dimension_numbers<[1], [0], [0], [1], [0, 0, 1, 1], [], []>} : vector<8x49xf32>, vector<49x8xf32>, vector<8x8xf32> -> vector<8x8xf32>
    %cst_12 = arith.constant 0.000000e+00 : f32
    %27 = vector.broadcast %cst_12 : f32 to vector<8x8xf32>
    %28 = arith.maximumf %26, %27 : vector<8x8xf32>
    %c0_13 = arith.constant 0 : index
    %c0_14 = arith.constant 0 : index
    %29 = vector.load %arg1[%c0_13, %c0_14] : memref<56x128xf32, #tpu.memory_space<vmem>>, vector<32x46xf32>
    %30 = vector.extract_strided_slice %0 {offsets = [1, 0, 0], sizes = [1, 12, 15], strides = [1, 1, 1]} : vector<2x14x15xf32> to vector<1x12x15xf32>
    %31 = vector.shape_cast %30 : vector<1x12x15xf32> to vector<12x15xf32>
    %32 = vector.extract_strided_slice %0 {offsets = [1, 1, 0], sizes = [1, 12, 15], strides = [1, 1, 1]} : vector<2x14x15xf32> to vector<1x12x15xf32>
    %33 = vector.shape_cast %32 : vector<1x12x15xf32> to vector<12x15xf32>
    %34 = vector.extract_strided_slice %0 {offsets = [1, 2, 0], sizes = [1, 12, 15], strides = [1, 1, 1]} : vector<2x14x15xf32> to vector<1x12x15xf32>
    %35 = vector.shape_cast %34 : vector<1x12x15xf32> to vector<12x15xf32>
    %cst_15 = arith.constant 1.000000e+00 : f32
    %36 = vector.broadcast %cst_15 : f32 to vector<12x1xf32>
    %37 = tpu.concatenate %31, %33, %35, %36 in 1 : vector<12x15xf32>, vector<12x15xf32>, vector<12x15xf32>, vector<12x1xf32> -> vector<12x46xf32>
    %cst_16 = arith.constant dense<0.000000e+00> : vector<32x12xf32>
    %38 = tpu.matmul %29, %37, %cst_16 {dimension_numbers = #tpu.dot_dimension_numbers<[1], [1], [0], [0], [0, 0, 1, 0], [], []>} : vector<32x46xf32>, vector<12x46xf32>, vector<32x12xf32> -> vector<32x12xf32>
    %c32_17 = arith.constant 32 : index
    %c0_18 = arith.constant 0 : index
    %39 = vector.load %arg1[%c32_17, %c0_18] : memref<56x128xf32, #tpu.memory_space<vmem>>, vector<16x97xf32>
    %40 = vector.extract_strided_slice %38 {offsets = [0, 0], sizes = [32, 10], strides = [1, 1]} : vector<32x12xf32> to vector<32x10xf32>
    %41 = vector.extract_strided_slice %38 {offsets = [0, 1], sizes = [32, 10], strides = [1, 1]} : vector<32x12xf32> to vector<32x10xf32>
    %42 = vector.extract_strided_slice %38 {offsets = [0, 2], sizes = [32, 10], strides = [1, 1]} : vector<32x12xf32> to vector<32x10xf32>
    %cst_19 = arith.constant 1.000000e+00 : f32
    %43 = vector.broadcast %cst_19 : f32 to vector<1x10xf32>
    %44 = tpu.concatenate %40, %41, %42, %43 in 0 : vector<32x10xf32>, vector<32x10xf32>, vector<32x10xf32>, vector<1x10xf32> -> vector<97x10xf32>
    %cst_20 = arith.constant dense<0.000000e+00> : vector<16x10xf32>
    %45 = tpu.matmul %39, %44, %cst_20 {dimension_numbers = #tpu.dot_dimension_numbers<[1], [0], [0], [1], [0, 0, 1, 1], [], []>} : vector<16x97xf32>, vector<97x10xf32>, vector<16x10xf32> -> vector<16x10xf32>
    %cst_21 = arith.constant 0.000000e+00 : f32
    %46 = vector.broadcast %cst_21 : f32 to vector<16x10xf32>
    %47 = arith.maximumf %45, %46 : vector<16x10xf32>
    %c48_22 = arith.constant 48 : index
    %c0_23 = arith.constant 0 : index
    %48 = vector.load %arg1[%c48_22, %c0_23] : memref<56x128xf32, #tpu.memory_space<vmem>>, vector<8x49xf32>
    %49 = vector.extract_strided_slice %47 {offsets = [0, 0], sizes = [16, 8], strides = [1, 1]} : vector<16x10xf32> to vector<16x8xf32>
    %50 = vector.extract_strided_slice %47 {offsets = [0, 1], sizes = [16, 8], strides = [1, 1]} : vector<16x10xf32> to vector<16x8xf32>
    %51 = vector.extract_strided_slice %47 {offsets = [0, 2], sizes = [16, 8], strides = [1, 1]} : vector<16x10xf32> to vector<16x8xf32>
    %cst_24 = arith.constant 1.000000e+00 : f32
    %52 = vector.broadcast %cst_24 : f32 to vector<1x8xf32>
    %53 = tpu.concatenate %49, %50, %51, %52 in 0 : vector<16x8xf32>, vector<16x8xf32>, vector<16x8xf32>, vector<1x8xf32> -> vector<49x8xf32>
    %cst_25 = arith.constant dense<0.000000e+00> : vector<8x8xf32>
    %54 = tpu.matmul %48, %53, %cst_25 {dimension_numbers = #tpu.dot_dimension_numbers<[1], [0], [0], [1], [0, 0, 1, 1], [], []>} : vector<8x49xf32>, vector<49x8xf32>, vector<8x8xf32> -> vector<8x8xf32>
    %cst_26 = arith.constant 0.000000e+00 : f32
    %55 = vector.broadcast %cst_26 : f32 to vector<8x8xf32>
    %56 = arith.maximumf %54, %55 : vector<8x8xf32>
    %57 = tpu.concatenate %28, %56 in 0 : vector<8x8xf32>, vector<8x8xf32> -> vector<16x8xf32>
    %c0_27 = arith.constant 0 : index
    %c0_28 = arith.constant 0 : index
    %58 = vector.load %arg2[%c0_27, %c0_28] : memref<312x16xf32, #tpu.memory_space<vmem>>, vector<8x16xf32>
    %c24 = arith.constant 24 : index
    %c0_29 = arith.constant 0 : index
    %59 = vector.load %arg2[%c24, %c0_29] : memref<312x16xf32, #tpu.memory_space<vmem>>, vector<1x16xf32>
    %cst_30 = arith.constant dense<0.000000e+00> : vector<16x16xf32>
    %60 = tpu.matmul %57, %58, %cst_30 {dimension_numbers = #tpu.dot_dimension_numbers<[1], [0], [0], [1], [0, 0, 1, 1], [], []>} : vector<16x8xf32>, vector<8x16xf32>, vector<16x16xf32> -> vector<16x16xf32>
    %61 = vector.broadcast %59 : vector<1x16xf32> to vector<16x16xf32>
    %62 = arith.addf %60, %61 : vector<16x16xf32>
    %c32_31 = arith.constant 32 : index
    %c0_32 = arith.constant 0 : index
    %63 = vector.load %arg2[%c32_31, %c0_32] : memref<312x16xf32, #tpu.memory_space<vmem>>, vector<8x16xf32>
    %c56 = arith.constant 56 : index
    %c0_33 = arith.constant 0 : index
    %64 = vector.load %arg2[%c56, %c0_33] : memref<312x16xf32, #tpu.memory_space<vmem>>, vector<1x16xf32>
    %cst_34 = arith.constant dense<0.000000e+00> : vector<16x16xf32>
    %65 = tpu.matmul %57, %63, %cst_34 {dimension_numbers = #tpu.dot_dimension_numbers<[1], [0], [0], [1], [0, 0, 1, 1], [], []>} : vector<16x8xf32>, vector<8x16xf32>, vector<16x16xf32> -> vector<16x16xf32>
    %66 = vector.broadcast %64 : vector<1x16xf32> to vector<16x16xf32>
    %67 = arith.addf %65, %66 : vector<16x16xf32>
    %c64 = arith.constant 64 : index
    %c0_35 = arith.constant 0 : index
    %68 = vector.load %arg2[%c64, %c0_35] : memref<312x16xf32, #tpu.memory_space<vmem>>, vector<8x16xf32>
    %c88 = arith.constant 88 : index
    %c0_36 = arith.constant 0 : index
    %69 = vector.load %arg2[%c88, %c0_36] : memref<312x16xf32, #tpu.memory_space<vmem>>, vector<1x16xf32>
    %cst_37 = arith.constant dense<0.000000e+00> : vector<16x16xf32>
    %70 = tpu.matmul %57, %68, %cst_37 {dimension_numbers = #tpu.dot_dimension_numbers<[1], [0], [0], [1], [0, 0, 1, 1], [], []>} : vector<16x8xf32>, vector<8x16xf32>, vector<16x16xf32> -> vector<16x16xf32>
    %71 = vector.broadcast %69 : vector<1x16xf32> to vector<16x16xf32>
    %72 = arith.addf %70, %71 : vector<16x16xf32>
    %c96 = arith.constant 96 : index
    %c0_38 = arith.constant 0 : index
    %73 = vector.load %arg2[%c96, %c0_38] : memref<312x16xf32, #tpu.memory_space<vmem>>, vector<8x16xf32>
    %c120 = arith.constant 120 : index
    %c0_39 = arith.constant 0 : index
    %74 = vector.load %arg2[%c120, %c0_39] : memref<312x16xf32, #tpu.memory_space<vmem>>, vector<1x16xf32>
    %cst_40 = arith.constant dense<0.000000e+00> : vector<16x16xf32>
    %75 = tpu.matmul %57, %73, %cst_40 {dimension_numbers = #tpu.dot_dimension_numbers<[1], [0], [0], [1], [0, 0, 1, 1], [], []>} : vector<16x8xf32>, vector<8x16xf32>, vector<16x16xf32> -> vector<16x16xf32>
    %76 = vector.broadcast %74 : vector<1x16xf32> to vector<16x16xf32>
    %77 = arith.addf %75, %76 : vector<16x16xf32>
    %78 = vector.extract_strided_slice %62 {offsets = [0, 0], sizes = [1, 16], strides = [1, 1]} : vector<16x16xf32> to vector<1x16xf32>
    %79 = vector.extract_strided_slice %62 {offsets = [8, 0], sizes = [1, 16], strides = [1, 1]} : vector<16x16xf32> to vector<1x16xf32>
    %80 = tpu.concatenate %78, %79 in 0 : vector<1x16xf32>, vector<1x16xf32> -> vector<2x16xf32>
    %81 = vector.extract_strided_slice %67 {offsets = [0, 0], sizes = [1, 16], strides = [1, 1]} : vector<16x16xf32> to vector<1x16xf32>
    %82 = vector.extract_strided_slice %67 {offsets = [8, 0], sizes = [1, 16], strides = [1, 1]} : vector<16x16xf32> to vector<1x16xf32>
    %83 = tpu.concatenate %81, %82 in 0 : vector<1x16xf32>, vector<1x16xf32> -> vector<2x16xf32>
    %84 = vector.extract_strided_slice %72 {offsets = [0, 0], sizes = [1, 16], strides = [1, 1]} : vector<16x16xf32> to vector<1x16xf32>
    %85 = vector.extract_strided_slice %72 {offsets = [8, 0], sizes = [1, 16], strides = [1, 1]} : vector<16x16xf32> to vector<1x16xf32>
    %86 = tpu.concatenate %84, %85 in 0 : vector<1x16xf32>, vector<1x16xf32> -> vector<2x16xf32>
    %87 = vector.extract_strided_slice %77 {offsets = [0, 0], sizes = [1, 16], strides = [1, 1]} : vector<16x16xf32> to vector<1x16xf32>
    %88 = vector.extract_strided_slice %77 {offsets = [8, 0], sizes = [1, 16], strides = [1, 1]} : vector<16x16xf32> to vector<1x16xf32>
    %89 = tpu.concatenate %87, %88 in 0 : vector<1x16xf32>, vector<1x16xf32> -> vector<2x16xf32>
    %90 = vector.extract_strided_slice %62 {offsets = [1, 0], sizes = [1, 16], strides = [1, 1]} : vector<16x16xf32> to vector<1x16xf32>
    %91 = vector.extract_strided_slice %62 {offsets = [9, 0], sizes = [1, 16], strides = [1, 1]} : vector<16x16xf32> to vector<1x16xf32>
    %92 = tpu.concatenate %90, %91 in 0 : vector<1x16xf32>, vector<1x16xf32> -> vector<2x16xf32>
    %93 = vector.extract_strided_slice %67 {offsets = [1, 0], sizes = [1, 16], strides = [1, 1]} : vector<16x16xf32> to vector<1x16xf32>
    %94 = vector.extract_strided_slice %67 {offsets = [9, 0], sizes = [1, 16], strides = [1, 1]} : vector<16x16xf32> to vector<1x16xf32>
    %95 = tpu.concatenate %93, %94 in 0 : vector<1x16xf32>, vector<1x16xf32> -> vector<2x16xf32>
    %96 = vector.extract_strided_slice %72 {offsets = [1, 0], sizes = [1, 16], strides = [1, 1]} : vector<16x16xf32> to vector<1x16xf32>
    %97 = vector.extract_strided_slice %72 {offsets = [9, 0], sizes = [1, 16], strides = [1, 1]} : vector<16x16xf32> to vector<1x16xf32>
    %98 = tpu.concatenate %96, %97 in 0 : vector<1x16xf32>, vector<1x16xf32> -> vector<2x16xf32>
    %99 = vector.extract_strided_slice %77 {offsets = [1, 0], sizes = [1, 16], strides = [1, 1]} : vector<16x16xf32> to vector<1x16xf32>
    %100 = vector.extract_strided_slice %77 {offsets = [9, 0], sizes = [1, 16], strides = [1, 1]} : vector<16x16xf32> to vector<1x16xf32>
    %101 = tpu.concatenate %99, %100 in 0 : vector<1x16xf32>, vector<1x16xf32> -> vector<2x16xf32>
    %102 = vector.extract_strided_slice %62 {offsets = [2, 0], sizes = [1, 16], strides = [1, 1]} : vector<16x16xf32> to vector<1x16xf32>
    %103 = vector.extract_strided_slice %62 {offsets = [10, 0], sizes = [1, 16], strides = [1, 1]} : vector<16x16xf32> to vector<1x16xf32>
    %104 = tpu.concatenate %102, %103 in 0 : vector<1x16xf32>, vector<1x16xf32> -> vector<2x16xf32>
    %105 = vector.extract_strided_slice %67 {offsets = [2, 0], sizes = [1, 16], strides = [1, 1]} : vector<16x16xf32> to vector<1x16xf32>
    %106 = vector.extract_strided_slice %67 {offsets = [10, 0], sizes = [1, 16], strides = [1, 1]} : vector<16x16xf32> to vector<1x16xf32>
    %107 = tpu.concatenate %105, %106 in 0 : vector<1x16xf32>, vector<1x16xf32> -> vector<2x16xf32>
    %108 = vector.extract_strided_slice %72 {offsets = [2, 0], sizes = [1, 16], strides = [1, 1]} : vector<16x16xf32> to vector<1x16xf32>
    %109 = vector.extract_strided_slice %72 {offsets = [10, 0], sizes = [1, 16], strides = [1, 1]} : vector<16x16xf32> to vector<1x16xf32>
    %110 = tpu.concatenate %108, %109 in 0 : vector<1x16xf32>, vector<1x16xf32> -> vector<2x16xf32>
    %111 = vector.extract_strided_slice %77 {offsets = [2, 0], sizes = [1, 16], strides = [1, 1]} : vector<16x16xf32> to vector<1x16xf32>
    %112 = vector.extract_strided_slice %77 {offsets = [10, 0], sizes = [1, 16], strides = [1, 1]} : vector<16x16xf32> to vector<1x16xf32>
    %113 = tpu.concatenate %111, %112 in 0 : vector<1x16xf32>, vector<1x16xf32> -> vector<2x16xf32>
    %114 = vector.extract_strided_slice %62 {offsets = [3, 0], sizes = [1, 16], strides = [1, 1]} : vector<16x16xf32> to vector<1x16xf32>
    %115 = vector.extract_strided_slice %62 {offsets = [11, 0], sizes = [1, 16], strides = [1, 1]} : vector<16x16xf32> to vector<1x16xf32>
    %116 = tpu.concatenate %114, %115 in 0 : vector<1x16xf32>, vector<1x16xf32> -> vector<2x16xf32>
    %117 = vector.extract_strided_slice %67 {offsets = [3, 0], sizes = [1, 16], strides = [1, 1]} : vector<16x16xf32> to vector<1x16xf32>
    %118 = vector.extract_strided_slice %67 {offsets = [11, 0], sizes = [1, 16], strides = [1, 1]} : vector<16x16xf32> to vector<1x16xf32>
    %119 = tpu.concatenate %117, %118 in 0 : vector<1x16xf32>, vector<1x16xf32> -> vector<2x16xf32>
    %120 = vector.extract_strided_slice %72 {offsets = [3, 0], sizes = [1, 16], strides = [1, 1]} : vector<16x16xf32> to vector<1x16xf32>
    %121 = vector.extract_strided_slice %72 {offsets = [11, 0], sizes = [1, 16], strides = [1, 1]} : vector<16x16xf32> to vector<1x16xf32>
    %122 = tpu.concatenate %120, %121 in 0 : vector<1x16xf32>, vector<1x16xf32> -> vector<2x16xf32>
    %123 = vector.extract_strided_slice %77 {offsets = [3, 0], sizes = [1, 16], strides = [1, 1]} : vector<16x16xf32> to vector<1x16xf32>
    %124 = vector.extract_strided_slice %77 {offsets = [11, 0], sizes = [1, 16], strides = [1, 1]} : vector<16x16xf32> to vector<1x16xf32>
    %125 = tpu.concatenate %123, %124 in 0 : vector<1x16xf32>, vector<1x16xf32> -> vector<2x16xf32>
    %126 = vector.extract_strided_slice %62 {offsets = [4, 0], sizes = [1, 16], strides = [1, 1]} : vector<16x16xf32> to vector<1x16xf32>
    %127 = vector.extract_strided_slice %62 {offsets = [12, 0], sizes = [1, 16], strides = [1, 1]} : vector<16x16xf32> to vector<1x16xf32>
    %128 = tpu.concatenate %126, %127 in 0 : vector<1x16xf32>, vector<1x16xf32> -> vector<2x16xf32>
    %129 = vector.extract_strided_slice %67 {offsets = [4, 0], sizes = [1, 16], strides = [1, 1]} : vector<16x16xf32> to vector<1x16xf32>
    %130 = vector.extract_strided_slice %67 {offsets = [12, 0], sizes = [1, 16], strides = [1, 1]} : vector<16x16xf32> to vector<1x16xf32>
    %131 = tpu.concatenate %129, %130 in 0 : vector<1x16xf32>, vector<1x16xf32> -> vector<2x16xf32>
    %132 = vector.extract_strided_slice %72 {offsets = [4, 0], sizes = [1, 16], strides = [1, 1]} : vector<16x16xf32> to vector<1x16xf32>
    %133 = vector.extract_strided_slice %72 {offsets = [12, 0], sizes = [1, 16], strides = [1, 1]} : vector<16x16xf32> to vector<1x16xf32>
    %134 = tpu.concatenate %132, %133 in 0 : vector<1x16xf32>, vector<1x16xf32> -> vector<2x16xf32>
    %135 = vector.extract_strided_slice %77 {offsets = [4, 0], sizes = [1, 16], strides = [1, 1]} : vector<16x16xf32> to vector<1x16xf32>
    %136 = vector.extract_strided_slice %77 {offsets = [12, 0], sizes = [1, 16], strides = [1, 1]} : vector<16x16xf32> to vector<1x16xf32>
    %137 = tpu.concatenate %135, %136 in 0 : vector<1x16xf32>, vector<1x16xf32> -> vector<2x16xf32>
    %138 = vector.extract_strided_slice %62 {offsets = [5, 0], sizes = [1, 16], strides = [1, 1]} : vector<16x16xf32> to vector<1x16xf32>
    %139 = vector.extract_strided_slice %62 {offsets = [13, 0], sizes = [1, 16], strides = [1, 1]} : vector<16x16xf32> to vector<1x16xf32>
    %140 = tpu.concatenate %138, %139 in 0 : vector<1x16xf32>, vector<1x16xf32> -> vector<2x16xf32>
    %141 = vector.extract_strided_slice %67 {offsets = [5, 0], sizes = [1, 16], strides = [1, 1]} : vector<16x16xf32> to vector<1x16xf32>
    %142 = vector.extract_strided_slice %67 {offsets = [13, 0], sizes = [1, 16], strides = [1, 1]} : vector<16x16xf32> to vector<1x16xf32>
    %143 = tpu.concatenate %141, %142 in 0 : vector<1x16xf32>, vector<1x16xf32> -> vector<2x16xf32>
    %144 = vector.extract_strided_slice %72 {offsets = [5, 0], sizes = [1, 16], strides = [1, 1]} : vector<16x16xf32> to vector<1x16xf32>
    %145 = vector.extract_strided_slice %72 {offsets = [13, 0], sizes = [1, 16], strides = [1, 1]} : vector<16x16xf32> to vector<1x16xf32>
    %146 = tpu.concatenate %144, %145 in 0 : vector<1x16xf32>, vector<1x16xf32> -> vector<2x16xf32>
    %147 = vector.extract_strided_slice %77 {offsets = [5, 0], sizes = [1, 16], strides = [1, 1]} : vector<16x16xf32> to vector<1x16xf32>
    %148 = vector.extract_strided_slice %77 {offsets = [13, 0], sizes = [1, 16], strides = [1, 1]} : vector<16x16xf32> to vector<1x16xf32>
    %149 = tpu.concatenate %147, %148 in 0 : vector<1x16xf32>, vector<1x16xf32> -> vector<2x16xf32>
    %150 = vector.extract_strided_slice %62 {offsets = [6, 0], sizes = [1, 16], strides = [1, 1]} : vector<16x16xf32> to vector<1x16xf32>
    %151 = vector.extract_strided_slice %62 {offsets = [14, 0], sizes = [1, 16], strides = [1, 1]} : vector<16x16xf32> to vector<1x16xf32>
    %152 = tpu.concatenate %150, %151 in 0 : vector<1x16xf32>, vector<1x16xf32> -> vector<2x16xf32>
    %153 = vector.extract_strided_slice %67 {offsets = [6, 0], sizes = [1, 16], strides = [1, 1]} : vector<16x16xf32> to vector<1x16xf32>
    %154 = vector.extract_strided_slice %67 {offsets = [14, 0], sizes = [1, 16], strides = [1, 1]} : vector<16x16xf32> to vector<1x16xf32>
    %155 = tpu.concatenate %153, %154 in 0 : vector<1x16xf32>, vector<1x16xf32> -> vector<2x16xf32>
    %156 = vector.extract_strided_slice %72 {offsets = [6, 0], sizes = [1, 16], strides = [1, 1]} : vector<16x16xf32> to vector<1x16xf32>
    %157 = vector.extract_strided_slice %72 {offsets = [14, 0], sizes = [1, 16], strides = [1, 1]} : vector<16x16xf32> to vector<1x16xf32>
    %158 = tpu.concatenate %156, %157 in 0 : vector<1x16xf32>, vector<1x16xf32> -> vector<2x16xf32>
    %159 = vector.extract_strided_slice %77 {offsets = [6, 0], sizes = [1, 16], strides = [1, 1]} : vector<16x16xf32> to vector<1x16xf32>
    %160 = vector.extract_strided_slice %77 {offsets = [14, 0], sizes = [1, 16], strides = [1, 1]} : vector<16x16xf32> to vector<1x16xf32>
    %161 = tpu.concatenate %159, %160 in 0 : vector<1x16xf32>, vector<1x16xf32> -> vector<2x16xf32>
    %162 = vector.extract_strided_slice %62 {offsets = [7, 0], sizes = [1, 16], strides = [1, 1]} : vector<16x16xf32> to vector<1x16xf32>
    %163 = vector.extract_strided_slice %62 {offsets = [15, 0], sizes = [1, 16], strides = [1, 1]} : vector<16x16xf32> to vector<1x16xf32>
    %164 = tpu.concatenate %162, %163 in 0 : vector<1x16xf32>, vector<1x16xf32> -> vector<2x16xf32>
    %165 = vector.extract_strided_slice %67 {offsets = [7, 0], sizes = [1, 16], strides = [1, 1]} : vector<16x16xf32> to vector<1x16xf32>
    %166 = vector.extract_strided_slice %67 {offsets = [15, 0], sizes = [1, 16], strides = [1, 1]} : vector<16x16xf32> to vector<1x16xf32>
    %167 = tpu.concatenate %165, %166 in 0 : vector<1x16xf32>, vector<1x16xf32> -> vector<2x16xf32>
    %168 = vector.extract_strided_slice %72 {offsets = [7, 0], sizes = [1, 16], strides = [1, 1]} : vector<16x16xf32> to vector<1x16xf32>
    %169 = vector.extract_strided_slice %72 {offsets = [15, 0], sizes = [1, 16], strides = [1, 1]} : vector<16x16xf32> to vector<1x16xf32>
    %170 = tpu.concatenate %168, %169 in 0 : vector<1x16xf32>, vector<1x16xf32> -> vector<2x16xf32>
    %171 = vector.extract_strided_slice %77 {offsets = [7, 0], sizes = [1, 16], strides = [1, 1]} : vector<16x16xf32> to vector<1x16xf32>
    %172 = vector.extract_strided_slice %77 {offsets = [15, 0], sizes = [1, 16], strides = [1, 1]} : vector<16x16xf32> to vector<1x16xf32>
    %173 = tpu.concatenate %171, %172 in 0 : vector<1x16xf32>, vector<1x16xf32> -> vector<2x16xf32>
    %c8 = arith.constant 8 : index
    %c0_41 = arith.constant 0 : index
    %174 = vector.load %arg2[%c8, %c0_41] : memref<312x16xf32, #tpu.memory_space<vmem>>, vector<16x16xf32>
    %c40 = arith.constant 40 : index
    %c0_42 = arith.constant 0 : index
    %175 = vector.load %arg2[%c40, %c0_42] : memref<312x16xf32, #tpu.memory_space<vmem>>, vector<16x16xf32>
    %c72 = arith.constant 72 : index
    %c0_43 = arith.constant 0 : index
    %176 = vector.load %arg2[%c72, %c0_43] : memref<312x16xf32, #tpu.memory_space<vmem>>, vector<16x16xf32>
    %c104 = arith.constant 104 : index
    %c0_44 = arith.constant 0 : index
    %177 = vector.load %arg2[%c104, %c0_44] : memref<312x16xf32, #tpu.memory_space<vmem>>, vector<16x16xf32>
    %c144 = arith.constant 144 : index
    %c0_45 = arith.constant 0 : index
    %178 = vector.load %arg2[%c144, %c0_45] : memref<312x16xf32, #tpu.memory_space<vmem>>, vector<16x16xf32>
    %c184 = arith.constant 184 : index
    %c0_46 = arith.constant 0 : index
    %179 = vector.load %arg2[%c184, %c0_46] : memref<312x16xf32, #tpu.memory_space<vmem>>, vector<16x16xf32>
    %c224 = arith.constant 224 : index
    %c0_47 = arith.constant 0 : index
    %180 = vector.load %arg2[%c224, %c0_47] : memref<312x16xf32, #tpu.memory_space<vmem>>, vector<16x16xf32>
    %c264 = arith.constant 264 : index
    %c0_48 = arith.constant 0 : index
    %181 = vector.load %arg2[%c264, %c0_48] : memref<312x16xf32, #tpu.memory_space<vmem>>, vector<16x16xf32>
    %c128 = arith.constant 128 : index
    %c0_49 = arith.constant 0 : index
    %182 = vector.load %arg2[%c128, %c0_49] : memref<312x16xf32, #tpu.memory_space<vmem>>, vector<16x16xf32>
    %c168 = arith.constant 168 : index
    %c0_50 = arith.constant 0 : index
    %183 = vector.load %arg2[%c168, %c0_50] : memref<312x16xf32, #tpu.memory_space<vmem>>, vector<16x16xf32>
    %c208 = arith.constant 208 : index
    %c0_51 = arith.constant 0 : index
    %184 = vector.load %arg2[%c208, %c0_51] : memref<312x16xf32, #tpu.memory_space<vmem>>, vector<16x16xf32>
    %c248 = arith.constant 248 : index
    %c0_52 = arith.constant 0 : index
    %185 = vector.load %arg2[%c248, %c0_52] : memref<312x16xf32, #tpu.memory_space<vmem>>, vector<16x16xf32>
    %c160 = arith.constant 160 : index
    %c0_53 = arith.constant 0 : index
    %186 = vector.load %arg2[%c160, %c0_53] : memref<312x16xf32, #tpu.memory_space<vmem>>, vector<1x16xf32>
    %c200 = arith.constant 200 : index
    %c0_54 = arith.constant 0 : index
    %187 = vector.load %arg2[%c200, %c0_54] : memref<312x16xf32, #tpu.memory_space<vmem>>, vector<1x16xf32>
    %c240 = arith.constant 240 : index
    %c0_55 = arith.constant 0 : index
    %188 = vector.load %arg2[%c240, %c0_55] : memref<312x16xf32, #tpu.memory_space<vmem>>, vector<1x16xf32>
    %c280 = arith.constant 280 : index
    %c0_56 = arith.constant 0 : index
    %189 = vector.load %arg2[%c280, %c0_56] : memref<312x16xf32, #tpu.memory_space<vmem>>, vector<1x16xf32>
    %cst_57 = arith.constant 0.000000e+00 : f32
    %190 = vector.broadcast %cst_57 : f32 to vector<2x16xf32>
    %cst_58 = arith.constant 0.000000e+00 : f32
    %191 = vector.broadcast %cst_58 : f32 to vector<2x16xf32>
    %cst_59 = arith.constant 0.000000e+00 : f32
    %192 = vector.broadcast %cst_59 : f32 to vector<2x16xf32>
    %cst_60 = arith.constant 0.000000e+00 : f32
    %193 = vector.broadcast %cst_60 : f32 to vector<2x16xf32>
    %cst_61 = arith.constant dense<0.000000e+00> : vector<2x16xf32>
    %194 = tpu.matmul %190, %174, %cst_61 {dimension_numbers = #tpu.dot_dimension_numbers<[1], [0], [0], [1], [0, 0, 1, 1], [], []>} : vector<2x16xf32>, vector<16x16xf32>, vector<2x16xf32> -> vector<2x16xf32>
    %195 = arith.addf %80, %194 : vector<2x16xf32>
    %cst_62 = arith.constant 5.000000e-01 : f32
    %196 = vector.broadcast %cst_62 : f32 to vector<2x16xf32>
    %197 = arith.mulf %196, %195 : vector<2x16xf32>
    %198 = math.tanh %197 : vector<2x16xf32>
    %cst_63 = arith.constant 5.000000e-01 : f32
    %199 = vector.broadcast %cst_63 : f32 to vector<2x16xf32>
    %200 = arith.mulf %199, %198 : vector<2x16xf32>
    %cst_64 = arith.constant 5.000000e-01 : f32
    %201 = vector.broadcast %cst_64 : f32 to vector<2x16xf32>
    %202 = arith.addf %200, %201 : vector<2x16xf32>
    %cst_65 = arith.constant dense<0.000000e+00> : vector<2x16xf32>
    %203 = tpu.matmul %190, %175, %cst_65 {dimension_numbers = #tpu.dot_dimension_numbers<[1], [0], [0], [1], [0, 0, 1, 1], [], []>} : vector<2x16xf32>, vector<16x16xf32>, vector<2x16xf32> -> vector<2x16xf32>
    %204 = arith.addf %83, %203 : vector<2x16xf32>
    %cst_66 = arith.constant 5.000000e-01 : f32
    %205 = vector.broadcast %cst_66 : f32 to vector<2x16xf32>
    %206 = arith.mulf %205, %204 : vector<2x16xf32>
    %207 = math.tanh %206 : vector<2x16xf32>
    %cst_67 = arith.constant 5.000000e-01 : f32
    %208 = vector.broadcast %cst_67 : f32 to vector<2x16xf32>
    %209 = arith.mulf %208, %207 : vector<2x16xf32>
    %cst_68 = arith.constant 5.000000e-01 : f32
    %210 = vector.broadcast %cst_68 : f32 to vector<2x16xf32>
    %211 = arith.addf %209, %210 : vector<2x16xf32>
    %cst_69 = arith.constant dense<0.000000e+00> : vector<2x16xf32>
    %212 = tpu.matmul %190, %176, %cst_69 {dimension_numbers = #tpu.dot_dimension_numbers<[1], [0], [0], [1], [0, 0, 1, 1], [], []>} : vector<2x16xf32>, vector<16x16xf32>, vector<2x16xf32> -> vector<2x16xf32>
    %213 = arith.addf %86, %212 : vector<2x16xf32>
    %214 = math.tanh %213 : vector<2x16xf32>
    %cst_70 = arith.constant dense<0.000000e+00> : vector<2x16xf32>
    %215 = tpu.matmul %190, %177, %cst_70 {dimension_numbers = #tpu.dot_dimension_numbers<[1], [0], [0], [1], [0, 0, 1, 1], [], []>} : vector<2x16xf32>, vector<16x16xf32>, vector<2x16xf32> -> vector<2x16xf32>
    %216 = arith.addf %89, %215 : vector<2x16xf32>
    %cst_71 = arith.constant 5.000000e-01 : f32
    %217 = vector.broadcast %cst_71 : f32 to vector<2x16xf32>
    %218 = arith.mulf %217, %216 : vector<2x16xf32>
    %219 = math.tanh %218 : vector<2x16xf32>
    %cst_72 = arith.constant 5.000000e-01 : f32
    %220 = vector.broadcast %cst_72 : f32 to vector<2x16xf32>
    %221 = arith.mulf %220, %219 : vector<2x16xf32>
    %cst_73 = arith.constant 5.000000e-01 : f32
    %222 = vector.broadcast %cst_73 : f32 to vector<2x16xf32>
    %223 = arith.addf %221, %222 : vector<2x16xf32>
    %224 = arith.mulf %211, %192 : vector<2x16xf32>
    %225 = arith.mulf %202, %214 : vector<2x16xf32>
    %226 = arith.addf %224, %225 : vector<2x16xf32>
    %227 = math.tanh %226 : vector<2x16xf32>
    %228 = arith.mulf %223, %227 : vector<2x16xf32>
    %cst_74 = arith.constant dense<0.000000e+00> : vector<2x16xf32>
    %229 = tpu.matmul %228, %182, %cst_74 {dimension_numbers = #tpu.dot_dimension_numbers<[1], [0], [0], [1], [0, 0, 1, 1], [], []>} : vector<2x16xf32>, vector<16x16xf32>, vector<2x16xf32> -> vector<2x16xf32>
    %230 = vector.broadcast %186 : vector<1x16xf32> to vector<2x16xf32>
    %231 = arith.addf %229, %230 : vector<2x16xf32>
    %cst_75 = arith.constant dense<0.000000e+00> : vector<2x16xf32>
    %232 = tpu.matmul %228, %183, %cst_75 {dimension_numbers = #tpu.dot_dimension_numbers<[1], [0], [0], [1], [0, 0, 1, 1], [], []>} : vector<2x16xf32>, vector<16x16xf32>, vector<2x16xf32> -> vector<2x16xf32>
    %233 = vector.broadcast %187 : vector<1x16xf32> to vector<2x16xf32>
    %234 = arith.addf %232, %233 : vector<2x16xf32>
    %cst_76 = arith.constant dense<0.000000e+00> : vector<2x16xf32>
    %235 = tpu.matmul %228, %184, %cst_76 {dimension_numbers = #tpu.dot_dimension_numbers<[1], [0], [0], [1], [0, 0, 1, 1], [], []>} : vector<2x16xf32>, vector<16x16xf32>, vector<2x16xf32> -> vector<2x16xf32>
    %236 = vector.broadcast %188 : vector<1x16xf32> to vector<2x16xf32>
    %237 = arith.addf %235, %236 : vector<2x16xf32>
    %cst_77 = arith.constant dense<0.000000e+00> : vector<2x16xf32>
    %238 = tpu.matmul %228, %185, %cst_77 {dimension_numbers = #tpu.dot_dimension_numbers<[1], [0], [0], [1], [0, 0, 1, 1], [], []>} : vector<2x16xf32>, vector<16x16xf32>, vector<2x16xf32> -> vector<2x16xf32>
    %239 = vector.broadcast %189 : vector<1x16xf32> to vector<2x16xf32>
    %240 = arith.addf %238, %239 : vector<2x16xf32>
    %cst_78 = arith.constant dense<0.000000e+00> : vector<2x16xf32>
    %241 = tpu.matmul %191, %178, %cst_78 {dimension_numbers = #tpu.dot_dimension_numbers<[1], [0], [0], [1], [0, 0, 1, 1], [], []>} : vector<2x16xf32>, vector<16x16xf32>, vector<2x16xf32> -> vector<2x16xf32>
    %242 = arith.addf %231, %241 : vector<2x16xf32>
    %cst_79 = arith.constant 5.000000e-01 : f32
    %243 = vector.broadcast %cst_79 : f32 to vector<2x16xf32>
    %244 = arith.mulf %243, %242 : vector<2x16xf32>
    %245 = math.tanh %244 : vector<2x16xf32>
    %cst_80 = arith.constant 5.000000e-01 : f32
    %246 = vector.broadcast %cst_80 : f32 to vector<2x16xf32>
    %247 = arith.mulf %246, %245 : vector<2x16xf32>
    %cst_81 = arith.constant 5.000000e-01 : f32
    %248 = vector.broadcast %cst_81 : f32 to vector<2x16xf32>
    %249 = arith.addf %247, %248 : vector<2x16xf32>
    %cst_82 = arith.constant dense<0.000000e+00> : vector<2x16xf32>
    %250 = tpu.matmul %191, %179, %cst_82 {dimension_numbers = #tpu.dot_dimension_numbers<[1], [0], [0], [1], [0, 0, 1, 1], [], []>} : vector<2x16xf32>, vector<16x16xf32>, vector<2x16xf32> -> vector<2x16xf32>
    %251 = arith.addf %234, %250 : vector<2x16xf32>
    %cst_83 = arith.constant 5.000000e-01 : f32
    %252 = vector.broadcast %cst_83 : f32 to vector<2x16xf32>
    %253 = arith.mulf %252, %251 : vector<2x16xf32>
    %254 = math.tanh %253 : vector<2x16xf32>
    %cst_84 = arith.constant 5.000000e-01 : f32
    %255 = vector.broadcast %cst_84 : f32 to vector<2x16xf32>
    %256 = arith.mulf %255, %254 : vector<2x16xf32>
    %cst_85 = arith.constant 5.000000e-01 : f32
    %257 = vector.broadcast %cst_85 : f32 to vector<2x16xf32>
    %258 = arith.addf %256, %257 : vector<2x16xf32>
    %cst_86 = arith.constant dense<0.000000e+00> : vector<2x16xf32>
    %259 = tpu.matmul %191, %180, %cst_86 {dimension_numbers = #tpu.dot_dimension_numbers<[1], [0], [0], [1], [0, 0, 1, 1], [], []>} : vector<2x16xf32>, vector<16x16xf32>, vector<2x16xf32> -> vector<2x16xf32>
    %260 = arith.addf %237, %259 : vector<2x16xf32>
    %261 = math.tanh %260 : vector<2x16xf32>
    %cst_87 = arith.constant dense<0.000000e+00> : vector<2x16xf32>
    %262 = tpu.matmul %191, %181, %cst_87 {dimension_numbers = #tpu.dot_dimension_numbers<[1], [0], [0], [1], [0, 0, 1, 1], [], []>} : vector<2x16xf32>, vector<16x16xf32>, vector<2x16xf32> -> vector<2x16xf32>
    %263 = arith.addf %240, %262 : vector<2x16xf32>
    %cst_88 = arith.constant 5.000000e-01 : f32
    %264 = vector.broadcast %cst_88 : f32 to vector<2x16xf32>
    %265 = arith.mulf %264, %263 : vector<2x16xf32>
    %266 = math.tanh %265 : vector<2x16xf32>
    %cst_89 = arith.constant 5.000000e-01 : f32
    %267 = vector.broadcast %cst_89 : f32 to vector<2x16xf32>
    %268 = arith.mulf %267, %266 : vector<2x16xf32>
    %cst_90 = arith.constant 5.000000e-01 : f32
    %269 = vector.broadcast %cst_90 : f32 to vector<2x16xf32>
    %270 = arith.addf %268, %269 : vector<2x16xf32>
    %271 = arith.mulf %258, %193 : vector<2x16xf32>
    %272 = arith.mulf %249, %261 : vector<2x16xf32>
    %273 = arith.addf %271, %272 : vector<2x16xf32>
    %274 = math.tanh %273 : vector<2x16xf32>
    %275 = arith.mulf %270, %274 : vector<2x16xf32>
    %cst_91 = arith.constant dense<0.000000e+00> : vector<2x16xf32>
    %276 = tpu.matmul %228, %174, %cst_91 {dimension_numbers = #tpu.dot_dimension_numbers<[1], [0], [0], [1], [0, 0, 1, 1], [], []>} : vector<2x16xf32>, vector<16x16xf32>, vector<2x16xf32> -> vector<2x16xf32>
    %277 = arith.addf %92, %276 : vector<2x16xf32>
    %cst_92 = arith.constant 5.000000e-01 : f32
    %278 = vector.broadcast %cst_92 : f32 to vector<2x16xf32>
    %279 = arith.mulf %278, %277 : vector<2x16xf32>
    %280 = math.tanh %279 : vector<2x16xf32>
    %cst_93 = arith.constant 5.000000e-01 : f32
    %281 = vector.broadcast %cst_93 : f32 to vector<2x16xf32>
    %282 = arith.mulf %281, %280 : vector<2x16xf32>
    %cst_94 = arith.constant 5.000000e-01 : f32
    %283 = vector.broadcast %cst_94 : f32 to vector<2x16xf32>
    %284 = arith.addf %282, %283 : vector<2x16xf32>
    %cst_95 = arith.constant dense<0.000000e+00> : vector<2x16xf32>
    %285 = tpu.matmul %228, %175, %cst_95 {dimension_numbers = #tpu.dot_dimension_numbers<[1], [0], [0], [1], [0, 0, 1, 1], [], []>} : vector<2x16xf32>, vector<16x16xf32>, vector<2x16xf32> -> vector<2x16xf32>
    %286 = arith.addf %95, %285 : vector<2x16xf32>
    %cst_96 = arith.constant 5.000000e-01 : f32
    %287 = vector.broadcast %cst_96 : f32 to vector<2x16xf32>
    %288 = arith.mulf %287, %286 : vector<2x16xf32>
    %289 = math.tanh %288 : vector<2x16xf32>
    %cst_97 = arith.constant 5.000000e-01 : f32
    %290 = vector.broadcast %cst_97 : f32 to vector<2x16xf32>
    %291 = arith.mulf %290, %289 : vector<2x16xf32>
    %cst_98 = arith.constant 5.000000e-01 : f32
    %292 = vector.broadcast %cst_98 : f32 to vector<2x16xf32>
    %293 = arith.addf %291, %292 : vector<2x16xf32>
    %cst_99 = arith.constant dense<0.000000e+00> : vector<2x16xf32>
    %294 = tpu.matmul %228, %176, %cst_99 {dimension_numbers = #tpu.dot_dimension_numbers<[1], [0], [0], [1], [0, 0, 1, 1], [], []>} : vector<2x16xf32>, vector<16x16xf32>, vector<2x16xf32> -> vector<2x16xf32>
    %295 = arith.addf %98, %294 : vector<2x16xf32>
    %296 = math.tanh %295 : vector<2x16xf32>
    %cst_100 = arith.constant dense<0.000000e+00> : vector<2x16xf32>
    %297 = tpu.matmul %228, %177, %cst_100 {dimension_numbers = #tpu.dot_dimension_numbers<[1], [0], [0], [1], [0, 0, 1, 1], [], []>} : vector<2x16xf32>, vector<16x16xf32>, vector<2x16xf32> -> vector<2x16xf32>
    %298 = arith.addf %101, %297 : vector<2x16xf32>
    %cst_101 = arith.constant 5.000000e-01 : f32
    %299 = vector.broadcast %cst_101 : f32 to vector<2x16xf32>
    %300 = arith.mulf %299, %298 : vector<2x16xf32>
    %301 = math.tanh %300 : vector<2x16xf32>
    %cst_102 = arith.constant 5.000000e-01 : f32
    %302 = vector.broadcast %cst_102 : f32 to vector<2x16xf32>
    %303 = arith.mulf %302, %301 : vector<2x16xf32>
    %cst_103 = arith.constant 5.000000e-01 : f32
    %304 = vector.broadcast %cst_103 : f32 to vector<2x16xf32>
    %305 = arith.addf %303, %304 : vector<2x16xf32>
    %306 = arith.mulf %293, %226 : vector<2x16xf32>
    %307 = arith.mulf %284, %296 : vector<2x16xf32>
    %308 = arith.addf %306, %307 : vector<2x16xf32>
    %309 = math.tanh %308 : vector<2x16xf32>
    %310 = arith.mulf %305, %309 : vector<2x16xf32>
    %cst_104 = arith.constant dense<0.000000e+00> : vector<2x16xf32>
    %311 = tpu.matmul %310, %182, %cst_104 {dimension_numbers = #tpu.dot_dimension_numbers<[1], [0], [0], [1], [0, 0, 1, 1], [], []>} : vector<2x16xf32>, vector<16x16xf32>, vector<2x16xf32> -> vector<2x16xf32>
    %312 = vector.broadcast %186 : vector<1x16xf32> to vector<2x16xf32>
    %313 = arith.addf %311, %312 : vector<2x16xf32>
    %cst_105 = arith.constant dense<0.000000e+00> : vector<2x16xf32>
    %314 = tpu.matmul %310, %183, %cst_105 {dimension_numbers = #tpu.dot_dimension_numbers<[1], [0], [0], [1], [0, 0, 1, 1], [], []>} : vector<2x16xf32>, vector<16x16xf32>, vector<2x16xf32> -> vector<2x16xf32>
    %315 = vector.broadcast %187 : vector<1x16xf32> to vector<2x16xf32>
    %316 = arith.addf %314, %315 : vector<2x16xf32>
    %cst_106 = arith.constant dense<0.000000e+00> : vector<2x16xf32>
    %317 = tpu.matmul %310, %184, %cst_106 {dimension_numbers = #tpu.dot_dimension_numbers<[1], [0], [0], [1], [0, 0, 1, 1], [], []>} : vector<2x16xf32>, vector<16x16xf32>, vector<2x16xf32> -> vector<2x16xf32>
    %318 = vector.broadcast %188 : vector<1x16xf32> to vector<2x16xf32>
    %319 = arith.addf %317, %318 : vector<2x16xf32>
    %cst_107 = arith.constant dense<0.000000e+00> : vector<2x16xf32>
    %320 = tpu.matmul %310, %185, %cst_107 {dimension_numbers = #tpu.dot_dimension_numbers<[1], [0], [0], [1], [0, 0, 1, 1], [], []>} : vector<2x16xf32>, vector<16x16xf32>, vector<2x16xf32> -> vector<2x16xf32>
    %321 = vector.broadcast %189 : vector<1x16xf32> to vector<2x16xf32>
    %322 = arith.addf %320, %321 : vector<2x16xf32>
    %cst_108 = arith.constant dense<0.000000e+00> : vector<2x16xf32>
    %323 = tpu.matmul %275, %178, %cst_108 {dimension_numbers = #tpu.dot_dimension_numbers<[1], [0], [0], [1], [0, 0, 1, 1], [], []>} : vector<2x16xf32>, vector<16x16xf32>, vector<2x16xf32> -> vector<2x16xf32>
    %324 = arith.addf %313, %323 : vector<2x16xf32>
    %cst_109 = arith.constant 5.000000e-01 : f32
    %325 = vector.broadcast %cst_109 : f32 to vector<2x16xf32>
    %326 = arith.mulf %325, %324 : vector<2x16xf32>
    %327 = math.tanh %326 : vector<2x16xf32>
    %cst_110 = arith.constant 5.000000e-01 : f32
    %328 = vector.broadcast %cst_110 : f32 to vector<2x16xf32>
    %329 = arith.mulf %328, %327 : vector<2x16xf32>
    %cst_111 = arith.constant 5.000000e-01 : f32
    %330 = vector.broadcast %cst_111 : f32 to vector<2x16xf32>
    %331 = arith.addf %329, %330 : vector<2x16xf32>
    %cst_112 = arith.constant dense<0.000000e+00> : vector<2x16xf32>
    %332 = tpu.matmul %275, %179, %cst_112 {dimension_numbers = #tpu.dot_dimension_numbers<[1], [0], [0], [1], [0, 0, 1, 1], [], []>} : vector<2x16xf32>, vector<16x16xf32>, vector<2x16xf32> -> vector<2x16xf32>
    %333 = arith.addf %316, %332 : vector<2x16xf32>
    %cst_113 = arith.constant 5.000000e-01 : f32
    %334 = vector.broadcast %cst_113 : f32 to vector<2x16xf32>
    %335 = arith.mulf %334, %333 : vector<2x16xf32>
    %336 = math.tanh %335 : vector<2x16xf32>
    %cst_114 = arith.constant 5.000000e-01 : f32
    %337 = vector.broadcast %cst_114 : f32 to vector<2x16xf32>
    %338 = arith.mulf %337, %336 : vector<2x16xf32>
    %cst_115 = arith.constant 5.000000e-01 : f32
    %339 = vector.broadcast %cst_115 : f32 to vector<2x16xf32>
    %340 = arith.addf %338, %339 : vector<2x16xf32>
    %cst_116 = arith.constant dense<0.000000e+00> : vector<2x16xf32>
    %341 = tpu.matmul %275, %180, %cst_116 {dimension_numbers = #tpu.dot_dimension_numbers<[1], [0], [0], [1], [0, 0, 1, 1], [], []>} : vector<2x16xf32>, vector<16x16xf32>, vector<2x16xf32> -> vector<2x16xf32>
    %342 = arith.addf %319, %341 : vector<2x16xf32>
    %343 = math.tanh %342 : vector<2x16xf32>
    %cst_117 = arith.constant dense<0.000000e+00> : vector<2x16xf32>
    %344 = tpu.matmul %275, %181, %cst_117 {dimension_numbers = #tpu.dot_dimension_numbers<[1], [0], [0], [1], [0, 0, 1, 1], [], []>} : vector<2x16xf32>, vector<16x16xf32>, vector<2x16xf32> -> vector<2x16xf32>
    %345 = arith.addf %322, %344 : vector<2x16xf32>
    %cst_118 = arith.constant 5.000000e-01 : f32
    %346 = vector.broadcast %cst_118 : f32 to vector<2x16xf32>
    %347 = arith.mulf %346, %345 : vector<2x16xf32>
    %348 = math.tanh %347 : vector<2x16xf32>
    %cst_119 = arith.constant 5.000000e-01 : f32
    %349 = vector.broadcast %cst_119 : f32 to vector<2x16xf32>
    %350 = arith.mulf %349, %348 : vector<2x16xf32>
    %cst_120 = arith.constant 5.000000e-01 : f32
    %351 = vector.broadcast %cst_120 : f32 to vector<2x16xf32>
    %352 = arith.addf %350, %351 : vector<2x16xf32>
    %353 = arith.mulf %340, %273 : vector<2x16xf32>
    %354 = arith.mulf %331, %343 : vector<2x16xf32>
    %355 = arith.addf %353, %354 : vector<2x16xf32>
    %356 = math.tanh %355 : vector<2x16xf32>
    %357 = arith.mulf %352, %356 : vector<2x16xf32>
    %cst_121 = arith.constant dense<0.000000e+00> : vector<2x16xf32>
    %358 = tpu.matmul %310, %174, %cst_121 {dimension_numbers = #tpu.dot_dimension_numbers<[1], [0], [0], [1], [0, 0, 1, 1], [], []>} : vector<2x16xf32>, vector<16x16xf32>, vector<2x16xf32> -> vector<2x16xf32>
    %359 = arith.addf %104, %358 : vector<2x16xf32>
    %cst_122 = arith.constant 5.000000e-01 : f32
    %360 = vector.broadcast %cst_122 : f32 to vector<2x16xf32>
    %361 = arith.mulf %360, %359 : vector<2x16xf32>
    %362 = math.tanh %361 : vector<2x16xf32>
    %cst_123 = arith.constant 5.000000e-01 : f32
    %363 = vector.broadcast %cst_123 : f32 to vector<2x16xf32>
    %364 = arith.mulf %363, %362 : vector<2x16xf32>
    %cst_124 = arith.constant 5.000000e-01 : f32
    %365 = vector.broadcast %cst_124 : f32 to vector<2x16xf32>
    %366 = arith.addf %364, %365 : vector<2x16xf32>
    %cst_125 = arith.constant dense<0.000000e+00> : vector<2x16xf32>
    %367 = tpu.matmul %310, %175, %cst_125 {dimension_numbers = #tpu.dot_dimension_numbers<[1], [0], [0], [1], [0, 0, 1, 1], [], []>} : vector<2x16xf32>, vector<16x16xf32>, vector<2x16xf32> -> vector<2x16xf32>
    %368 = arith.addf %107, %367 : vector<2x16xf32>
    %cst_126 = arith.constant 5.000000e-01 : f32
    %369 = vector.broadcast %cst_126 : f32 to vector<2x16xf32>
    %370 = arith.mulf %369, %368 : vector<2x16xf32>
    %371 = math.tanh %370 : vector<2x16xf32>
    %cst_127 = arith.constant 5.000000e-01 : f32
    %372 = vector.broadcast %cst_127 : f32 to vector<2x16xf32>
    %373 = arith.mulf %372, %371 : vector<2x16xf32>
    %cst_128 = arith.constant 5.000000e-01 : f32
    %374 = vector.broadcast %cst_128 : f32 to vector<2x16xf32>
    %375 = arith.addf %373, %374 : vector<2x16xf32>
    %cst_129 = arith.constant dense<0.000000e+00> : vector<2x16xf32>
    %376 = tpu.matmul %310, %176, %cst_129 {dimension_numbers = #tpu.dot_dimension_numbers<[1], [0], [0], [1], [0, 0, 1, 1], [], []>} : vector<2x16xf32>, vector<16x16xf32>, vector<2x16xf32> -> vector<2x16xf32>
    %377 = arith.addf %110, %376 : vector<2x16xf32>
    %378 = math.tanh %377 : vector<2x16xf32>
    %cst_130 = arith.constant dense<0.000000e+00> : vector<2x16xf32>
    %379 = tpu.matmul %310, %177, %cst_130 {dimension_numbers = #tpu.dot_dimension_numbers<[1], [0], [0], [1], [0, 0, 1, 1], [], []>} : vector<2x16xf32>, vector<16x16xf32>, vector<2x16xf32> -> vector<2x16xf32>
    %380 = arith.addf %113, %379 : vector<2x16xf32>
    %cst_131 = arith.constant 5.000000e-01 : f32
    %381 = vector.broadcast %cst_131 : f32 to vector<2x16xf32>
    %382 = arith.mulf %381, %380 : vector<2x16xf32>
    %383 = math.tanh %382 : vector<2x16xf32>
    %cst_132 = arith.constant 5.000000e-01 : f32
    %384 = vector.broadcast %cst_132 : f32 to vector<2x16xf32>
    %385 = arith.mulf %384, %383 : vector<2x16xf32>
    %cst_133 = arith.constant 5.000000e-01 : f32
    %386 = vector.broadcast %cst_133 : f32 to vector<2x16xf32>
    %387 = arith.addf %385, %386 : vector<2x16xf32>
    %388 = arith.mulf %375, %308 : vector<2x16xf32>
    %389 = arith.mulf %366, %378 : vector<2x16xf32>
    %390 = arith.addf %388, %389 : vector<2x16xf32>
    %391 = math.tanh %390 : vector<2x16xf32>
    %392 = arith.mulf %387, %391 : vector<2x16xf32>
    %cst_134 = arith.constant dense<0.000000e+00> : vector<2x16xf32>
    %393 = tpu.matmul %392, %182, %cst_134 {dimension_numbers = #tpu.dot_dimension_numbers<[1], [0], [0], [1], [0, 0, 1, 1], [], []>} : vector<2x16xf32>, vector<16x16xf32>, vector<2x16xf32> -> vector<2x16xf32>
    %394 = vector.broadcast %186 : vector<1x16xf32> to vector<2x16xf32>
    %395 = arith.addf %393, %394 : vector<2x16xf32>
    %cst_135 = arith.constant dense<0.000000e+00> : vector<2x16xf32>
    %396 = tpu.matmul %392, %183, %cst_135 {dimension_numbers = #tpu.dot_dimension_numbers<[1], [0], [0], [1], [0, 0, 1, 1], [], []>} : vector<2x16xf32>, vector<16x16xf32>, vector<2x16xf32> -> vector<2x16xf32>
    %397 = vector.broadcast %187 : vector<1x16xf32> to vector<2x16xf32>
    %398 = arith.addf %396, %397 : vector<2x16xf32>
    %cst_136 = arith.constant dense<0.000000e+00> : vector<2x16xf32>
    %399 = tpu.matmul %392, %184, %cst_136 {dimension_numbers = #tpu.dot_dimension_numbers<[1], [0], [0], [1], [0, 0, 1, 1], [], []>} : vector<2x16xf32>, vector<16x16xf32>, vector<2x16xf32> -> vector<2x16xf32>
    %400 = vector.broadcast %188 : vector<1x16xf32> to vector<2x16xf32>
    %401 = arith.addf %399, %400 : vector<2x16xf32>
    %cst_137 = arith.constant dense<0.000000e+00> : vector<2x16xf32>
    %402 = tpu.matmul %392, %185, %cst_137 {dimension_numbers = #tpu.dot_dimension_numbers<[1], [0], [0], [1], [0, 0, 1, 1], [], []>} : vector<2x16xf32>, vector<16x16xf32>, vector<2x16xf32> -> vector<2x16xf32>
    %403 = vector.broadcast %189 : vector<1x16xf32> to vector<2x16xf32>
    %404 = arith.addf %402, %403 : vector<2x16xf32>
    %cst_138 = arith.constant dense<0.000000e+00> : vector<2x16xf32>
    %405 = tpu.matmul %357, %178, %cst_138 {dimension_numbers = #tpu.dot_dimension_numbers<[1], [0], [0], [1], [0, 0, 1, 1], [], []>} : vector<2x16xf32>, vector<16x16xf32>, vector<2x16xf32> -> vector<2x16xf32>
    %406 = arith.addf %395, %405 : vector<2x16xf32>
    %cst_139 = arith.constant 5.000000e-01 : f32
    %407 = vector.broadcast %cst_139 : f32 to vector<2x16xf32>
    %408 = arith.mulf %407, %406 : vector<2x16xf32>
    %409 = math.tanh %408 : vector<2x16xf32>
    %cst_140 = arith.constant 5.000000e-01 : f32
    %410 = vector.broadcast %cst_140 : f32 to vector<2x16xf32>
    %411 = arith.mulf %410, %409 : vector<2x16xf32>
    %cst_141 = arith.constant 5.000000e-01 : f32
    %412 = vector.broadcast %cst_141 : f32 to vector<2x16xf32>
    %413 = arith.addf %411, %412 : vector<2x16xf32>
    %cst_142 = arith.constant dense<0.000000e+00> : vector<2x16xf32>
    %414 = tpu.matmul %357, %179, %cst_142 {dimension_numbers = #tpu.dot_dimension_numbers<[1], [0], [0], [1], [0, 0, 1, 1], [], []>} : vector<2x16xf32>, vector<16x16xf32>, vector<2x16xf32> -> vector<2x16xf32>
    %415 = arith.addf %398, %414 : vector<2x16xf32>
    %cst_143 = arith.constant 5.000000e-01 : f32
    %416 = vector.broadcast %cst_143 : f32 to vector<2x16xf32>
    %417 = arith.mulf %416, %415 : vector<2x16xf32>
    %418 = math.tanh %417 : vector<2x16xf32>
    %cst_144 = arith.constant 5.000000e-01 : f32
    %419 = vector.broadcast %cst_144 : f32 to vector<2x16xf32>
    %420 = arith.mulf %419, %418 : vector<2x16xf32>
    %cst_145 = arith.constant 5.000000e-01 : f32
    %421 = vector.broadcast %cst_145 : f32 to vector<2x16xf32>
    %422 = arith.addf %420, %421 : vector<2x16xf32>
    %cst_146 = arith.constant dense<0.000000e+00> : vector<2x16xf32>
    %423 = tpu.matmul %357, %180, %cst_146 {dimension_numbers = #tpu.dot_dimension_numbers<[1], [0], [0], [1], [0, 0, 1, 1], [], []>} : vector<2x16xf32>, vector<16x16xf32>, vector<2x16xf32> -> vector<2x16xf32>
    %424 = arith.addf %401, %423 : vector<2x16xf32>
    %425 = math.tanh %424 : vector<2x16xf32>
    %cst_147 = arith.constant dense<0.000000e+00> : vector<2x16xf32>
    %426 = tpu.matmul %357, %181, %cst_147 {dimension_numbers = #tpu.dot_dimension_numbers<[1], [0], [0], [1], [0, 0, 1, 1], [], []>} : vector<2x16xf32>, vector<16x16xf32>, vector<2x16xf32> -> vector<2x16xf32>
    %427 = arith.addf %404, %426 : vector<2x16xf32>
    %cst_148 = arith.constant 5.000000e-01 : f32
    %428 = vector.broadcast %cst_148 : f32 to vector<2x16xf32>
    %429 = arith.mulf %428, %427 : vector<2x16xf32>
    %430 = math.tanh %429 : vector<2x16xf32>
    %cst_149 = arith.constant 5.000000e-01 : f32
    %431 = vector.broadcast %cst_149 : f32 to vector<2x16xf32>
    %432 = arith.mulf %431, %430 : vector<2x16xf32>
    %cst_150 = arith.constant 5.000000e-01 : f32
    %433 = vector.broadcast %cst_150 : f32 to vector<2x16xf32>
    %434 = arith.addf %432, %433 : vector<2x16xf32>
    %435 = arith.mulf %422, %355 : vector<2x16xf32>
    %436 = arith.mulf %413, %425 : vector<2x16xf32>
    %437 = arith.addf %435, %436 : vector<2x16xf32>
    %438 = math.tanh %437 : vector<2x16xf32>
    %439 = arith.mulf %434, %438 : vector<2x16xf32>
    %cst_151 = arith.constant dense<0.000000e+00> : vector<2x16xf32>
    %440 = tpu.matmul %392, %174, %cst_151 {dimension_numbers = #tpu.dot_dimension_numbers<[1], [0], [0], [1], [0, 0, 1, 1], [], []>} : vector<2x16xf32>, vector<16x16xf32>, vector<2x16xf32> -> vector<2x16xf32>
    %441 = arith.addf %116, %440 : vector<2x16xf32>
    %cst_152 = arith.constant 5.000000e-01 : f32
    %442 = vector.broadcast %cst_152 : f32 to vector<2x16xf32>
    %443 = arith.mulf %442, %441 : vector<2x16xf32>
    %444 = math.tanh %443 : vector<2x16xf32>
    %cst_153 = arith.constant 5.000000e-01 : f32
    %445 = vector.broadcast %cst_153 : f32 to vector<2x16xf32>
    %446 = arith.mulf %445, %444 : vector<2x16xf32>
    %cst_154 = arith.constant 5.000000e-01 : f32
    %447 = vector.broadcast %cst_154 : f32 to vector<2x16xf32>
    %448 = arith.addf %446, %447 : vector<2x16xf32>
    %cst_155 = arith.constant dense<0.000000e+00> : vector<2x16xf32>
    %449 = tpu.matmul %392, %175, %cst_155 {dimension_numbers = #tpu.dot_dimension_numbers<[1], [0], [0], [1], [0, 0, 1, 1], [], []>} : vector<2x16xf32>, vector<16x16xf32>, vector<2x16xf32> -> vector<2x16xf32>
    %450 = arith.addf %119, %449 : vector<2x16xf32>
    %cst_156 = arith.constant 5.000000e-01 : f32
    %451 = vector.broadcast %cst_156 : f32 to vector<2x16xf32>
    %452 = arith.mulf %451, %450 : vector<2x16xf32>
    %453 = math.tanh %452 : vector<2x16xf32>
    %cst_157 = arith.constant 5.000000e-01 : f32
    %454 = vector.broadcast %cst_157 : f32 to vector<2x16xf32>
    %455 = arith.mulf %454, %453 : vector<2x16xf32>
    %cst_158 = arith.constant 5.000000e-01 : f32
    %456 = vector.broadcast %cst_158 : f32 to vector<2x16xf32>
    %457 = arith.addf %455, %456 : vector<2x16xf32>
    %cst_159 = arith.constant dense<0.000000e+00> : vector<2x16xf32>
    %458 = tpu.matmul %392, %176, %cst_159 {dimension_numbers = #tpu.dot_dimension_numbers<[1], [0], [0], [1], [0, 0, 1, 1], [], []>} : vector<2x16xf32>, vector<16x16xf32>, vector<2x16xf32> -> vector<2x16xf32>
    %459 = arith.addf %122, %458 : vector<2x16xf32>
    %460 = math.tanh %459 : vector<2x16xf32>
    %cst_160 = arith.constant dense<0.000000e+00> : vector<2x16xf32>
    %461 = tpu.matmul %392, %177, %cst_160 {dimension_numbers = #tpu.dot_dimension_numbers<[1], [0], [0], [1], [0, 0, 1, 1], [], []>} : vector<2x16xf32>, vector<16x16xf32>, vector<2x16xf32> -> vector<2x16xf32>
    %462 = arith.addf %125, %461 : vector<2x16xf32>
    %cst_161 = arith.constant 5.000000e-01 : f32
    %463 = vector.broadcast %cst_161 : f32 to vector<2x16xf32>
    %464 = arith.mulf %463, %462 : vector<2x16xf32>
    %465 = math.tanh %464 : vector<2x16xf32>
    %cst_162 = arith.constant 5.000000e-01 : f32
    %466 = vector.broadcast %cst_162 : f32 to vector<2x16xf32>
    %467 = arith.mulf %466, %465 : vector<2x16xf32>
    %cst_163 = arith.constant 5.000000e-01 : f32
    %468 = vector.broadcast %cst_163 : f32 to vector<2x16xf32>
    %469 = arith.addf %467, %468 : vector<2x16xf32>
    %470 = arith.mulf %457, %390 : vector<2x16xf32>
    %471 = arith.mulf %448, %460 : vector<2x16xf32>
    %472 = arith.addf %470, %471 : vector<2x16xf32>
    %473 = math.tanh %472 : vector<2x16xf32>
    %474 = arith.mulf %469, %473 : vector<2x16xf32>
    %cst_164 = arith.constant dense<0.000000e+00> : vector<2x16xf32>
    %475 = tpu.matmul %474, %182, %cst_164 {dimension_numbers = #tpu.dot_dimension_numbers<[1], [0], [0], [1], [0, 0, 1, 1], [], []>} : vector<2x16xf32>, vector<16x16xf32>, vector<2x16xf32> -> vector<2x16xf32>
    %476 = vector.broadcast %186 : vector<1x16xf32> to vector<2x16xf32>
    %477 = arith.addf %475, %476 : vector<2x16xf32>
    %cst_165 = arith.constant dense<0.000000e+00> : vector<2x16xf32>
    %478 = tpu.matmul %474, %183, %cst_165 {dimension_numbers = #tpu.dot_dimension_numbers<[1], [0], [0], [1], [0, 0, 1, 1], [], []>} : vector<2x16xf32>, vector<16x16xf32>, vector<2x16xf32> -> vector<2x16xf32>
    %479 = vector.broadcast %187 : vector<1x16xf32> to vector<2x16xf32>
    %480 = arith.addf %478, %479 : vector<2x16xf32>
    %cst_166 = arith.constant dense<0.000000e+00> : vector<2x16xf32>
    %481 = tpu.matmul %474, %184, %cst_166 {dimension_numbers = #tpu.dot_dimension_numbers<[1], [0], [0], [1], [0, 0, 1, 1], [], []>} : vector<2x16xf32>, vector<16x16xf32>, vector<2x16xf32> -> vector<2x16xf32>
    %482 = vector.broadcast %188 : vector<1x16xf32> to vector<2x16xf32>
    %483 = arith.addf %481, %482 : vector<2x16xf32>
    %cst_167 = arith.constant dense<0.000000e+00> : vector<2x16xf32>
    %484 = tpu.matmul %474, %185, %cst_167 {dimension_numbers = #tpu.dot_dimension_numbers<[1], [0], [0], [1], [0, 0, 1, 1], [], []>} : vector<2x16xf32>, vector<16x16xf32>, vector<2x16xf32> -> vector<2x16xf32>
    %485 = vector.broadcast %189 : vector<1x16xf32> to vector<2x16xf32>
    %486 = arith.addf %484, %485 : vector<2x16xf32>
    %cst_168 = arith.constant dense<0.000000e+00> : vector<2x16xf32>
    %487 = tpu.matmul %439, %178, %cst_168 {dimension_numbers = #tpu.dot_dimension_numbers<[1], [0], [0], [1], [0, 0, 1, 1], [], []>} : vector<2x16xf32>, vector<16x16xf32>, vector<2x16xf32> -> vector<2x16xf32>
    %488 = arith.addf %477, %487 : vector<2x16xf32>
    %cst_169 = arith.constant 5.000000e-01 : f32
    %489 = vector.broadcast %cst_169 : f32 to vector<2x16xf32>
    %490 = arith.mulf %489, %488 : vector<2x16xf32>
    %491 = math.tanh %490 : vector<2x16xf32>
    %cst_170 = arith.constant 5.000000e-01 : f32
    %492 = vector.broadcast %cst_170 : f32 to vector<2x16xf32>
    %493 = arith.mulf %492, %491 : vector<2x16xf32>
    %cst_171 = arith.constant 5.000000e-01 : f32
    %494 = vector.broadcast %cst_171 : f32 to vector<2x16xf32>
    %495 = arith.addf %493, %494 : vector<2x16xf32>
    %cst_172 = arith.constant dense<0.000000e+00> : vector<2x16xf32>
    %496 = tpu.matmul %439, %179, %cst_172 {dimension_numbers = #tpu.dot_dimension_numbers<[1], [0], [0], [1], [0, 0, 1, 1], [], []>} : vector<2x16xf32>, vector<16x16xf32>, vector<2x16xf32> -> vector<2x16xf32>
    %497 = arith.addf %480, %496 : vector<2x16xf32>
    %cst_173 = arith.constant 5.000000e-01 : f32
    %498 = vector.broadcast %cst_173 : f32 to vector<2x16xf32>
    %499 = arith.mulf %498, %497 : vector<2x16xf32>
    %500 = math.tanh %499 : vector<2x16xf32>
    %cst_174 = arith.constant 5.000000e-01 : f32
    %501 = vector.broadcast %cst_174 : f32 to vector<2x16xf32>
    %502 = arith.mulf %501, %500 : vector<2x16xf32>
    %cst_175 = arith.constant 5.000000e-01 : f32
    %503 = vector.broadcast %cst_175 : f32 to vector<2x16xf32>
    %504 = arith.addf %502, %503 : vector<2x16xf32>
    %cst_176 = arith.constant dense<0.000000e+00> : vector<2x16xf32>
    %505 = tpu.matmul %439, %180, %cst_176 {dimension_numbers = #tpu.dot_dimension_numbers<[1], [0], [0], [1], [0, 0, 1, 1], [], []>} : vector<2x16xf32>, vector<16x16xf32>, vector<2x16xf32> -> vector<2x16xf32>
    %506 = arith.addf %483, %505 : vector<2x16xf32>
    %507 = math.tanh %506 : vector<2x16xf32>
    %cst_177 = arith.constant dense<0.000000e+00> : vector<2x16xf32>
    %508 = tpu.matmul %439, %181, %cst_177 {dimension_numbers = #tpu.dot_dimension_numbers<[1], [0], [0], [1], [0, 0, 1, 1], [], []>} : vector<2x16xf32>, vector<16x16xf32>, vector<2x16xf32> -> vector<2x16xf32>
    %509 = arith.addf %486, %508 : vector<2x16xf32>
    %cst_178 = arith.constant 5.000000e-01 : f32
    %510 = vector.broadcast %cst_178 : f32 to vector<2x16xf32>
    %511 = arith.mulf %510, %509 : vector<2x16xf32>
    %512 = math.tanh %511 : vector<2x16xf32>
    %cst_179 = arith.constant 5.000000e-01 : f32
    %513 = vector.broadcast %cst_179 : f32 to vector<2x16xf32>
    %514 = arith.mulf %513, %512 : vector<2x16xf32>
    %cst_180 = arith.constant 5.000000e-01 : f32
    %515 = vector.broadcast %cst_180 : f32 to vector<2x16xf32>
    %516 = arith.addf %514, %515 : vector<2x16xf32>
    %517 = arith.mulf %504, %437 : vector<2x16xf32>
    %518 = arith.mulf %495, %507 : vector<2x16xf32>
    %519 = arith.addf %517, %518 : vector<2x16xf32>
    %520 = math.tanh %519 : vector<2x16xf32>
    %521 = arith.mulf %516, %520 : vector<2x16xf32>
    %cst_181 = arith.constant dense<0.000000e+00> : vector<2x16xf32>
    %522 = tpu.matmul %474, %174, %cst_181 {dimension_numbers = #tpu.dot_dimension_numbers<[1], [0], [0], [1], [0, 0, 1, 1], [], []>} : vector<2x16xf32>, vector<16x16xf32>, vector<2x16xf32> -> vector<2x16xf32>
    %523 = arith.addf %128, %522 : vector<2x16xf32>
    %cst_182 = arith.constant 5.000000e-01 : f32
    %524 = vector.broadcast %cst_182 : f32 to vector<2x16xf32>
    %525 = arith.mulf %524, %523 : vector<2x16xf32>
    %526 = math.tanh %525 : vector<2x16xf32>
    %cst_183 = arith.constant 5.000000e-01 : f32
    %527 = vector.broadcast %cst_183 : f32 to vector<2x16xf32>
    %528 = arith.mulf %527, %526 : vector<2x16xf32>
    %cst_184 = arith.constant 5.000000e-01 : f32
    %529 = vector.broadcast %cst_184 : f32 to vector<2x16xf32>
    %530 = arith.addf %528, %529 : vector<2x16xf32>
    %cst_185 = arith.constant dense<0.000000e+00> : vector<2x16xf32>
    %531 = tpu.matmul %474, %175, %cst_185 {dimension_numbers = #tpu.dot_dimension_numbers<[1], [0], [0], [1], [0, 0, 1, 1], [], []>} : vector<2x16xf32>, vector<16x16xf32>, vector<2x16xf32> -> vector<2x16xf32>
    %532 = arith.addf %131, %531 : vector<2x16xf32>
    %cst_186 = arith.constant 5.000000e-01 : f32
    %533 = vector.broadcast %cst_186 : f32 to vector<2x16xf32>
    %534 = arith.mulf %533, %532 : vector<2x16xf32>
    %535 = math.tanh %534 : vector<2x16xf32>
    %cst_187 = arith.constant 5.000000e-01 : f32
    %536 = vector.broadcast %cst_187 : f32 to vector<2x16xf32>
    %537 = arith.mulf %536, %535 : vector<2x16xf32>
    %cst_188 = arith.constant 5.000000e-01 : f32
    %538 = vector.broadcast %cst_188 : f32 to vector<2x16xf32>
    %539 = arith.addf %537, %538 : vector<2x16xf32>
    %cst_189 = arith.constant dense<0.000000e+00> : vector<2x16xf32>
    %540 = tpu.matmul %474, %176, %cst_189 {dimension_numbers = #tpu.dot_dimension_numbers<[1], [0], [0], [1], [0, 0, 1, 1], [], []>} : vector<2x16xf32>, vector<16x16xf32>, vector<2x16xf32> -> vector<2x16xf32>
    %541 = arith.addf %134, %540 : vector<2x16xf32>
    %542 = math.tanh %541 : vector<2x16xf32>
    %cst_190 = arith.constant dense<0.000000e+00> : vector<2x16xf32>
    %543 = tpu.matmul %474, %177, %cst_190 {dimension_numbers = #tpu.dot_dimension_numbers<[1], [0], [0], [1], [0, 0, 1, 1], [], []>} : vector<2x16xf32>, vector<16x16xf32>, vector<2x16xf32> -> vector<2x16xf32>
    %544 = arith.addf %137, %543 : vector<2x16xf32>
    %cst_191 = arith.constant 5.000000e-01 : f32
    %545 = vector.broadcast %cst_191 : f32 to vector<2x16xf32>
    %546 = arith.mulf %545, %544 : vector<2x16xf32>
    %547 = math.tanh %546 : vector<2x16xf32>
    %cst_192 = arith.constant 5.000000e-01 : f32
    %548 = vector.broadcast %cst_192 : f32 to vector<2x16xf32>
    %549 = arith.mulf %548, %547 : vector<2x16xf32>
    %cst_193 = arith.constant 5.000000e-01 : f32
    %550 = vector.broadcast %cst_193 : f32 to vector<2x16xf32>
    %551 = arith.addf %549, %550 : vector<2x16xf32>
    %552 = arith.mulf %539, %472 : vector<2x16xf32>
    %553 = arith.mulf %530, %542 : vector<2x16xf32>
    %554 = arith.addf %552, %553 : vector<2x16xf32>
    %555 = math.tanh %554 : vector<2x16xf32>
    %556 = arith.mulf %551, %555 : vector<2x16xf32>
    %cst_194 = arith.constant dense<0.000000e+00> : vector<2x16xf32>
    %557 = tpu.matmul %556, %182, %cst_194 {dimension_numbers = #tpu.dot_dimension_numbers<[1], [0], [0], [1], [0, 0, 1, 1], [], []>} : vector<2x16xf32>, vector<16x16xf32>, vector<2x16xf32> -> vector<2x16xf32>
    %558 = vector.broadcast %186 : vector<1x16xf32> to vector<2x16xf32>
    %559 = arith.addf %557, %558 : vector<2x16xf32>
    %cst_195 = arith.constant dense<0.000000e+00> : vector<2x16xf32>
    %560 = tpu.matmul %556, %183, %cst_195 {dimension_numbers = #tpu.dot_dimension_numbers<[1], [0], [0], [1], [0, 0, 1, 1], [], []>} : vector<2x16xf32>, vector<16x16xf32>, vector<2x16xf32> -> vector<2x16xf32>
    %561 = vector.broadcast %187 : vector<1x16xf32> to vector<2x16xf32>
    %562 = arith.addf %560, %561 : vector<2x16xf32>
    %cst_196 = arith.constant dense<0.000000e+00> : vector<2x16xf32>
    %563 = tpu.matmul %556, %184, %cst_196 {dimension_numbers = #tpu.dot_dimension_numbers<[1], [0], [0], [1], [0, 0, 1, 1], [], []>} : vector<2x16xf32>, vector<16x16xf32>, vector<2x16xf32> -> vector<2x16xf32>
    %564 = vector.broadcast %188 : vector<1x16xf32> to vector<2x16xf32>
    %565 = arith.addf %563, %564 : vector<2x16xf32>
    %cst_197 = arith.constant dense<0.000000e+00> : vector<2x16xf32>
    %566 = tpu.matmul %556, %185, %cst_197 {dimension_numbers = #tpu.dot_dimension_numbers<[1], [0], [0], [1], [0, 0, 1, 1], [], []>} : vector<2x16xf32>, vector<16x16xf32>, vector<2x16xf32> -> vector<2x16xf32>
    %567 = vector.broadcast %189 : vector<1x16xf32> to vector<2x16xf32>
    %568 = arith.addf %566, %567 : vector<2x16xf32>
    %cst_198 = arith.constant dense<0.000000e+00> : vector<2x16xf32>
    %569 = tpu.matmul %521, %178, %cst_198 {dimension_numbers = #tpu.dot_dimension_numbers<[1], [0], [0], [1], [0, 0, 1, 1], [], []>} : vector<2x16xf32>, vector<16x16xf32>, vector<2x16xf32> -> vector<2x16xf32>
    %570 = arith.addf %559, %569 : vector<2x16xf32>
    %cst_199 = arith.constant 5.000000e-01 : f32
    %571 = vector.broadcast %cst_199 : f32 to vector<2x16xf32>
    %572 = arith.mulf %571, %570 : vector<2x16xf32>
    %573 = math.tanh %572 : vector<2x16xf32>
    %cst_200 = arith.constant 5.000000e-01 : f32
    %574 = vector.broadcast %cst_200 : f32 to vector<2x16xf32>
    %575 = arith.mulf %574, %573 : vector<2x16xf32>
    %cst_201 = arith.constant 5.000000e-01 : f32
    %576 = vector.broadcast %cst_201 : f32 to vector<2x16xf32>
    %577 = arith.addf %575, %576 : vector<2x16xf32>
    %cst_202 = arith.constant dense<0.000000e+00> : vector<2x16xf32>
    %578 = tpu.matmul %521, %179, %cst_202 {dimension_numbers = #tpu.dot_dimension_numbers<[1], [0], [0], [1], [0, 0, 1, 1], [], []>} : vector<2x16xf32>, vector<16x16xf32>, vector<2x16xf32> -> vector<2x16xf32>
    %579 = arith.addf %562, %578 : vector<2x16xf32>
    %cst_203 = arith.constant 5.000000e-01 : f32
    %580 = vector.broadcast %cst_203 : f32 to vector<2x16xf32>
    %581 = arith.mulf %580, %579 : vector<2x16xf32>
    %582 = math.tanh %581 : vector<2x16xf32>
    %cst_204 = arith.constant 5.000000e-01 : f32
    %583 = vector.broadcast %cst_204 : f32 to vector<2x16xf32>
    %584 = arith.mulf %583, %582 : vector<2x16xf32>
    %cst_205 = arith.constant 5.000000e-01 : f32
    %585 = vector.broadcast %cst_205 : f32 to vector<2x16xf32>
    %586 = arith.addf %584, %585 : vector<2x16xf32>
    %cst_206 = arith.constant dense<0.000000e+00> : vector<2x16xf32>
    %587 = tpu.matmul %521, %180, %cst_206 {dimension_numbers = #tpu.dot_dimension_numbers<[1], [0], [0], [1], [0, 0, 1, 1], [], []>} : vector<2x16xf32>, vector<16x16xf32>, vector<2x16xf32> -> vector<2x16xf32>
    %588 = arith.addf %565, %587 : vector<2x16xf32>
    %589 = math.tanh %588 : vector<2x16xf32>
    %cst_207 = arith.constant dense<0.000000e+00> : vector<2x16xf32>
    %590 = tpu.matmul %521, %181, %cst_207 {dimension_numbers = #tpu.dot_dimension_numbers<[1], [0], [0], [1], [0, 0, 1, 1], [], []>} : vector<2x16xf32>, vector<16x16xf32>, vector<2x16xf32> -> vector<2x16xf32>
    %591 = arith.addf %568, %590 : vector<2x16xf32>
    %cst_208 = arith.constant 5.000000e-01 : f32
    %592 = vector.broadcast %cst_208 : f32 to vector<2x16xf32>
    %593 = arith.mulf %592, %591 : vector<2x16xf32>
    %594 = math.tanh %593 : vector<2x16xf32>
    %cst_209 = arith.constant 5.000000e-01 : f32
    %595 = vector.broadcast %cst_209 : f32 to vector<2x16xf32>
    %596 = arith.mulf %595, %594 : vector<2x16xf32>
    %cst_210 = arith.constant 5.000000e-01 : f32
    %597 = vector.broadcast %cst_210 : f32 to vector<2x16xf32>
    %598 = arith.addf %596, %597 : vector<2x16xf32>
    %599 = arith.mulf %586, %519 : vector<2x16xf32>
    %600 = arith.mulf %577, %589 : vector<2x16xf32>
    %601 = arith.addf %599, %600 : vector<2x16xf32>
    %602 = math.tanh %601 : vector<2x16xf32>
    %603 = arith.mulf %598, %602 : vector<2x16xf32>
    %cst_211 = arith.constant dense<0.000000e+00> : vector<2x16xf32>
    %604 = tpu.matmul %556, %174, %cst_211 {dimension_numbers = #tpu.dot_dimension_numbers<[1], [0], [0], [1], [0, 0, 1, 1], [], []>} : vector<2x16xf32>, vector<16x16xf32>, vector<2x16xf32> -> vector<2x16xf32>
    %605 = arith.addf %140, %604 : vector<2x16xf32>
    %cst_212 = arith.constant 5.000000e-01 : f32
    %606 = vector.broadcast %cst_212 : f32 to vector<2x16xf32>
    %607 = arith.mulf %606, %605 : vector<2x16xf32>
    %608 = math.tanh %607 : vector<2x16xf32>
    %cst_213 = arith.constant 5.000000e-01 : f32
    %609 = vector.broadcast %cst_213 : f32 to vector<2x16xf32>
    %610 = arith.mulf %609, %608 : vector<2x16xf32>
    %cst_214 = arith.constant 5.000000e-01 : f32
    %611 = vector.broadcast %cst_214 : f32 to vector<2x16xf32>
    %612 = arith.addf %610, %611 : vector<2x16xf32>
    %cst_215 = arith.constant dense<0.000000e+00> : vector<2x16xf32>
    %613 = tpu.matmul %556, %175, %cst_215 {dimension_numbers = #tpu.dot_dimension_numbers<[1], [0], [0], [1], [0, 0, 1, 1], [], []>} : vector<2x16xf32>, vector<16x16xf32>, vector<2x16xf32> -> vector<2x16xf32>
    %614 = arith.addf %143, %613 : vector<2x16xf32>
    %cst_216 = arith.constant 5.000000e-01 : f32
    %615 = vector.broadcast %cst_216 : f32 to vector<2x16xf32>
    %616 = arith.mulf %615, %614 : vector<2x16xf32>
    %617 = math.tanh %616 : vector<2x16xf32>
    %cst_217 = arith.constant 5.000000e-01 : f32
    %618 = vector.broadcast %cst_217 : f32 to vector<2x16xf32>
    %619 = arith.mulf %618, %617 : vector<2x16xf32>
    %cst_218 = arith.constant 5.000000e-01 : f32
    %620 = vector.broadcast %cst_218 : f32 to vector<2x16xf32>
    %621 = arith.addf %619, %620 : vector<2x16xf32>
    %cst_219 = arith.constant dense<0.000000e+00> : vector<2x16xf32>
    %622 = tpu.matmul %556, %176, %cst_219 {dimension_numbers = #tpu.dot_dimension_numbers<[1], [0], [0], [1], [0, 0, 1, 1], [], []>} : vector<2x16xf32>, vector<16x16xf32>, vector<2x16xf32> -> vector<2x16xf32>
    %623 = arith.addf %146, %622 : vector<2x16xf32>
    %624 = math.tanh %623 : vector<2x16xf32>
    %cst_220 = arith.constant dense<0.000000e+00> : vector<2x16xf32>
    %625 = tpu.matmul %556, %177, %cst_220 {dimension_numbers = #tpu.dot_dimension_numbers<[1], [0], [0], [1], [0, 0, 1, 1], [], []>} : vector<2x16xf32>, vector<16x16xf32>, vector<2x16xf32> -> vector<2x16xf32>
    %626 = arith.addf %149, %625 : vector<2x16xf32>
    %cst_221 = arith.constant 5.000000e-01 : f32
    %627 = vector.broadcast %cst_221 : f32 to vector<2x16xf32>
    %628 = arith.mulf %627, %626 : vector<2x16xf32>
    %629 = math.tanh %628 : vector<2x16xf32>
    %cst_222 = arith.constant 5.000000e-01 : f32
    %630 = vector.broadcast %cst_222 : f32 to vector<2x16xf32>
    %631 = arith.mulf %630, %629 : vector<2x16xf32>
    %cst_223 = arith.constant 5.000000e-01 : f32
    %632 = vector.broadcast %cst_223 : f32 to vector<2x16xf32>
    %633 = arith.addf %631, %632 : vector<2x16xf32>
    %634 = arith.mulf %621, %554 : vector<2x16xf32>
    %635 = arith.mulf %612, %624 : vector<2x16xf32>
    %636 = arith.addf %634, %635 : vector<2x16xf32>
    %637 = math.tanh %636 : vector<2x16xf32>
    %638 = arith.mulf %633, %637 : vector<2x16xf32>
    %cst_224 = arith.constant dense<0.000000e+00> : vector<2x16xf32>
    %639 = tpu.matmul %638, %182, %cst_224 {dimension_numbers = #tpu.dot_dimension_numbers<[1], [0], [0], [1], [0, 0, 1, 1], [], []>} : vector<2x16xf32>, vector<16x16xf32>, vector<2x16xf32> -> vector<2x16xf32>
    %640 = vector.broadcast %186 : vector<1x16xf32> to vector<2x16xf32>
    %641 = arith.addf %639, %640 : vector<2x16xf32>
    %cst_225 = arith.constant dense<0.000000e+00> : vector<2x16xf32>
    %642 = tpu.matmul %638, %183, %cst_225 {dimension_numbers = #tpu.dot_dimension_numbers<[1], [0], [0], [1], [0, 0, 1, 1], [], []>} : vector<2x16xf32>, vector<16x16xf32>, vector<2x16xf32> -> vector<2x16xf32>
    %643 = vector.broadcast %187 : vector<1x16xf32> to vector<2x16xf32>
    %644 = arith.addf %642, %643 : vector<2x16xf32>
    %cst_226 = arith.constant dense<0.000000e+00> : vector<2x16xf32>
    %645 = tpu.matmul %638, %184, %cst_226 {dimension_numbers = #tpu.dot_dimension_numbers<[1], [0], [0], [1], [0, 0, 1, 1], [], []>} : vector<2x16xf32>, vector<16x16xf32>, vector<2x16xf32> -> vector<2x16xf32>
    %646 = vector.broadcast %188 : vector<1x16xf32> to vector<2x16xf32>
    %647 = arith.addf %645, %646 : vector<2x16xf32>
    %cst_227 = arith.constant dense<0.000000e+00> : vector<2x16xf32>
    %648 = tpu.matmul %638, %185, %cst_227 {dimension_numbers = #tpu.dot_dimension_numbers<[1], [0], [0], [1], [0, 0, 1, 1], [], []>} : vector<2x16xf32>, vector<16x16xf32>, vector<2x16xf32> -> vector<2x16xf32>
    %649 = vector.broadcast %189 : vector<1x16xf32> to vector<2x16xf32>
    %650 = arith.addf %648, %649 : vector<2x16xf32>
    %cst_228 = arith.constant dense<0.000000e+00> : vector<2x16xf32>
    %651 = tpu.matmul %603, %178, %cst_228 {dimension_numbers = #tpu.dot_dimension_numbers<[1], [0], [0], [1], [0, 0, 1, 1], [], []>} : vector<2x16xf32>, vector<16x16xf32>, vector<2x16xf32> -> vector<2x16xf32>
    %652 = arith.addf %641, %651 : vector<2x16xf32>
    %cst_229 = arith.constant 5.000000e-01 : f32
    %653 = vector.broadcast %cst_229 : f32 to vector<2x16xf32>
    %654 = arith.mulf %653, %652 : vector<2x16xf32>
    %655 = math.tanh %654 : vector<2x16xf32>
    %cst_230 = arith.constant 5.000000e-01 : f32
    %656 = vector.broadcast %cst_230 : f32 to vector<2x16xf32>
    %657 = arith.mulf %656, %655 : vector<2x16xf32>
    %cst_231 = arith.constant 5.000000e-01 : f32
    %658 = vector.broadcast %cst_231 : f32 to vector<2x16xf32>
    %659 = arith.addf %657, %658 : vector<2x16xf32>
    %cst_232 = arith.constant dense<0.000000e+00> : vector<2x16xf32>
    %660 = tpu.matmul %603, %179, %cst_232 {dimension_numbers = #tpu.dot_dimension_numbers<[1], [0], [0], [1], [0, 0, 1, 1], [], []>} : vector<2x16xf32>, vector<16x16xf32>, vector<2x16xf32> -> vector<2x16xf32>
    %661 = arith.addf %644, %660 : vector<2x16xf32>
    %cst_233 = arith.constant 5.000000e-01 : f32
    %662 = vector.broadcast %cst_233 : f32 to vector<2x16xf32>
    %663 = arith.mulf %662, %661 : vector<2x16xf32>
    %664 = math.tanh %663 : vector<2x16xf32>
    %cst_234 = arith.constant 5.000000e-01 : f32
    %665 = vector.broadcast %cst_234 : f32 to vector<2x16xf32>
    %666 = arith.mulf %665, %664 : vector<2x16xf32>
    %cst_235 = arith.constant 5.000000e-01 : f32
    %667 = vector.broadcast %cst_235 : f32 to vector<2x16xf32>
    %668 = arith.addf %666, %667 : vector<2x16xf32>
    %cst_236 = arith.constant dense<0.000000e+00> : vector<2x16xf32>
    %669 = tpu.matmul %603, %180, %cst_236 {dimension_numbers = #tpu.dot_dimension_numbers<[1], [0], [0], [1], [0, 0, 1, 1], [], []>} : vector<2x16xf32>, vector<16x16xf32>, vector<2x16xf32> -> vector<2x16xf32>
    %670 = arith.addf %647, %669 : vector<2x16xf32>
    %671 = math.tanh %670 : vector<2x16xf32>
    %cst_237 = arith.constant dense<0.000000e+00> : vector<2x16xf32>
    %672 = tpu.matmul %603, %181, %cst_237 {dimension_numbers = #tpu.dot_dimension_numbers<[1], [0], [0], [1], [0, 0, 1, 1], [], []>} : vector<2x16xf32>, vector<16x16xf32>, vector<2x16xf32> -> vector<2x16xf32>
    %673 = arith.addf %650, %672 : vector<2x16xf32>
    %cst_238 = arith.constant 5.000000e-01 : f32
    %674 = vector.broadcast %cst_238 : f32 to vector<2x16xf32>
    %675 = arith.mulf %674, %673 : vector<2x16xf32>
    %676 = math.tanh %675 : vector<2x16xf32>
    %cst_239 = arith.constant 5.000000e-01 : f32
    %677 = vector.broadcast %cst_239 : f32 to vector<2x16xf32>
    %678 = arith.mulf %677, %676 : vector<2x16xf32>
    %cst_240 = arith.constant 5.000000e-01 : f32
    %679 = vector.broadcast %cst_240 : f32 to vector<2x16xf32>
    %680 = arith.addf %678, %679 : vector<2x16xf32>
    %681 = arith.mulf %668, %601 : vector<2x16xf32>
    %682 = arith.mulf %659, %671 : vector<2x16xf32>
    %683 = arith.addf %681, %682 : vector<2x16xf32>
    %684 = math.tanh %683 : vector<2x16xf32>
    %685 = arith.mulf %680, %684 : vector<2x16xf32>
    %cst_241 = arith.constant dense<0.000000e+00> : vector<2x16xf32>
    %686 = tpu.matmul %638, %174, %cst_241 {dimension_numbers = #tpu.dot_dimension_numbers<[1], [0], [0], [1], [0, 0, 1, 1], [], []>} : vector<2x16xf32>, vector<16x16xf32>, vector<2x16xf32> -> vector<2x16xf32>
    %687 = arith.addf %152, %686 : vector<2x16xf32>
    %cst_242 = arith.constant 5.000000e-01 : f32
    %688 = vector.broadcast %cst_242 : f32 to vector<2x16xf32>
    %689 = arith.mulf %688, %687 : vector<2x16xf32>
    %690 = math.tanh %689 : vector<2x16xf32>
    %cst_243 = arith.constant 5.000000e-01 : f32
    %691 = vector.broadcast %cst_243 : f32 to vector<2x16xf32>
    %692 = arith.mulf %691, %690 : vector<2x16xf32>
    %cst_244 = arith.constant 5.000000e-01 : f32
    %693 = vector.broadcast %cst_244 : f32 to vector<2x16xf32>
    %694 = arith.addf %692, %693 : vector<2x16xf32>
    %cst_245 = arith.constant dense<0.000000e+00> : vector<2x16xf32>
    %695 = tpu.matmul %638, %175, %cst_245 {dimension_numbers = #tpu.dot_dimension_numbers<[1], [0], [0], [1], [0, 0, 1, 1], [], []>} : vector<2x16xf32>, vector<16x16xf32>, vector<2x16xf32> -> vector<2x16xf32>
    %696 = arith.addf %155, %695 : vector<2x16xf32>
    %cst_246 = arith.constant 5.000000e-01 : f32
    %697 = vector.broadcast %cst_246 : f32 to vector<2x16xf32>
    %698 = arith.mulf %697, %696 : vector<2x16xf32>
    %699 = math.tanh %698 : vector<2x16xf32>
    %cst_247 = arith.constant 5.000000e-01 : f32
    %700 = vector.broadcast %cst_247 : f32 to vector<2x16xf32>
    %701 = arith.mulf %700, %699 : vector<2x16xf32>
    %cst_248 = arith.constant 5.000000e-01 : f32
    %702 = vector.broadcast %cst_248 : f32 to vector<2x16xf32>
    %703 = arith.addf %701, %702 : vector<2x16xf32>
    %cst_249 = arith.constant dense<0.000000e+00> : vector<2x16xf32>
    %704 = tpu.matmul %638, %176, %cst_249 {dimension_numbers = #tpu.dot_dimension_numbers<[1], [0], [0], [1], [0, 0, 1, 1], [], []>} : vector<2x16xf32>, vector<16x16xf32>, vector<2x16xf32> -> vector<2x16xf32>
    %705 = arith.addf %158, %704 : vector<2x16xf32>
    %706 = math.tanh %705 : vector<2x16xf32>
    %cst_250 = arith.constant dense<0.000000e+00> : vector<2x16xf32>
    %707 = tpu.matmul %638, %177, %cst_250 {dimension_numbers = #tpu.dot_dimension_numbers<[1], [0], [0], [1], [0, 0, 1, 1], [], []>} : vector<2x16xf32>, vector<16x16xf32>, vector<2x16xf32> -> vector<2x16xf32>
    %708 = arith.addf %161, %707 : vector<2x16xf32>
    %cst_251 = arith.constant 5.000000e-01 : f32
    %709 = vector.broadcast %cst_251 : f32 to vector<2x16xf32>
    %710 = arith.mulf %709, %708 : vector<2x16xf32>
    %711 = math.tanh %710 : vector<2x16xf32>
    %cst_252 = arith.constant 5.000000e-01 : f32
    %712 = vector.broadcast %cst_252 : f32 to vector<2x16xf32>
    %713 = arith.mulf %712, %711 : vector<2x16xf32>
    %cst_253 = arith.constant 5.000000e-01 : f32
    %714 = vector.broadcast %cst_253 : f32 to vector<2x16xf32>
    %715 = arith.addf %713, %714 : vector<2x16xf32>
    %716 = arith.mulf %703, %636 : vector<2x16xf32>
    %717 = arith.mulf %694, %706 : vector<2x16xf32>
    %718 = arith.addf %716, %717 : vector<2x16xf32>
    %719 = math.tanh %718 : vector<2x16xf32>
    %720 = arith.mulf %715, %719 : vector<2x16xf32>
    %cst_254 = arith.constant dense<0.000000e+00> : vector<2x16xf32>
    %721 = tpu.matmul %720, %182, %cst_254 {dimension_numbers = #tpu.dot_dimension_numbers<[1], [0], [0], [1], [0, 0, 1, 1], [], []>} : vector<2x16xf32>, vector<16x16xf32>, vector<2x16xf32> -> vector<2x16xf32>
    %722 = vector.broadcast %186 : vector<1x16xf32> to vector<2x16xf32>
    %723 = arith.addf %721, %722 : vector<2x16xf32>
    %cst_255 = arith.constant dense<0.000000e+00> : vector<2x16xf32>
    %724 = tpu.matmul %720, %183, %cst_255 {dimension_numbers = #tpu.dot_dimension_numbers<[1], [0], [0], [1], [0, 0, 1, 1], [], []>} : vector<2x16xf32>, vector<16x16xf32>, vector<2x16xf32> -> vector<2x16xf32>
    %725 = vector.broadcast %187 : vector<1x16xf32> to vector<2x16xf32>
    %726 = arith.addf %724, %725 : vector<2x16xf32>
    %cst_256 = arith.constant dense<0.000000e+00> : vector<2x16xf32>
    %727 = tpu.matmul %720, %184, %cst_256 {dimension_numbers = #tpu.dot_dimension_numbers<[1], [0], [0], [1], [0, 0, 1, 1], [], []>} : vector<2x16xf32>, vector<16x16xf32>, vector<2x16xf32> -> vector<2x16xf32>
    %728 = vector.broadcast %188 : vector<1x16xf32> to vector<2x16xf32>
    %729 = arith.addf %727, %728 : vector<2x16xf32>
    %cst_257 = arith.constant dense<0.000000e+00> : vector<2x16xf32>
    %730 = tpu.matmul %720, %185, %cst_257 {dimension_numbers = #tpu.dot_dimension_numbers<[1], [0], [0], [1], [0, 0, 1, 1], [], []>} : vector<2x16xf32>, vector<16x16xf32>, vector<2x16xf32> -> vector<2x16xf32>
    %731 = vector.broadcast %189 : vector<1x16xf32> to vector<2x16xf32>
    %732 = arith.addf %730, %731 : vector<2x16xf32>
    %cst_258 = arith.constant dense<0.000000e+00> : vector<2x16xf32>
    %733 = tpu.matmul %685, %178, %cst_258 {dimension_numbers = #tpu.dot_dimension_numbers<[1], [0], [0], [1], [0, 0, 1, 1], [], []>} : vector<2x16xf32>, vector<16x16xf32>, vector<2x16xf32> -> vector<2x16xf32>
    %734 = arith.addf %723, %733 : vector<2x16xf32>
    %cst_259 = arith.constant 5.000000e-01 : f32
    %735 = vector.broadcast %cst_259 : f32 to vector<2x16xf32>
    %736 = arith.mulf %735, %734 : vector<2x16xf32>
    %737 = math.tanh %736 : vector<2x16xf32>
    %cst_260 = arith.constant 5.000000e-01 : f32
    %738 = vector.broadcast %cst_260 : f32 to vector<2x16xf32>
    %739 = arith.mulf %738, %737 : vector<2x16xf32>
    %cst_261 = arith.constant 5.000000e-01 : f32
    %740 = vector.broadcast %cst_261 : f32 to vector<2x16xf32>
    %741 = arith.addf %739, %740 : vector<2x16xf32>
    %cst_262 = arith.constant dense<0.000000e+00> : vector<2x16xf32>
    %742 = tpu.matmul %685, %179, %cst_262 {dimension_numbers = #tpu.dot_dimension_numbers<[1], [0], [0], [1], [0, 0, 1, 1], [], []>} : vector<2x16xf32>, vector<16x16xf32>, vector<2x16xf32> -> vector<2x16xf32>
    %743 = arith.addf %726, %742 : vector<2x16xf32>
    %cst_263 = arith.constant 5.000000e-01 : f32
    %744 = vector.broadcast %cst_263 : f32 to vector<2x16xf32>
    %745 = arith.mulf %744, %743 : vector<2x16xf32>
    %746 = math.tanh %745 : vector<2x16xf32>
    %cst_264 = arith.constant 5.000000e-01 : f32
    %747 = vector.broadcast %cst_264 : f32 to vector<2x16xf32>
    %748 = arith.mulf %747, %746 : vector<2x16xf32>
    %cst_265 = arith.constant 5.000000e-01 : f32
    %749 = vector.broadcast %cst_265 : f32 to vector<2x16xf32>
    %750 = arith.addf %748, %749 : vector<2x16xf32>
    %cst_266 = arith.constant dense<0.000000e+00> : vector<2x16xf32>
    %751 = tpu.matmul %685, %180, %cst_266 {dimension_numbers = #tpu.dot_dimension_numbers<[1], [0], [0], [1], [0, 0, 1, 1], [], []>} : vector<2x16xf32>, vector<16x16xf32>, vector<2x16xf32> -> vector<2x16xf32>
    %752 = arith.addf %729, %751 : vector<2x16xf32>
    %753 = math.tanh %752 : vector<2x16xf32>
    %cst_267 = arith.constant dense<0.000000e+00> : vector<2x16xf32>
    %754 = tpu.matmul %685, %181, %cst_267 {dimension_numbers = #tpu.dot_dimension_numbers<[1], [0], [0], [1], [0, 0, 1, 1], [], []>} : vector<2x16xf32>, vector<16x16xf32>, vector<2x16xf32> -> vector<2x16xf32>
    %755 = arith.addf %732, %754 : vector<2x16xf32>
    %cst_268 = arith.constant 5.000000e-01 : f32
    %756 = vector.broadcast %cst_268 : f32 to vector<2x16xf32>
    %757 = arith.mulf %756, %755 : vector<2x16xf32>
    %758 = math.tanh %757 : vector<2x16xf32>
    %cst_269 = arith.constant 5.000000e-01 : f32
    %759 = vector.broadcast %cst_269 : f32 to vector<2x16xf32>
    %760 = arith.mulf %759, %758 : vector<2x16xf32>
    %cst_270 = arith.constant 5.000000e-01 : f32
    %761 = vector.broadcast %cst_270 : f32 to vector<2x16xf32>
    %762 = arith.addf %760, %761 : vector<2x16xf32>
    %763 = arith.mulf %750, %683 : vector<2x16xf32>
    %764 = arith.mulf %741, %753 : vector<2x16xf32>
    %765 = arith.addf %763, %764 : vector<2x16xf32>
    %766 = math.tanh %765 : vector<2x16xf32>
    %767 = arith.mulf %762, %766 : vector<2x16xf32>
    %cst_271 = arith.constant dense<0.000000e+00> : vector<2x16xf32>
    %768 = tpu.matmul %720, %174, %cst_271 {dimension_numbers = #tpu.dot_dimension_numbers<[1], [0], [0], [1], [0, 0, 1, 1], [], []>} : vector<2x16xf32>, vector<16x16xf32>, vector<2x16xf32> -> vector<2x16xf32>
    %769 = arith.addf %164, %768 : vector<2x16xf32>
    %cst_272 = arith.constant 5.000000e-01 : f32
    %770 = vector.broadcast %cst_272 : f32 to vector<2x16xf32>
    %771 = arith.mulf %770, %769 : vector<2x16xf32>
    %772 = math.tanh %771 : vector<2x16xf32>
    %cst_273 = arith.constant 5.000000e-01 : f32
    %773 = vector.broadcast %cst_273 : f32 to vector<2x16xf32>
    %774 = arith.mulf %773, %772 : vector<2x16xf32>
    %cst_274 = arith.constant 5.000000e-01 : f32
    %775 = vector.broadcast %cst_274 : f32 to vector<2x16xf32>
    %776 = arith.addf %774, %775 : vector<2x16xf32>
    %cst_275 = arith.constant dense<0.000000e+00> : vector<2x16xf32>
    %777 = tpu.matmul %720, %175, %cst_275 {dimension_numbers = #tpu.dot_dimension_numbers<[1], [0], [0], [1], [0, 0, 1, 1], [], []>} : vector<2x16xf32>, vector<16x16xf32>, vector<2x16xf32> -> vector<2x16xf32>
    %778 = arith.addf %167, %777 : vector<2x16xf32>
    %cst_276 = arith.constant 5.000000e-01 : f32
    %779 = vector.broadcast %cst_276 : f32 to vector<2x16xf32>
    %780 = arith.mulf %779, %778 : vector<2x16xf32>
    %781 = math.tanh %780 : vector<2x16xf32>
    %cst_277 = arith.constant 5.000000e-01 : f32
    %782 = vector.broadcast %cst_277 : f32 to vector<2x16xf32>
    %783 = arith.mulf %782, %781 : vector<2x16xf32>
    %cst_278 = arith.constant 5.000000e-01 : f32
    %784 = vector.broadcast %cst_278 : f32 to vector<2x16xf32>
    %785 = arith.addf %783, %784 : vector<2x16xf32>
    %cst_279 = arith.constant dense<0.000000e+00> : vector<2x16xf32>
    %786 = tpu.matmul %720, %176, %cst_279 {dimension_numbers = #tpu.dot_dimension_numbers<[1], [0], [0], [1], [0, 0, 1, 1], [], []>} : vector<2x16xf32>, vector<16x16xf32>, vector<2x16xf32> -> vector<2x16xf32>
    %787 = arith.addf %170, %786 : vector<2x16xf32>
    %788 = math.tanh %787 : vector<2x16xf32>
    %cst_280 = arith.constant dense<0.000000e+00> : vector<2x16xf32>
    %789 = tpu.matmul %720, %177, %cst_280 {dimension_numbers = #tpu.dot_dimension_numbers<[1], [0], [0], [1], [0, 0, 1, 1], [], []>} : vector<2x16xf32>, vector<16x16xf32>, vector<2x16xf32> -> vector<2x16xf32>
    %790 = arith.addf %173, %789 : vector<2x16xf32>
    %cst_281 = arith.constant 5.000000e-01 : f32
    %791 = vector.broadcast %cst_281 : f32 to vector<2x16xf32>
    %792 = arith.mulf %791, %790 : vector<2x16xf32>
    %793 = math.tanh %792 : vector<2x16xf32>
    %cst_282 = arith.constant 5.000000e-01 : f32
    %794 = vector.broadcast %cst_282 : f32 to vector<2x16xf32>
    %795 = arith.mulf %794, %793 : vector<2x16xf32>
    %cst_283 = arith.constant 5.000000e-01 : f32
    %796 = vector.broadcast %cst_283 : f32 to vector<2x16xf32>
    %797 = arith.addf %795, %796 : vector<2x16xf32>
    %798 = arith.mulf %785, %718 : vector<2x16xf32>
    %799 = arith.mulf %776, %788 : vector<2x16xf32>
    %800 = arith.addf %798, %799 : vector<2x16xf32>
    %801 = math.tanh %800 : vector<2x16xf32>
    %802 = arith.mulf %797, %801 : vector<2x16xf32>
    %cst_284 = arith.constant dense<0.000000e+00> : vector<2x16xf32>
    %803 = tpu.matmul %802, %182, %cst_284 {dimension_numbers = #tpu.dot_dimension_numbers<[1], [0], [0], [1], [0, 0, 1, 1], [], []>} : vector<2x16xf32>, vector<16x16xf32>, vector<2x16xf32> -> vector<2x16xf32>
    %804 = vector.broadcast %186 : vector<1x16xf32> to vector<2x16xf32>
    %805 = arith.addf %803, %804 : vector<2x16xf32>
    %cst_285 = arith.constant dense<0.000000e+00> : vector<2x16xf32>
    %806 = tpu.matmul %802, %183, %cst_285 {dimension_numbers = #tpu.dot_dimension_numbers<[1], [0], [0], [1], [0, 0, 1, 1], [], []>} : vector<2x16xf32>, vector<16x16xf32>, vector<2x16xf32> -> vector<2x16xf32>
    %807 = vector.broadcast %187 : vector<1x16xf32> to vector<2x16xf32>
    %808 = arith.addf %806, %807 : vector<2x16xf32>
    %cst_286 = arith.constant dense<0.000000e+00> : vector<2x16xf32>
    %809 = tpu.matmul %802, %184, %cst_286 {dimension_numbers = #tpu.dot_dimension_numbers<[1], [0], [0], [1], [0, 0, 1, 1], [], []>} : vector<2x16xf32>, vector<16x16xf32>, vector<2x16xf32> -> vector<2x16xf32>
    %810 = vector.broadcast %188 : vector<1x16xf32> to vector<2x16xf32>
    %811 = arith.addf %809, %810 : vector<2x16xf32>
    %cst_287 = arith.constant dense<0.000000e+00> : vector<2x16xf32>
    %812 = tpu.matmul %802, %185, %cst_287 {dimension_numbers = #tpu.dot_dimension_numbers<[1], [0], [0], [1], [0, 0, 1, 1], [], []>} : vector<2x16xf32>, vector<16x16xf32>, vector<2x16xf32> -> vector<2x16xf32>
    %813 = vector.broadcast %189 : vector<1x16xf32> to vector<2x16xf32>
    %814 = arith.addf %812, %813 : vector<2x16xf32>
    %cst_288 = arith.constant dense<0.000000e+00> : vector<2x16xf32>
    %815 = tpu.matmul %767, %178, %cst_288 {dimension_numbers = #tpu.dot_dimension_numbers<[1], [0], [0], [1], [0, 0, 1, 1], [], []>} : vector<2x16xf32>, vector<16x16xf32>, vector<2x16xf32> -> vector<2x16xf32>
    %816 = arith.addf %805, %815 : vector<2x16xf32>
    %cst_289 = arith.constant 5.000000e-01 : f32
    %817 = vector.broadcast %cst_289 : f32 to vector<2x16xf32>
    %818 = arith.mulf %817, %816 : vector<2x16xf32>
    %819 = math.tanh %818 : vector<2x16xf32>
    %cst_290 = arith.constant 5.000000e-01 : f32
    %820 = vector.broadcast %cst_290 : f32 to vector<2x16xf32>
    %821 = arith.mulf %820, %819 : vector<2x16xf32>
    %cst_291 = arith.constant 5.000000e-01 : f32
    %822 = vector.broadcast %cst_291 : f32 to vector<2x16xf32>
    %823 = arith.addf %821, %822 : vector<2x16xf32>
    %cst_292 = arith.constant dense<0.000000e+00> : vector<2x16xf32>
    %824 = tpu.matmul %767, %179, %cst_292 {dimension_numbers = #tpu.dot_dimension_numbers<[1], [0], [0], [1], [0, 0, 1, 1], [], []>} : vector<2x16xf32>, vector<16x16xf32>, vector<2x16xf32> -> vector<2x16xf32>
    %825 = arith.addf %808, %824 : vector<2x16xf32>
    %cst_293 = arith.constant 5.000000e-01 : f32
    %826 = vector.broadcast %cst_293 : f32 to vector<2x16xf32>
    %827 = arith.mulf %826, %825 : vector<2x16xf32>
    %828 = math.tanh %827 : vector<2x16xf32>
    %cst_294 = arith.constant 5.000000e-01 : f32
    %829 = vector.broadcast %cst_294 : f32 to vector<2x16xf32>
    %830 = arith.mulf %829, %828 : vector<2x16xf32>
    %cst_295 = arith.constant 5.000000e-01 : f32
    %831 = vector.broadcast %cst_295 : f32 to vector<2x16xf32>
    %832 = arith.addf %830, %831 : vector<2x16xf32>
    %cst_296 = arith.constant dense<0.000000e+00> : vector<2x16xf32>
    %833 = tpu.matmul %767, %180, %cst_296 {dimension_numbers = #tpu.dot_dimension_numbers<[1], [0], [0], [1], [0, 0, 1, 1], [], []>} : vector<2x16xf32>, vector<16x16xf32>, vector<2x16xf32> -> vector<2x16xf32>
    %834 = arith.addf %811, %833 : vector<2x16xf32>
    %835 = math.tanh %834 : vector<2x16xf32>
    %cst_297 = arith.constant dense<0.000000e+00> : vector<2x16xf32>
    %836 = tpu.matmul %767, %181, %cst_297 {dimension_numbers = #tpu.dot_dimension_numbers<[1], [0], [0], [1], [0, 0, 1, 1], [], []>} : vector<2x16xf32>, vector<16x16xf32>, vector<2x16xf32> -> vector<2x16xf32>
    %837 = arith.addf %814, %836 : vector<2x16xf32>
    %cst_298 = arith.constant 5.000000e-01 : f32
    %838 = vector.broadcast %cst_298 : f32 to vector<2x16xf32>
    %839 = arith.mulf %838, %837 : vector<2x16xf32>
    %840 = math.tanh %839 : vector<2x16xf32>
    %cst_299 = arith.constant 5.000000e-01 : f32
    %841 = vector.broadcast %cst_299 : f32 to vector<2x16xf32>
    %842 = arith.mulf %841, %840 : vector<2x16xf32>
    %cst_300 = arith.constant 5.000000e-01 : f32
    %843 = vector.broadcast %cst_300 : f32 to vector<2x16xf32>
    %844 = arith.addf %842, %843 : vector<2x16xf32>
    %845 = arith.mulf %832, %765 : vector<2x16xf32>
    %846 = arith.mulf %823, %835 : vector<2x16xf32>
    %847 = arith.addf %845, %846 : vector<2x16xf32>
    %848 = math.tanh %847 : vector<2x16xf32>
    %849 = arith.mulf %844, %848 : vector<2x16xf32>
    %c288 = arith.constant 288 : index
    %c0_301 = arith.constant 0 : index
    %850 = vector.load %arg2[%c288, %c0_301] : memref<312x16xf32, #tpu.memory_space<vmem>>, vector<16x4xf32>
    %c304 = arith.constant 304 : index
    %c0_302 = arith.constant 0 : index
    %851 = vector.load %arg2[%c304, %c0_302] : memref<312x16xf32, #tpu.memory_space<vmem>>, vector<1x4xf32>
    %cst_303 = arith.constant dense<0.000000e+00> : vector<2x4xf32>
    %852 = tpu.matmul %849, %850, %cst_303 {dimension_numbers = #tpu.dot_dimension_numbers<[1], [0], [0], [1], [0, 0, 1, 1], [], []>} : vector<2x16xf32>, vector<16x4xf32>, vector<2x4xf32> -> vector<2x4xf32>
    %853 = vector.broadcast %851 : vector<1x4xf32> to vector<2x4xf32>
    %854 = arith.addf %852, %853 : vector<2x4xf32>
    %c0_304 = arith.constant 0 : index
    %c0_305 = arith.constant 0 : index
    %855 = vector.load %arg3[%c0_304, %c0_305] : memref<2x4xf32, #tpu.memory_space<vmem>>, vector<2x4xf32>
    tpu.vector_store %arg3[%c0_304, %c0_305], %854 {strides = array<i32>} : memref<2x4xf32, #tpu.memory_space<vmem>>, vector<2x4xf32>,
    return
  }
}

</mosaic_0001>

<bundles_post_ra>
// kernel: forward.1
= control target key start
LH: loop header
LB: loop body
LE: loop exit
PB: predicated region body
PF: predicated region fallthrough
CT: control target
= control target key end

     0   :  { %s3427_s18 = smov 15   ;;  %vm25_vm0 = vcmask 1046528   ;;  %s4418_s0 = inlined_call_operand.vmem [shape: f32[2,14,15], index: 0, kind: input, shape index: {}]   ;;  %s4419_s1 = inlined_call_operand.vmem [shape: f32[56,128], index: 1, kind: input, shape index: {}]   ;;  %s4420_s2 = inlined_call_operand.vmem [shape: f32[312,16], index: 2, kind: input, shape index: {}]   ;;  %s4421_s3 = inlined_call_operand.hbm [shape: f32[2,4], index: 3, kind: output, shape index: {}]  }
   0x1   :  { %v16_v0 = vld [vmem:[%s4418_s0 + $0x8] sm:$0x3f]  ;;  %v18_v1 = vld [vmem:[%s4418_s0 + $0x18] sm:$0x3f]  ;;  %v15_v4 = vld [vmem:[%s4418_s0] sm:$0xff] }
   0x2   :  { %v27_v2 = vrot.slane %v16_v0, 1  ;;  %v211_v3 = vrot.slane %v18_v1, 1  ;;  %v26_v5 = vrot.slane %v15_v4, 1 }
   0x4   :  { %31 = vrot.lane.b32.xlu0 %v27_v2, %s3427_s18  ;;  %215 = vrot.lane.b32.xlu1 %v211_v3, %s3427_s18  ;;  %v28_v6 = vsel %vm25_vm0, %v26_v5, %v27_v2 }
   0x5   :  { %29 = vrot.lane.b32.xlu2 %v28_v6, %s3427_s18 }
   0x6   :  { %8 = vsyncpa [#allocation3], 0  ;;  %v37_v7 = vrot.slane %v16_v0, 2  ;;  %v220_v8 = vrot.slane %v18_v1, 2  ;;  %v36_v9 = vrot.slane %v15_v4, 2  ;;  %v17_v10 = vld [vmem:[%s4418_s0 + $0x10] sm:$0xff] }
   0x7   :  { %vm35_vm1 = vcmask 1045504   ;;  %s3428_s21 = smov 30   ;;  %v210_v12 = vrot.slane %v17_v10, 1  ;;  %v219_v13 = vrot.slane %v17_v10, 2  ;;  %vm45_vm2 = vcmask 121856   ;;  %v19_v31 = vld [vmem:[%s4419_s1] sm:$0xff] }
   0x8   :  { %v38_v11 = vsel %vm35_vm1, %v36_v9, %v37_v7  ;;  %vm48_vm3 = vcmask 244736   ;;  %vm54_vm4 = vcmask 375808   ;;  %vm51_vm5 = vcmask 367616   ;;  %v20_v37 = vld [vmem:[%s4419_s1 + $0x8] sm:$0xff]  ;;  %v21_v38 = vld [vmem:[%s4419_s1 + $0x10] sm:$0xff]  ;;  %v22_v39 = vld [vmem:[%s4419_s1 + $0x18] sm:$0xff] }
   0x9   :  { %v212_v14 = vsel %vm25_vm0, %v210_v12, %v211_v3  ;;  %v221_v15 = vsel %vm35_vm1, %v219_v13, %v220_v8  ;;  %s3429_s29 = smov 126   ;;  %s3430_s30 = smov 127   ;;  %vm139_vm6 = vcmask 1040384   ;;  %v3431_v52 = vmov 1.0  }
   0xa   :  { %3024 = vmatpush.msk.msra.mxu1 %vm139_vm6, %v3431_v52  ;;  %3027 = vmatpush.msk.msra.mxu2 %vm139_vm6, %v3431_v52  ;;  %vm132_vm7 = vcmask 793600   ;;  %vm183_vm8 = vcmask 400384   ;;  %vm360_vm9 = vcmask 64512   ;;  %vm648_vm10 = vcmask 130048   ;;  %s3433_s26 = smov [#allocation2]  }
   0xb   :  { %s3007_s27 = sshll.u32 %s3433_s26, 4  ;;  %vm3000_vm11 = vcmask 25600   ;;  %s3008_s27 = int_to_ptr.vmem [resolvable:$true] %s3007_s27 }
   0xc   :  { %41 = vrot.lane.b32.xlu0 %v37_v7, %s3428_s21  ;;  %224 = vrot.lane.b32.xlu1 %v220_v8, %s3428_s21 }
   0xd   :  { %39 = vrot.lane.b32.xlu2 %v38_v11, %s3428_s21  ;;  %v102_v11 = vld [vmem:[%s4419_s1 + $0x20] sm:$0xff] }
  0x14   :  { %213 = vrot.lane.b32.xlu0 %v212_v14, %s3427_s18  ;;  %222 = vrot.lane.b32.xlu1 %v221_v15, %s3428_s21  ;;  %v103_v14 = vld [vmem:[%s4419_s1 + $0x28] sm:$0xff] }
  0x5f   :  { %v30_v16 = vpop.permute.xlu2 %29 }
  0x60   :  { %v46_v21 = vsel %vm45_vm2, %v15_v4, %v30_v16 }
  0x67   :  { %v40_v20 = vpop.permute.xlu2 %39 }
  0x68   :  { %v49_v29 = vsel %vm48_vm3, %v46_v21, %v40_v20 }
  0x69   :  { %v52_v30 = vsel %vm51_vm5, %v49_v29, 1.0 }
  0x76   :  { %v32_v17 = vpop.permute.xlu0 %31  ;;  %v216_v18 = vpop.permute.xlu1 %215 }
  0x77   :  { %v229_v19 = vsel %vm45_vm2, %v18_v1, %v216_v18  ;;  %v47_v22 = vsel %vm45_vm2, %v16_v0, %v32_v17 }
  0x7e   :  { %v42_v23 = vpop.permute.xlu0 %41  ;;  %v225_v24 = vpop.permute.xlu1 %224 }
  0x7f   :  { %v50_v25 = vsel %vm48_vm3, %v47_v22, %v42_v23  ;;  %v231_v26 = vsel %vm48_vm3, %v229_v19, %v225_v24 }
  0x80   :  { %v53_v27 = vsel %vm51_vm5, %v50_v25, 1.0  ;;  %v233_v28 = vsel %vm51_vm5, %v231_v26, 1.0  ;;  %v390_v25 = vld [vmem:[%s4420_s2 + $0x20] sm:$0xff] }
  0x81   :  { %3018 = vmatpush.xpose.msk.msra.mxu0 %vm54_vm4, %v53_v27  ;;  %3029 = vmatpush.xpose.msk.msra.mxu3 %vm54_vm4, %v233_v28 }
  0x85   :  { %3019 = vmatpush.xpose.msk.msra.mxu0 %vm54_vm4, %v52_v30 }
  0x86   :  { %v214_v32 = vpop.permute.xlu0 %213  ;;  %v223_v33 = vpop.permute.xlu1 %222 }
  0x87   :  { %v228_v34 = vsel %vm45_vm2, %v17_v10, %v214_v32 }
  0x88   :  { %v230_v35 = vsel %vm48_vm3, %v228_v34, %v223_v33  ;;  %3020 = vmatmul.msk.f32.vlgmr.msra.gmra.mxu0 %vm54_vm4, %v19_v31  ;;  %v168_v33 = vld [vmem:[%s4419_s1 + $0x30] sm:$0xff] }
  0x89   :  { %v232_v36 = vsel %vm51_vm5, %v230_v35, 1.0  ;;  %3035 = vmatpush.msk.msrb.mxu0 %vm139_vm6, %v3431_v52 }
  0x8a   :  { %3030 = vmatpush.xpose.msk.msra.mxu3 %vm54_vm4, %v232_v36 }
  0x8d   :  { %3031 = vmatmul.msk.f32.vlgmr.msra.gmra.mxu3 %vm54_vm4, %v19_v31 }
  0x8e   :  { %408 = vmatpush.msrb.mxu3 %v390_v25 }
  0x90   :  { %3021 = vmatmul.msk.f32.gmra.mxu0 %vm54_vm4, %v20_v37 }
  0x95   :  { %3032 = vmatmul.msk.f32.gmra.mxu3 %vm54_vm4, %v20_v37 }
  0x98   :  { %3022 = vmatmul.msk.f32.gmra.mxu0 %vm54_vm4, %v21_v38 }
  0x9d   :  { %3033 = vmatmul.msk.f32.gmra.mxu3 %vm54_vm4, %v21_v38 }
  0xa0   :  { %3023 = vmatmul.msk.f32.gmra.mxu0 %vm54_vm4, %v22_v39 }
  0xa5   :  { %3034 = vmatmul.msk.f32.gmra.mxu3 %vm54_vm4, %v22_v39  ;;  %v357_v39 = vld [vmem:[%s4420_s2] sm:$0xff] }
 0x105   :  { %v3500_v40 = vpop.f32.mrf.mxu0 }
 0x10d   :  { %v93_v41 = vpop.f32.mrf.mxu0 }
 0x10e   :  { %v3144_v42 = vpack.i.bf16 %v3500_v40, %v93_v41 }
 0x110   :  { %v3503_v43 = vpop.f32.mrf.mxu3  ;;  %3145 = vrot.lane.b32.xlu0 %v3144_v42, %s3429_s29 }
 0x115   :  { %v96_v44 = vpop.f32.mrf.mxu0 }
 0x118   :  { %v3506_v45 = vpop.f32.mrf.mxu3  ;;  %3150 = vrot.lane.b32.xlu0 %v3144_v42, %s3430_s30  ;;  %v3558_v42 = vld [vmem:[%s4420_s2 + $0x30] sm:$0xff] }
 0x119   :  { %v3179_v46 = vpack.i.bf16 %v3503_v43, %v3506_v45  ;;  %691 = vmatpush.msra.mxu3 %v3558_v42 }
 0x11d   :  { %v99_v47 = vpop.f32.mrf.mxu0 }
 0x11e   :  { %v3159_v48 = vpack.i.bf16 %v96_v44, %v99_v47 }
 0x120   :  { %v263_v49 = vpop.f32.mrf.mxu3  ;;  %3180 = vrot.lane.b32.xlu0 %v3179_v46, %s3430_s30  ;;  %3160 = vrot.lane.b32.xlu1 %v3159_v48, %s3430_s30 }
 0x121   :  { %3155 = vrot.lane.b32.xlu2 %v3159_v48, %s3429_s29  ;;  %v4422_v48 = vmov 0.0  }
 0x128   :  { %v266_v50 = vpop.f32.mrf.mxu3  ;;  %3165 = vrot.lane.b32.xlu1 %v3179_v46, %s3429_s29  ;;  %v3581_v46 = vld [vmem:[%s4420_s2 + $0x48] sm:$0xff] }
 0x129   :  { %v3169_v51 = vpack.i.bf16 %v263_v49, %v266_v50 }
 0x12b   :  { %3170 = vrot.lane.b32.xlu2 %v3169_v51, %s3429_s29 }
 0x133   :  { %3175 = vrot.lane.b32.xlu2 %v3169_v51, %s3430_s30 }
 0x17b   :  { %v3156_v53 = vpop.permute.xlu2 %3155 }
 0x17c   :  { %v3157_v54 = vunpack.i.l.bf16 %v3156_v53  ;;  %v3158_v55 = vunpack.i.h.bf16 %v3156_v53 }
 0x17e   :  { %147 = vmatpush.msra.mxu1 %v3157_v54 }
 0x180   :  { %148 = vmatpush.msra.mxu1 %v3158_v55 }
 0x182   :  { %v3146_v56 = vpop.permute.xlu0 %3145 }
 0x183   :  { %v3147_v57 = vunpack.i.l.bf16 %v3146_v56  ;;  %v3148_v59 = vunpack.i.h.bf16 %v3146_v56  ;;  %v3204_v56 = vld [vmem:[%s4420_s2 + $0x58] ss:$0 sm:$0xff] }
 0x185   :  { %v3171_v58 = vpop.permute.xlu2 %3170  ;;  %149 = vmatpush.msra.mxu1 %v3147_v57  ;;  %v3205_v57 = vld [vmem:[%s4420_s2 + $0x18] ss:$0 sm:$0xff] }
 0x186   :  { %v3172_v60 = vunpack.i.l.bf16 %v3171_v58  ;;  %v3173_v61 = vunpack.i.h.bf16 %v3171_v58  ;;  %v3206_v58 = vld [vmem:[%s4420_s2 + $0x38] ss:$0 sm:$0xff] }
 0x187   :  { %150 = vmatpush.msra.mxu1 %v3148_v59 }
 0x188   :  { %301 = vmatpush.msrb.mxu0 %v3172_v60 }
 0x18a   :  { %302 = vmatpush.msrb.mxu0 %v3173_v61  ;;  %v3151_v0 = vpop.permute.xlu0 %3150 }
 0x18b   :  { %v3152_v2 = vunpack.i.l.bf16 %v3151_v0  ;;  %v3153_v3 = vunpack.i.h.bf16 %v3151_v0 }
 0x18d   :  { %v3176_v6 = vpop.permute.xlu2 %3175 }
 0x18e   :  { %v3177_v8 = vunpack.i.l.bf16 %v3176_v6  ;;  %v3178_v10 = vunpack.i.h.bf16 %v3176_v6 }
 0x192   :  { %v3161_v62 = vpop.permute.xlu1 %3160  ;;  %v3181_v9 = vpop.permute.xlu0 %3180 }
 0x193   :  { %v3162_v63 = vunpack.i.l.bf16 %v3161_v62  ;;  %v3163_v1 = vunpack.i.h.bf16 %v3161_v62  ;;  %v3182_v12 = vunpack.i.l.bf16 %v3181_v9  ;;  %v3183_v13 = vunpack.i.h.bf16 %v3181_v9 }
 0x195   :  { %151 = vmatpush.msra.mxu1 %v3162_v63 }
 0x197   :  { %152 = vmatpush.msra.mxu1 %v3163_v1 }
 0x199   :  { %153 = vmatpush.msra.mxu1 %v3152_v2 }
 0x19a   :  { %v3166_v4 = vpop.permute.xlu1 %3165 }
 0x19b   :  { %154 = vmatpush.msra.mxu1 %v3153_v3  ;;  %v3167_v5 = vunpack.i.l.bf16 %v3166_v4  ;;  %v3168_v7 = vunpack.i.h.bf16 %v3166_v4 }
 0x19d   :  { %155 = vmatpush.msra.mxu1 %v99_v47  ;;  %303 = vmatpush.msrb.mxu0 %v3167_v5  ;;  %v3588_v47 = vld [vmem:[%s4420_s2 + $0x8] sm:$0xff] }
 0x19f   :  { %156 = vmatpush.msra.mxu1 %v96_v44  ;;  %304 = vmatpush.msrb.mxu0 %v3168_v7  ;;  %v3569_v44 = vld [vmem:[%s4420_s2 + $0x50] sm:$0xff] }
 0x1a1   :  { %157 = vmatpush.msra.mxu1 %v93_v41  ;;  %305 = vmatpush.msrb.mxu0 %v3177_v8  ;;  %v442_v41 = vld [vmem:[%s4420_s2 + $0x60] sm:$0xff] }
 0x1a3   :  { %158 = vmatpush.msra.mxu1 %v3500_v40  ;;  %306 = vmatpush.msrb.mxu0 %v3178_v10  ;;  %v416_v40 = vld [vmem:[%s4420_s2 + $0x40] sm:$0xff] }
 0x1a4   :  { %3025 = vmatmul.msk.f32.vlgmr.msra.gmra.mxu1 %vm132_vm7, %v102_v11 }
 0x1a5   :  { %307 = vmatpush.msrb.mxu0 %v3182_v12  ;;  %434 = vmatpush.msrb.mxu1 %v416_v40  ;;  %v3697_v40 = vld [vmem:[%s4420_s2 + $0x88] sm:$0xff] }
 0x1a7   :  { %308 = vmatpush.msrb.mxu0 %v3183_v13  ;;  %716 = vmatpush.msra.mxu1 %v3569_v44 }
 0x1a9   :  { %309 = vmatpush.msrb.mxu0 %v266_v50  ;;  %717 = vmatpush.msra.mxu1 %v3581_v46  ;;  %v3600_v50 = vld [vmem:[%s4420_s2 + $0x68] sm:$0xff] }
 0x1ab   :  { %310 = vmatpush.msrb.mxu0 %v263_v49  ;;  %v3595_v49 = vld [vmem:[%s4420_s2 + $0x70] sm:$0xff] }
 0x1ac   :  { %3026 = vmatmul.msk.f32.gmra.mxu1 %vm132_vm7, %v103_v14 }
 0x1ad   :  { %311 = vmatpush.msrb.mxu0 %v3506_v45  ;;  %v3574_v45 = vld [vmem:[%s4420_s2 + $0x28] sm:$0xff] }
 0x1ae   :  { %692 = vmatpush.msra.mxu3 %v3574_v45 }
 0x1af   :  { %312 = vmatpush.msrb.mxu0 %v3503_v43  ;;  %v3564_v43 = vld [vmem:[%s4420_s2 + $0x10] sm:$0xff] }
 0x1b0   :  { %3036 = vmatmul.msk.f32.vlgmr.msrb.gmra.mxu0 %vm132_vm7, %v102_v11 }
 0x1b1   :  { %666 = vmatpush.msra.mxu0 %v3564_v43 }
 0x1b3   :  { %667 = vmatpush.msra.mxu0 %v3588_v47 }
 0x1b5   :  { %738 = vmatpush.msrb.mxu0 %v3595_v49 }
 0x1b7   :  { %739 = vmatpush.msrb.mxu0 %v3600_v50 }
 0x1b8   :  { %3037 = vmatmul.msk.f32.gmra.mxu0 %vm132_vm7, %v103_v14 }
 0x1c0   :  { %668 = vmatmul.f32.vlgmr.msra.gmra.mxu0 %v4422_v48 }
 0x1c8   :  { %740 = vmatmul.f32.vlgmr.msrb.gmra.mxu0 %v4422_v48 }
 0x221   :  { %v160_v15 = vpop.f32.mrf.mxu1 }
 0x222   :  { %v166_v17 = vmax.f32 %v160_v15, 0.0 }
 0x229   :  { %v163_v16 = vpop.f32.mrf.mxu1 }
 0x22a   :  { %v167_v18 = vmax.f32 %v163_v16, 0.0 }
 0x22c   :  { %v3189_v19 = vpack.i.bf16 %v166_v17, %v167_v18 }
 0x22d   :  { %v314_v20 = vpop.f32.mrf.mxu0 }
 0x22e   :  { %3190 = vrot.lane.b32.xlu2 %v3189_v19, %s3430_s30  ;;  %3185 = vrot.lane.b32.xlu1 %v3189_v19, %s3429_s29  ;;  %v320_v22 = vmax.f32 %v314_v20, 0.0 }
 0x235   :  { %v317_v21 = vpop.f32.mrf.mxu0 }
 0x236   :  { %v321_v23 = vmax.f32 %v317_v21, 0.0 }
 0x238   :  { %v3194_v24 = vpack.i.bf16 %v320_v22, %v321_v23 }
 0x23a   :  { %3195 = vrot.lane.b32.xlu0 %v3194_v24, %s3429_s29  ;;  %3200 = vrot.lane.b32.xlu1 %v3194_v24, %s3430_s30  ;;  %s3009_s30 = sshll.u32 %s4421_s3, 4  ;;  %s3010_s30 = int_to_ptr.hbm [resolvable:$true] %s3009_s30 }
 0x288   :  { %v3191_v28 = vpop.permute.xlu2 %3190 }
 0x289   :  { %v3192_v30 = vunpack.i.l.bf16 %v3191_v28  ;;  %v3193_v31 = vunpack.i.h.bf16 %v3191_v28 }
 0x2a0   :  { %v3186_v26 = vpop.permute.xlu1 %3185 }
 0x2a1   :  { %v3187_v27 = vunpack.i.l.bf16 %v3186_v26  ;;  %v3188_v29 = vunpack.i.h.bf16 %v3186_v26 }
 0x2a3   :  { %197 = vmatpush.msra.mxu2 %v3187_v27 }
 0x2a5   :  { %198 = vmatpush.msra.mxu2 %v3188_v29 }
 0x2a7   :  { %199 = vmatpush.msra.mxu2 %v3192_v30 }
 0x2a9   :  { %200 = vmatpush.msra.mxu2 %v3193_v31 }
 0x2ab   :  { %201 = vmatpush.msra.mxu2 %v167_v18 }
 0x2ac   :  { %v3196_v32 = vpop.permute.xlu0 %3195  ;;  %v3201_v35 = vpop.permute.xlu1 %3200 }
 0x2ad   :  { %v3197_v34 = vunpack.i.l.bf16 %v3196_v32  ;;  %202 = vmatpush.msra.mxu2 %v166_v17  ;;  %v3198_v36 = vunpack.i.h.bf16 %v3196_v32  ;;  %v3202_v37 = vunpack.i.l.bf16 %v3201_v35  ;;  %v3203_v38 = vunpack.i.h.bf16 %v3201_v35  ;;  %v669_v35 = vpop.f32.mrf.mxu0 }
 0x2ae   :  { %3028 = vmatmul.msk.f32.vlgmr.msra.gmra.mxu2 %vm183_vm8, %v168_v33 }
 0x2af   :  { %3038 = vmatpush.msk.msrb.mxu2 %vm139_vm6, %v3431_v52 }
 0x2b1   :  { %346 = vmatpush.msrb.mxu2 %v3197_v34 }
 0x2b3   :  { %347 = vmatpush.msrb.mxu2 %v3198_v36 }
 0x2b5   :  { %348 = vmatpush.msrb.mxu2 %v3202_v37 }
 0x2b7   :  { %349 = vmatpush.msrb.mxu2 %v3203_v38 }
 0x2b9   :  { %350 = vmatpush.msrb.mxu2 %v321_v23 }
 0x2bb   :  { %351 = vmatpush.msrb.mxu2 %v320_v22 }
 0x2bc   :  { %3039 = vmatmul.msk.f32.vlgmr.msrb.gmra.mxu2 %vm183_vm8, %v168_v33 }
 0x2bd   :  { %382 = vmatpush.msra.mxu2 %v357_v39  ;;  %v3692_v39 = vld [vmem:[%s4420_s2 + $0xd8] sm:$0xff] }
 0x2bf   :  { %460 = vmatpush.msrb.mxu2 %v442_v41  ;;  %v3702_v41 = vld [vmem:[%s4420_s2 + $0xb0] sm:$0xff] }
 0x331   :  { %v204_v51 = vpop.f32.mrf.mxu2 }
 0x332   :  { %v207_v52 = vmax.f32 %v204_v51, 0.0 }
 0x334   :  { %3040 = vmatmul.msk.f32.vlgmr.msra.gmra.mxu2 %vm360_vm9, %v207_v52  ;;  %3042 = vmatmul.msk.f32.vlgmr.msrb.gmra.mxu3 %vm360_vm9, %v207_v52 }
 0x335   :  { %3044 = vmatmul.msk.f32.vlgmr.msrb.gmra.mxu1 %vm360_vm9, %v207_v52  ;;  %814 = vmatpush.msra.mxu2 %v3692_v39 }
 0x336   :  { %772 = vmatpush.msrb.mxu3 %v3697_v40  ;;  %793 = vmatpush.msrb.mxu1 %v3702_v41 }
 0x33f   :  { %v353_v53 = vpop.f32.mrf.mxu2 }
 0x340   :  { %v356_v54 = vmax.f32 %v353_v53, 0.0 }
 0x342   :  { %3041 = vmatmul.msk.f32.gmra.mxu2 %vm360_vm9, %v356_v54  ;;  %3043 = vmatmul.msk.f32.gmra.mxu3 %vm360_vm9, %v356_v54 }
 0x343   :  { %3045 = vmatmul.msk.f32.gmra.mxu1 %vm360_vm9, %v356_v54 }
 0x34a   :  { %3046 = vmatmul.msk.f32.vlgmr.msrb.gmra.mxu2 %vm360_vm9, %v207_v52  ;;  %693 = vmatmul.f32.vlgmr.msra.gmra.mxu3 %v4422_v48 }
 0x34b   :  { %718 = vmatmul.f32.vlgmr.msra.gmra.mxu1 %v4422_v48 }
 0x352   :  { %3047 = vmatmul.msk.f32.gmra.mxu2 %vm360_vm9, %v356_v54 }
 0x3b2   :  { %v436_v55 = vpop.f32.mrf.mxu1 }
 0x3b3   :  { %v3624_v61 = vadd.f32 %v3204_v56, %v436_v55  ;;  %v3714_v55 = vld [vmem:[%s4420_s2 + $0x100] sm:$0xff] }
 0x3b4   :  { %835 = vmatpush.msra.mxu0 %v3714_v55 }
 0x3b5   :  { %v493_v1 = vrot.slane %v3624_v61, 1  ;;  %v510_v2 = vrot.slane %v3624_v61, 2  ;;  %v530_v3 = vrot.slane %v3624_v61, 3  ;;  %v550_v5 = vrot.slane %v3624_v61, 4 }
 0x3b6   :  { %v570_v6 = vrot.slane %v3624_v61, 5  ;;  %v590_v7 = vrot.slane %v3624_v61, 6  ;;  %v610_v11 = vrot.slane %v3624_v61, 7 }
 0x3b7   :  { %v384_v59 = vpop.f32.mrf.mxu2  ;;  %v410_v60 = vpop.f32.mrf.mxu3 }
 0x3b8   :  { %v3626_v62 = vadd.f32 %v3205_v57, %v384_v59  ;;  %v3628_v63 = vadd.f32 %v3206_v58, %v410_v60 }
 0x3ba   :  { %v489_v8 = vrot.slane %v3628_v63, 1  ;;  %v485_v9 = vrot.slane %v3626_v62, 1  ;;  %v505_v10 = vrot.slane %v3628_v63, 2  ;;  %v500_v13 = vrot.slane %v3626_v62, 2 }
 0x3bb   :  { %v525_v23 = vrot.slane %v3628_v63, 3  ;;  %v520_v24 = vrot.slane %v3626_v62, 3  ;;  %v545_v30 = vrot.slane %v3628_v63, 4  ;;  %v540_v31 = vrot.slane %v3626_v62, 4 }
 0x3bc   :  { %v565_v59 = vrot.slane %v3628_v63, 5  ;;  %v560_v60 = vrot.slane %v3626_v62, 5 }
 0x3c0   :  { %v439_v0 = vpop.f32.mrf.mxu1 }
 0x3c1   :  { %v3633_v4 = vadd.f32 %v3204_v56, %v439_v0  ;;  %v3719_v56 = vld [vmem:[%s4420_s2 + $0x80] sm:$0xff] }
 0x3c2   :  { %773 = vmatpush.msrb.mxu3 %v3719_v56 }
 0x3c3   :  { %v3644_v12 = vsel %vm139_vm6, %v493_v1, %v3633_v4  ;;  %v512_v14 = vrot.slane %v3633_v4, 1  ;;  %v532_v15 = vrot.slane %v3633_v4, 2  ;;  %v552_v16 = vrot.slane %v3633_v4, 3 }
 0x3c4   :  { %v572_v17 = vrot.slane %v3633_v4, 4  ;;  %v592_v18 = vrot.slane %v3633_v4, 5  ;;  %v612_v19 = vrot.slane %v3633_v4, 6  ;;  %v477_v0 = vrot.slane %v3633_v4, 7 }
 0x3c5   :  { %v387_v20 = vpop.f32.mrf.mxu2  ;;  %v413_v21 = vpop.f32.mrf.mxu3  ;;  %v3654_v22 = vsel %vm139_vm6, %v510_v2, %v512_v14  ;;  %v3659_v25 = vsel %vm139_vm6, %v530_v3, %v532_v15  ;;  %v3666_v28 = vsel %vm139_vm6, %v550_v5, %v552_v16  ;;  %v3735_v2 = vld [vmem:[%s4420_s2 + $0xd0] sm:$0xff]  ;;  %v3740_v3 = vld [vmem:[%s4420_s2 + $0xf8] sm:$0xff] }
 0x3c6   :  { %v3661_v26 = vadd.f32 %v3205_v57, %v387_v20  ;;  %v3663_v27 = vadd.f32 %v3206_v58, %v413_v21  ;;  %4424 = vst [vmem:[#allocation5_spill] sm:$0xff] %v3666_v28  ;;  %v3669_v29 = vsel %vm139_vm6, %v570_v6, %v572_v17  ;;  %v3674_v32 = vsel %vm139_vm6, %v590_v7, %v592_v18  ;;  %v3724_v57 = vld [vmem:[%s4420_s2 + $0xa8] sm:$0xff]  ;;  %v3207_v6 = vld [vmem:[%s4420_s2 + $0x78] ss:$0 sm:$0xff]  ;;  %v3773_v17 = vld [vmem:[%s4420_s2 + $0xc0] sm:$0xff] }
 0x3c7   :  { %4425 = vst [vmem:[#allocation6_spill] sm:$0xff] %v3669_v29  ;;  %v3677_v33 = vsel %vm139_vm6, %v610_v11, %v612_v19  ;;  %815 = vmatpush.msra.mxu2 %v3735_v2  ;;  %794 = vmatpush.msrb.mxu1 %v3724_v57  ;;  %v3768_v16 = vld [vmem:[%s4420_s2 + $0x98] sm:$0xff]  ;;  %v3778_v18 = vld [vmem:[%s4420_s2 + $0xe8] sm:$0xff] }
 0x3c8   :  { %4426 = vst [vmem:[#allocation7_spill] sm:$0xff] %v3674_v32  ;;  %v469_v34 = vrot.slane %v3661_v26, 7  ;;  %v473_v36 = vrot.slane %v3663_v27, 7  ;;  %v3683_v37 = vsel %vm139_vm6, %v489_v8, %v3663_v27  ;;  %v3687_v38 = vsel %vm139_vm6, %v485_v9, %v3661_v26  ;;  %836 = vmatpush.msra.mxu0 %v3740_v3  ;;  %v719_v21 = vpop.f32.mrf.mxu1  ;;  %855 = vmatpush.msra.mxu3 %v3768_v16 }
 0x3c9   :  { %4427 = vst [vmem:[#allocation8_spill] sm:$0xff] %v3677_v33  ;;  %v507_v51 = vrot.slane %v3663_v27, 1  ;;  %v502_v52 = vrot.slane %v3661_v26, 1  ;;  %v527_v53 = vrot.slane %v3663_v27, 2  ;;  %v522_v58 = vrot.slane %v3661_v26, 2  ;;  %880 = vmatpush.msra.mxu1 %v3773_v17  ;;  %905 = vmatpush.msrb.mxu2 %v3778_v18 }
 0x3ca   :  { %v471_v54 = vsel %vm139_vm6, %v3626_v62, %v469_v34  ;;  %v547_v9 = vrot.slane %v3663_v27, 3  ;;  %v475_v14 = vsel %vm139_vm6, %v3628_v63, %v473_v36  ;;  %v567_v19 = vrot.slane %v3663_v27, 4  ;;  %v3792_v34 = vld [vmem:[%s4420_s2 + $0x90] sm:$0xff] }
 0x3cb   :  { %v672_v1 = vadd.f32 %v669_v35, %v471_v54  ;;  %v3743_v5 = vsel %vm139_vm6, %v505_v10, %v507_v51  ;;  %v3746_v4 = vsel %vm139_vm6, %v500_v13, %v502_v52  ;;  %v3754_v7 = vsel %vm139_vm6, %v525_v23, %v527_v53  ;;  %v3797_v35 = vld [vmem:[%s4420_s2 + $0xb8] sm:$0xff]  ;;  %v3809_v53 = vld [vmem:[%s4420_s2 + $0xe0] sm:$0xff]  ;;  %v3814_v54 = vld [vmem:[%s4420_s2 + $0x108] sm:$0xff]  ;;  %856 = vmatpush.msra.mxu3 %v3792_v34 }
 0x3cc   :  { %v3757_v8 = vsel %vm139_vm6, %v520_v24, %v522_v58  ;;  %v542_v10 = vrot.slane %v3661_v26, 3  ;;  %v562_v20 = vrot.slane %v3661_v26, 4  ;;  %v3787_v24 = vld [vmem:[%s4420_s2 + $0x110] sm:$0xff]  ;;  %v3800_v36 = vsel %vm139_vm6, %v545_v30, %v547_v9  ;;  %881 = vmatpush.msra.mxu1 %v3797_v35  ;;  %906 = vmatpush.msrb.mxu2 %v3809_v53 }
 0x3cd   :  { %v673_v11 = vmul.f32 0.5, %v672_v1  ;;  %v462_v13 = vpop.f32.mrf.mxu2  ;;  %v694_v15 = vpop.f32.mrf.mxu3  ;;  %v585_v51 = vrot.slane %v3628_v63, 6  ;;  %v587_v52 = vrot.slane %v3663_v27, 5  ;;  %927 = vmatpush.msrb.mxu0 %v3787_v24  ;;  %v3822_v58 = vsel %vm139_vm6, %v565_v59, %v567_v19 }
 0x3ce   :  { %v697_v23 = vadd.f32 %v694_v15, %v475_v14  ;;  %v3819_v30 = vsel %vm139_vm6, %v540_v31, %v542_v10  ;;  %4428 = vst [vmem:[#allocation9_spill] sm:$0xff] %v3822_v58  ;;  %v3825_v1 = vsel %vm139_vm6, %v560_v60, %v562_v20  ;;  %v479_v9 = vsel %vm139_vm6, %v3624_v61, %v477_v0 }
 0x3cf   :  { %3213 = vtanh.f32 %v673_v11  ;;  %4429 = vst [vmem:[#allocation10_spill] sm:$0xff] %v3825_v1  ;;  %v722_v14 = vadd.f32 %v719_v21, %v479_v9  ;;  %928 = vmatpush.msrb.mxu0 %v3814_v54  ;;  %v3834_v31 = vsel %vm139_vm6, %v585_v51, %v587_v52  ;;  %v580_v59 = vrot.slane %v3626_v62, 6 }
 0x3d0   :  { %v698_v11 = vmul.f32 0.5, %v697_v23  ;;  %4430 = vst [vmem:[#allocation11_spill] sm:$0xff] %v3834_v31  ;;  %v605_v60 = vrot.slane %v3628_v63, 7  ;;  %v463_v10 = vadd.f32 %v3207_v6, %v462_v13  ;;  %v582_v61 = vrot.slane %v3661_v26, 5 }
 0x3d1   :  { %v607_v0 = vrot.slane %v3663_v27, 6  ;;  %v600_v15 = vrot.slane %v3626_v62, 7  ;;  %v602_v19 = vrot.slane %v3661_v26, 6 }
 0x3d2   :  { %3215 = vtanh.f32 %v698_v11  ;;  %v3843_v20 = vsel %vm139_vm6, %v580_v59, %v582_v61  ;;  %v497_v9 = vrot.slane %v463_v10, 1  ;;  %v515_v27 = vrot.slane %v463_v10, 2  ;;  %v741_v61 = vpop.f32.mrf.mxu0 }
 0x3d3   :  { %4431 = vst [vmem:[#allocation12_spill] sm:$0xff] %v3843_v20  ;;  %v3846_v21 = vsel %vm139_vm6, %v605_v60, %v607_v0  ;;  %v3849_v63 = vsel %vm139_vm6, %v600_v15, %v602_v19  ;;  %3217 = vtanh.f32 %v722_v14  ;;  %v535_v11 = vrot.slane %v463_v10, 3 }
 0x3d4   :  { %4432 = vst [vmem:[#allocation13_spill] sm:$0xff] %v3846_v21  ;;  %v555_v62 = vrot.slane %v463_v10, 4  ;;  %v575_v48 = vrot.slane %v463_v10, 5 }
 0x3d5   :  { %v3214_v23 = vpop.eup %3213  ;;  %v465_v51 = vpop.f32.mrf.mxu2  ;;  %4433 = vst [vmem:[#allocation14_spill] sm:$0xff] %v3849_v63 }
 0x3d6   :  { %v675_v13 = vmul.f32 0.5, %v3214_v23  ;;  %v466_v52 = vadd.f32 %v3207_v6, %v465_v51  ;;  %v595_v23 = vrot.slane %v463_v10, 6 }
 0x3d8   :  { %v3216_v26 = vpop.eup %3215  ;;  %v676_v33 = vadd.f32 0.5, %v675_v13  ;;  %v481_v59 = vrot.slane %v466_v52, 7  ;;  %v3852_v60 = vsel %vm139_vm6, %v497_v9, %v466_v52  ;;  %v517_v0 = vrot.slane %v466_v52, 1 }
 0x3d9   :  { %v700_v21 = vmul.f32 0.5, %v3216_v26  ;;  %v537_v32 = vrot.slane %v466_v52, 2  ;;  %v557_v15 = vrot.slane %v466_v52, 3  ;;  %v577_v19 = vrot.slane %v466_v52, 4  ;;  %v3218_v31 = vpop.eup %3217 }
 0x3da   :  { %v483_v14 = vsel %vm139_vm6, %v463_v10, %v481_v59  ;;  %v3856_v6 = vsel %vm139_vm6, %v515_v27, %v517_v0  ;;  %v597_v51 = vrot.slane %v466_v52, 5  ;;  %v615_v59 = vrot.slane %v463_v10, 7 }
 0x3db   :  { %v701_v63 = vadd.f32 0.5, %v700_v21  ;;  %v744_v20 = vadd.f32 %v741_v61, %v483_v14  ;;  %v3859_v13 = vsel %vm139_vm6, %v535_v11, %v537_v32  ;;  %v3862_v9 = vsel %vm139_vm6, %v555_v62, %v557_v15 }
 0x3dc   :  { %v3865_v26 = vsel %vm139_vm6, %v575_v48, %v577_v19  ;;  %v3868_v29 = vsel %vm139_vm6, %v595_v23, %v597_v51  ;;  %v617_v27 = vrot.slane %v466_v52, 6  ;;  %v750_v0 = vmul.f32 %v3218_v31, %v676_v33  ;;  %v3920_v52 = vld [vmem:[%s4420_s2 + $0xc8] ss:$0 sm:$0xff] }
 0x3dd   :  { %4434 = vst [vmem:[#allocation15_spill] sm:$0xff] %v3865_v26  ;;  %v749_v1 = vmul.f32 0.0, %v701_v63  ;;  %v745_v58 = vmul.f32 0.5, %v744_v20  ;;  %v4437_v33 = vmov 0.0   ;;  %v3915_v63 = vld [vmem:[%s4420_s2 + $0xa0] ss:$0 sm:$0xff] }
 0x3de   :  { %4435 = vst [vmem:[#allocation16_spill] sm:$0xff] %v3868_v29  ;;  %v3871_v21 = vsel %vm139_vm6, %v615_v59, %v617_v27 }
 0x3df   :  { %4436 = vst [vmem:[#allocation17_spill] sm:$0xff] %v3871_v21  ;;  %v3873_v32 = vadd.f32 %v750_v0, %v749_v1  ;;  %3219 = vtanh.f32 %v745_v58  ;;  %v3928_v21 = vld [vmem:[%s4420_s2 + $0xf0] ss:$0 sm:$0xff] }
 0x3e1   :  { %3221 = vtanh.f32 %v3873_v32 }
 0x3e5   :  { %v3220_v11 = vpop.eup %3219 }
 0x3e6   :  { %v747_v62 = vmul.f32 0.5, %v3220_v11 }
 0x3e7   :  { %v3222_v61 = vpop.eup %3221 }
 0x3e8   :  { %v748_v48 = vadd.f32 0.5, %v747_v62 }
 0x3ea   :  { %v753_v15 = vmul.f32 %v3222_v61, %v748_v48 }
 0x3ec   :  { %3048 = vmatmul.msk.f32.vlgmr.msrb.gmra.mxu3 %vm648_vm10, %v753_v15  ;;  %3049 = vmatmul.msk.f32.vlgmr.msrb.gmra.mxu1 %vm648_vm10, %v753_v15 }
 0x3ed   :  { %3050 = vmatmul.msk.f32.vlgmr.msra.gmra.mxu2 %vm648_vm10, %v753_v15  ;;  %3051 = vmatmul.msk.f32.vlgmr.msra.gmra.mxu0 %vm648_vm10, %v753_v15 }
 0x3ee   :  { %957 = vmatpush.msrb.mxu3 %v3564_v43  ;;  %982 = vmatpush.msrb.mxu1 %v3558_v42 }
 0x3ef   :  { %1007 = vmatpush.msra.mxu2 %v3569_v44  ;;  %1029 = vmatpush.msra.mxu0 %v3595_v49 }
 0x3f0   :  { %958 = vmatpush.msrb.mxu3 %v3588_v47  ;;  %983 = vmatpush.msrb.mxu1 %v3574_v45 }
 0x3f1   :  { %1008 = vmatpush.msra.mxu2 %v3581_v46  ;;  %1030 = vmatpush.msra.mxu0 %v3600_v50 }
 0x3f4   :  { %857 = vmatmul.f32.vlgmr.msra.gmra.mxu3 %v4437_v33  ;;  %882 = vmatmul.f32.vlgmr.msra.gmra.mxu1 %v4437_v33 }
 0x3f5   :  { %907 = vmatmul.f32.vlgmr.msrb.gmra.mxu2 %v4437_v33  ;;  %929 = vmatmul.f32.vlgmr.msrb.gmra.mxu0 %v4437_v33 }
 0x3f6   :  { %1062 = vmatpush.msra.mxu3 %v3697_v40  ;;  %1082 = vmatpush.msra.mxu1 %v3702_v41 }
 0x3f7   :  { %1102 = vmatpush.msrb.mxu2 %v3692_v39  ;;  %1122 = vmatpush.msrb.mxu0 %v3714_v55 }
 0x3f8   :  { %1063 = vmatpush.msra.mxu3 %v3719_v56  ;;  %1083 = vmatpush.msra.mxu1 %v3724_v57 }
 0x3f9   :  { %1103 = vmatpush.msrb.mxu2 %v3735_v2  ;;  %1123 = vmatpush.msrb.mxu0 %v3740_v3 }
 0x3fc   :  { %3052 = vmatmul.msk.f32.vlgmr.msrb.gmra.mxu3 %vm648_vm10, %v753_v15  ;;  %3053 = vmatmul.msk.f32.vlgmr.msrb.gmra.mxu1 %vm648_vm10, %v753_v15 }
 0x3fd   :  { %3054 = vmatmul.msk.f32.vlgmr.msra.gmra.mxu2 %vm648_vm10, %v753_v15  ;;  %3055 = vmatmul.msk.f32.vlgmr.msra.gmra.mxu0 %vm648_vm10, %v753_v15 }
 0x3fe   :  { %1145 = vmatpush.msrb.mxu3 %v3768_v16  ;;  %1170 = vmatpush.msrb.mxu1 %v3773_v17 }
 0x3ff   :  { %1195 = vmatpush.msra.mxu2 %v3778_v18  ;;  %1217 = vmatpush.msra.mxu0 %v3787_v24 }
 0x400   :  { %1146 = vmatpush.msrb.mxu3 %v3792_v34  ;;  %1171 = vmatpush.msrb.mxu1 %v3797_v35 }
 0x401   :  { %1196 = vmatpush.msra.mxu2 %v3809_v53  ;;  %1218 = vmatpush.msra.mxu0 %v3814_v54 }
 0x469   :  { %v796_v58 = vpop.f32.mrf.mxu1 }
 0x46a   :  { %v838_v1 = vpop.f32.mrf.mxu0  ;;  %v797_v51 = vadd.f32 %v3920_v52, %v796_v58 }
 0x46f   :  { %v775_v31 = vpop.f32.mrf.mxu3 }
 0x470   :  { %v817_v10 = vpop.f32.mrf.mxu2  ;;  %v776_v19 = vadd.f32 %v3915_v63, %v775_v31 }
 0x471   :  { %v883_v20 = vpop.f32.mrf.mxu1 }
 0x472   :  { %v930_v14 = vpop.f32.mrf.mxu0  ;;  %v886_v11 = vadd.f32 %v883_v20, %v797_v51  ;;  %v3935_v51 = vld [vmem:[%s4420_s2 + $0x118] ss:$0 sm:$0xff] }
 0x474   :  { %v887_v15 = vmul.f32 0.5, %v886_v11 }
 0x477   :  { %v858_v23 = vpop.f32.mrf.mxu3 }
 0x478   :  { %v861_v59 = vadd.f32 %v858_v23, %v776_v19  ;;  %v908_v27 = vpop.f32.mrf.mxu2 }
 0x479   :  { %v985_v0 = vpop.f32.mrf.mxu1 }
 0x47a   :  { %v988_v62 = vadd.f32 %v985_v0, %v3683_v37  ;;  %v862_v48 = vmul.f32 0.5, %v861_v59  ;;  %v1032_v31 = vpop.f32.mrf.mxu0  ;;  %v818_v59 = vadd.f32 %v3928_v21, %v817_v10 }
 0x47b   :  { %v1035_v20 = vadd.f32 %v1032_v31, %v3852_v60 }
 0x47c   :  { %v989_v61 = vmul.f32 0.5, %v988_v62  ;;  %v911_v62 = vadd.f32 %v908_v27, %v818_v59 }
 0x47e   :  { %3223 = vtanh.f32 %v989_v61 }
 0x47f   :  { %v960_v33 = vpop.f32.mrf.mxu3  ;;  %3225 = vtanh.f32 %v862_v48 }
 0x480   :  { %v963_v58 = vadd.f32 %v960_v33, %v3687_v38  ;;  %v1010_v19 = vpop.f32.mrf.mxu2  ;;  %3227 = vtanh.f32 %v887_v15  ;;  %v1036_v38 = vmul.f32 0.5, %v1035_v20  ;;  %v839_v15 = vadd.f32 %v3935_v51, %v838_v1 }
 0x481   :  { %v1013_v0 = vadd.f32 %v1010_v19, %v3644_v12 }
 0x482   :  { %v964_v23 = vmul.f32 0.5, %v963_v58  ;;  %v933_v31 = vadd.f32 %v930_v14, %v839_v15 }
 0x484   :  { %v3224_v37 = vpop.eup %3223  ;;  %3229 = vtanh.f32 %v964_v23  ;;  %v934_v12 = vmul.f32 0.5, %v933_v31 }
 0x485   :  { %v3226_v11 = vpop.eup %3225  ;;  %v991_v48 = vmul.f32 0.5, %v3224_v37  ;;  %3231 = vtanh.f32 %v1013_v0 }
 0x486   :  { %v3228_v61 = vpop.eup %3227  ;;  %v864_v60 = vmul.f32 0.5, %v3226_v11  ;;  %3233 = vtanh.f32 %v911_v62 }
 0x487   :  { %v889_v58 = vmul.f32 0.5, %v3228_v61  ;;  %v992_v29 = vadd.f32 0.5, %v991_v48  ;;  %3235 = vtanh.f32 %v1036_v38 }
 0x488   :  { %v865_v10 = vadd.f32 0.5, %v864_v60  ;;  %3237 = vtanh.f32 %v934_v12 }
 0x489   :  { %v890_v19 = vadd.f32 0.5, %v889_v58  ;;  %v1040_v27 = vmul.f32 %v992_v29, %v3873_v32 }
 0x48a   :  { %v3230_v33 = vpop.eup %3229 }
 0x48b   :  { %v966_v26 = vmul.f32 0.5, %v3230_v33  ;;  %v3232_v28 = vpop.eup %3231  ;;  %v938_v14 = vmul.f32 0.0, %v890_v19 }
 0x48c   :  { %v3234_v37 = vpop.eup %3233 }
 0x48d   :  { %v967_v23 = vadd.f32 0.5, %v966_v26  ;;  %v3236_v59 = vpop.eup %3235  ;;  %v939_v1 = vmul.f32 %v3234_v37, %v865_v10 }
 0x48e   :  { %v1038_v11 = vmul.f32 0.5, %v3236_v59  ;;  %v3238_v48 = vpop.eup %3237 }
 0x48f   :  { %v1041_v20 = vmul.f32 %v3232_v28, %v967_v23  ;;  %v3944_v62 = vadd.f32 %v939_v1, %v938_v14  ;;  %v936_v29 = vmul.f32 0.5, %v3238_v48 }
 0x490   :  { %v1039_v26 = vadd.f32 0.5, %v1038_v11 }
 0x491   :  { %v3941_v0 = vadd.f32 %v1041_v20, %v1040_v27  ;;  %v937_v32 = vadd.f32 0.5, %v936_v29 }
 0x493   :  { %3239 = vtanh.f32 %v3941_v0 }
 0x494   :  { %3241 = vtanh.f32 %v3944_v62 }
 0x499   :  { %v3240_v38 = vpop.eup %3239 }
 0x49a   :  { %v1044_v61 = vmul.f32 %v3240_v38, %v1039_v26  ;;  %v3242_v28 = vpop.eup %3241 }
 0x49b   :  { %v942_v15 = vmul.f32 %v3242_v28, %v937_v32 }
 0x49c   :  { %3056 = vmatmul.msk.f32.vlgmr.msra.gmra.mxu3 %vm648_vm10, %v1044_v61  ;;  %3057 = vmatmul.msk.f32.vlgmr.msra.gmra.mxu1 %vm648_vm10, %v1044_v61 }
 0x49d   :  { %3058 = vmatmul.msk.f32.vlgmr.msrb.gmra.mxu2 %vm648_vm10, %v1044_v61  ;;  %3059 = vmatmul.msk.f32.vlgmr.msrb.gmra.mxu0 %vm648_vm10, %v1044_v61 }
 0x49e   :  { %1247 = vmatpush.msra.mxu3 %v3564_v43  ;;  %1272 = vmatpush.msra.mxu1 %v3558_v42 }
 0x49f   :  { %1297 = vmatpush.msrb.mxu2 %v3569_v44  ;;  %1319 = vmatpush.msrb.mxu0 %v3595_v49 }
 0x4a0   :  { %1248 = vmatpush.msra.mxu3 %v3588_v47  ;;  %1273 = vmatpush.msra.mxu1 %v3574_v45 }
 0x4a1   :  { %1298 = vmatpush.msrb.mxu2 %v3581_v46  ;;  %1320 = vmatpush.msrb.mxu0 %v3600_v50 }
 0x4a4   :  { %3060 = vmatmul.msk.f32.vlgmr.msrb.gmra.mxu3 %vm648_vm10, %v942_v15  ;;  %3061 = vmatmul.msk.f32.vlgmr.msrb.gmra.mxu1 %vm648_vm10, %v942_v15 }
 0x4a5   :  { %3062 = vmatmul.msk.f32.vlgmr.msra.gmra.mxu2 %vm648_vm10, %v942_v15  ;;  %3063 = vmatmul.msk.f32.vlgmr.msra.gmra.mxu0 %vm648_vm10, %v942_v15 }
 0x4a6   :  { %1352 = vmatpush.msrb.mxu3 %v3697_v40  ;;  %1372 = vmatpush.msrb.mxu1 %v3702_v41 }
 0x4a7   :  { %1392 = vmatpush.msra.mxu2 %v3692_v39  ;;  %1412 = vmatpush.msra.mxu0 %v3714_v55 }
 0x4a8   :  { %1353 = vmatpush.msrb.mxu3 %v3719_v56  ;;  %1373 = vmatpush.msrb.mxu1 %v3724_v57 }
 0x4a9   :  { %1393 = vmatpush.msra.mxu2 %v3735_v2  ;;  %1413 = vmatpush.msra.mxu0 %v3740_v3 }
 0x4ac   :  { %3064 = vmatmul.msk.f32.vlgmr.msra.gmra.mxu3 %vm648_vm10, %v1044_v61  ;;  %3065 = vmatmul.msk.f32.vlgmr.msra.gmra.mxu1 %vm648_vm10, %v1044_v61 }
 0x4ad   :  { %3066 = vmatmul.msk.f32.vlgmr.msrb.gmra.mxu2 %vm648_vm10, %v1044_v61  ;;  %3067 = vmatmul.msk.f32.vlgmr.msrb.gmra.mxu0 %vm648_vm10, %v1044_v61 }
 0x4ae   :  { %1435 = vmatpush.msra.mxu3 %v3768_v16  ;;  %1460 = vmatpush.msra.mxu1 %v3773_v17 }
 0x4af   :  { %1485 = vmatpush.msrb.mxu2 %v3778_v18  ;;  %1507 = vmatpush.msrb.mxu0 %v3787_v24 }
 0x4b0   :  { %1436 = vmatpush.msra.mxu3 %v3792_v34  ;;  %1461 = vmatpush.msra.mxu1 %v3797_v35 }
 0x4b1   :  { %1486 = vmatpush.msrb.mxu2 %v3809_v53  ;;  %1508 = vmatpush.msrb.mxu0 %v3814_v54 }
 0x519   :  { %v1085_v60 = vpop.f32.mrf.mxu1 }
 0x51a   :  { %v1125_v33 = vpop.f32.mrf.mxu0  ;;  %v1086_v27 = vadd.f32 %v3920_v52, %v1085_v60 }
 0x51f   :  { %v1065_v31 = vpop.f32.mrf.mxu3 }
 0x520   :  { %v1105_v58 = vpop.f32.mrf.mxu2  ;;  %v1066_v23 = vadd.f32 %v3915_v63, %v1065_v31 }
 0x521   :  { %v1173_v10 = vpop.f32.mrf.mxu1  ;;  %v1106_v31 = vadd.f32 %v3928_v21, %v1105_v58 }
 0x522   :  { %v1220_v12 = vpop.f32.mrf.mxu0  ;;  %v1176_v1 = vadd.f32 %v1173_v10, %v1086_v27 }
 0x524   :  { %v1177_v26 = vmul.f32 0.5, %v1176_v1 }
 0x527   :  { %v1148_v19 = vpop.f32.mrf.mxu3 }
 0x528   :  { %v1151_v20 = vadd.f32 %v1148_v19, %v1066_v23  ;;  %v1198_v37 = vpop.f32.mrf.mxu2 }
 0x529   :  { %v1275_v59 = vpop.f32.mrf.mxu1  ;;  %v1201_v23 = vadd.f32 %v1198_v37, %v1106_v31 }
 0x52a   :  { %v1278_v14 = vadd.f32 %v1275_v59, %v3743_v5  ;;  %v1152_v11 = vmul.f32 0.5, %v1151_v20  ;;  %v1322_v61 = vpop.f32.mrf.mxu0  ;;  %v1126_v59 = vadd.f32 %v3935_v51, %v1125_v33 }
 0x52b   :  { %v1325_v15 = vadd.f32 %v1322_v61, %v3856_v6 }
 0x52c   :  { %v1279_v48 = vmul.f32 0.5, %v1278_v14  ;;  %v1223_v14 = vadd.f32 %v1220_v12, %v1126_v59 }
 0x52d   :  { %v1326_v27 = vmul.f32 0.5, %v1325_v15 }
 0x52e   :  { %3243 = vtanh.f32 %v1279_v48 }
 0x52f   :  { %v1250_v38 = vpop.f32.mrf.mxu3  ;;  %3245 = vtanh.f32 %v1152_v11 }
 0x530   :  { %v1253_v29 = vadd.f32 %v1250_v38, %v3746_v4  ;;  %v1300_v28 = vpop.f32.mrf.mxu2  ;;  %3247 = vtanh.f32 %v1177_v26 }
 0x531   :  { %v1303_v5 = vadd.f32 %v1300_v28, %v3654_v22  ;;  %v1224_v22 = vmul.f32 0.5, %v1223_v14 }
 0x532   :  { %v1254_v32 = vmul.f32 0.5, %v1253_v29 }
 0x534   :  { %v3244_v60 = vpop.eup %3243  ;;  %3249 = vtanh.f32 %v1254_v32 }
 0x535   :  { %v3246_v10 = vpop.eup %3245  ;;  %v1281_v19 = vmul.f32 0.5, %v3244_v60  ;;  %3251 = vtanh.f32 %v1303_v5 }
 0x536   :  { %v3248_v20 = vpop.eup %3247  ;;  %v1154_v4 = vmul.f32 0.5, %v3246_v10  ;;  %3253 = vtanh.f32 %v1201_v23 }
 0x537   :  { %v1179_v11 = vmul.f32 0.5, %v3248_v20  ;;  %v1282_v6 = vadd.f32 0.5, %v1281_v19  ;;  %3255 = vtanh.f32 %v1326_v27 }
 0x538   :  { %v1155_v58 = vadd.f32 0.5, %v1154_v4  ;;  %3257 = vtanh.f32 %v1224_v22 }
 0x539   :  { %v1180_v61 = vadd.f32 0.5, %v1179_v11  ;;  %v1330_v37 = vmul.f32 %v1282_v6, %v3941_v0 }
 0x53a   :  { %v3250_v1 = vpop.eup %3249 }
 0x53b   :  { %v1256_v48 = vmul.f32 0.5, %v3250_v1  ;;  %v3252_v38 = vpop.eup %3251  ;;  %v1228_v12 = vmul.f32 %v1180_v61, %v3944_v62 }
 0x53c   :  { %v3254_v28 = vpop.eup %3253 }
 0x53d   :  { %v1257_v26 = vadd.f32 0.5, %v1256_v48  ;;  %v3256_v32 = vpop.eup %3255  ;;  %v1229_v33 = vmul.f32 %v3254_v28, %v1155_v58 }
 0x53e   :  { %v1328_v60 = vmul.f32 0.5, %v3256_v32  ;;  %v3258_v5 = vpop.eup %3257 }
 0x53f   :  { %v1331_v29 = vmul.f32 %v3252_v38, %v1257_v26  ;;  %v3996_v31 = vadd.f32 %v1229_v33, %v1228_v12  ;;  %v1226_v19 = vmul.f32 0.5, %v3258_v5 }
 0x540   :  { %v1329_v10 = vadd.f32 0.5, %v1328_v60 }
 0x541   :  { %v3992_v15 = vadd.f32 %v1331_v29, %v1330_v37  ;;  %v1227_v27 = vadd.f32 0.5, %v1226_v19 }
 0x543   :  { %3259 = vtanh.f32 %v3992_v15 }
 0x544   :  { %3261 = vtanh.f32 %v3996_v31 }
 0x549   :  { %v3260_v23 = vpop.eup %3259 }
 0x54a   :  { %v1334_v0 = vmul.f32 %v3260_v23, %v1329_v10  ;;  %v3262_v62 = vpop.eup %3261 }
 0x54b   :  { %v1232_v20 = vmul.f32 %v3262_v62, %v1227_v27 }
 0x54c   :  { %3068 = vmatmul.msk.f32.vlgmr.msrb.gmra.mxu3 %vm648_vm10, %v1334_v0  ;;  %3069 = vmatmul.msk.f32.vlgmr.msrb.gmra.mxu1 %vm648_vm10, %v1334_v0 }
 0x54d   :  { %3070 = vmatmul.msk.f32.vlgmr.msra.gmra.mxu2 %vm648_vm10, %v1334_v0  ;;  %3071 = vmatmul.msk.f32.vlgmr.msra.gmra.mxu0 %vm648_vm10, %v1334_v0 }
 0x54e   :  { %1537 = vmatpush.msrb.mxu3 %v3564_v43  ;;  %1562 = vmatpush.msrb.mxu1 %v3558_v42 }
 0x54f   :  { %1587 = vmatpush.msra.mxu2 %v3569_v44  ;;  %1609 = vmatpush.msra.mxu0 %v3595_v49 }
 0x550   :  { %1538 = vmatpush.msrb.mxu3 %v3588_v47  ;;  %1563 = vmatpush.msrb.mxu1 %v3574_v45 }
 0x551   :  { %1588 = vmatpush.msra.mxu2 %v3581_v46  ;;  %1610 = vmatpush.msra.mxu0 %v3600_v50 }
 0x554   :  { %3072 = vmatmul.msk.f32.vlgmr.msra.gmra.mxu3 %vm648_vm10, %v1232_v20  ;;  %3073 = vmatmul.msk.f32.vlgmr.msra.gmra.mxu1 %vm648_vm10, %v1232_v20 }
 0x555   :  { %3074 = vmatmul.msk.f32.vlgmr.msrb.gmra.mxu2 %vm648_vm10, %v1232_v20  ;;  %3075 = vmatmul.msk.f32.vlgmr.msrb.gmra.mxu0 %vm648_vm10, %v1232_v20 }
 0x556   :  { %1642 = vmatpush.msra.mxu3 %v3697_v40  ;;  %1662 = vmatpush.msra.mxu1 %v3702_v41 }
 0x557   :  { %1682 = vmatpush.msrb.mxu2 %v3692_v39  ;;  %1702 = vmatpush.msrb.mxu0 %v3714_v55 }
 0x558   :  { %1643 = vmatpush.msra.mxu3 %v3719_v56  ;;  %1663 = vmatpush.msra.mxu1 %v3724_v57 }
 0x559   :  { %1683 = vmatpush.msrb.mxu2 %v3735_v2  ;;  %1703 = vmatpush.msrb.mxu0 %v3740_v3 }
 0x55c   :  { %3076 = vmatmul.msk.f32.vlgmr.msrb.gmra.mxu3 %vm648_vm10, %v1334_v0  ;;  %3077 = vmatmul.msk.f32.vlgmr.msrb.gmra.mxu1 %vm648_vm10, %v1334_v0 }
 0x55d   :  { %3078 = vmatmul.msk.f32.vlgmr.msra.gmra.mxu2 %vm648_vm10, %v1334_v0  ;;  %3079 = vmatmul.msk.f32.vlgmr.msra.gmra.mxu0 %vm648_vm10, %v1334_v0 }
 0x55e   :  { %1725 = vmatpush.msrb.mxu3 %v3768_v16  ;;  %1750 = vmatpush.msrb.mxu1 %v3773_v17 }
 0x55f   :  { %1775 = vmatpush.msra.mxu2 %v3778_v18  ;;  %1797 = vmatpush.msra.mxu0 %v3787_v24 }
 0x560   :  { %1726 = vmatpush.msrb.mxu3 %v3792_v34  ;;  %1751 = vmatpush.msrb.mxu1 %v3797_v35 }
 0x561   :  { %1776 = vmatpush.msra.mxu2 %v3809_v53  ;;  %1798 = vmatpush.msra.mxu0 %v3814_v54 }
 0x5c9   :  { %v1375_v42 = vpop.f32.mrf.mxu1 }
 0x5ca   :  { %v1415_v43 = vpop.f32.mrf.mxu0  ;;  %v1376_v59 = vadd.f32 %v3920_v52, %v1375_v42 }
 0x5cb   :  { %v1416_v0 = vadd.f32 %v3935_v51, %v1415_v43 }
 0x5cf   :  { %v1355_v44 = vpop.f32.mrf.mxu3 }
 0x5d0   :  { %v1395_v45 = vpop.f32.mrf.mxu2  ;;  %v1356_v47 = vadd.f32 %v3915_v63, %v1355_v44 }
 0x5d1   :  { %v1463_v46 = vpop.f32.mrf.mxu1  ;;  %v1396_v33 = vadd.f32 %v3928_v21, %v1395_v45 }
 0x5d2   :  { %v1510_v49 = vpop.f32.mrf.mxu0  ;;  %v1466_v11 = vadd.f32 %v1463_v46, %v1376_v59 }
 0x5d3   :  { %v1513_v62 = vadd.f32 %v1510_v49, %v1416_v0 }
 0x5d4   :  { %v1467_v26 = vmul.f32 0.5, %v1466_v11 }
 0x5d7   :  { %v1438_v50 = vpop.f32.mrf.mxu3 }
 0x5d8   :  { %v1441_v4 = vadd.f32 %v1438_v50, %v1356_v47  ;;  %v1488_v1 = vpop.f32.mrf.mxu2 }
 0x5d9   :  { %v1565_v14 = vpop.f32.mrf.mxu1  ;;  %v1491_v60 = vadd.f32 %v1488_v1, %v1396_v33  ;;  %v4094_v33 = vld [vmem:[%s4420_s2 + $0x48] sm:$0xff] }
 0x5da   :  { %v1568_v6 = vadd.f32 %v1565_v14, %v3754_v7  ;;  %v1442_v48 = vmul.f32 0.5, %v1441_v4  ;;  %v1612_v22 = vpop.f32.mrf.mxu0 }
 0x5db   :  { %v1615_v28 = vadd.f32 %v1612_v22, %v3859_v13 }
 0x5dc   :  { %v1569_v58 = vmul.f32 0.5, %v1568_v6 }
 0x5dd   :  { %v1616_v10 = vmul.f32 0.5, %v1615_v28  ;;  %v4082_v28 = vld [vmem:[%s4420_s2 + $0x8] sm:$0xff] }
 0x5de   :  { %3263 = vtanh.f32 %v1569_v58 }
 0x5df   :  { %v1540_v38 = vpop.f32.mrf.mxu3  ;;  %3265 = vtanh.f32 %v1442_v48 }
 0x5e0   :  { %v1543_v61 = vadd.f32 %v1540_v38, %v3757_v8  ;;  %v1590_v37 = vpop.f32.mrf.mxu2  ;;  %3267 = vtanh.f32 %v1467_v26  ;;  %v4064_v38 = vld [vmem:[%s4420_s2 + $0x30] sm:$0xff] }
 0x5e1   :  { %v1593_v7 = vadd.f32 %v1590_v37, %v3659_v25  ;;  %v1514_v25 = vmul.f32 0.5, %v1513_v62  ;;  %v4076_v37 = vld [vmem:[%s4420_s2 + $0x70] sm:$0xff] }
 0x5e2   :  { %v1544_v29 = vmul.f32 0.5, %v1543_v61  ;;  %v4070_v61 = vld [vmem:[%s4420_s2 + $0x50] sm:$0xff] }
 0x5e4   :  { %v3264_v32 = vpop.eup %3263  ;;  %3269 = vtanh.f32 %v1544_v29 }
 0x5e5   :  { %v3266_v12 = vpop.eup %3265  ;;  %v1571_v5 = vmul.f32 0.5, %v3264_v32  ;;  %3271 = vtanh.f32 %v1593_v7  ;;  %v4088_v32 = vld [vmem:[%s4420_s2 + $0x28] sm:$0xff] }
 0x5e6   :  { %v3268_v23 = vpop.eup %3267  ;;  %v1444_v8 = vmul.f32 0.5, %v3266_v12  ;;  %3273 = vtanh.f32 %v1491_v60  ;;  %v4100_v7 = vld [vmem:[%s4420_s2 + $0x68] sm:$0xff] }
 0x5e7   :  { %v1469_v27 = vmul.f32 0.5, %v3268_v23  ;;  %v1572_v13 = vadd.f32 0.5, %v1571_v5  ;;  %3275 = vtanh.f32 %v1616_v10 }
 0x5e8   :  { %v1445_v42 = vadd.f32 0.5, %v1444_v8  ;;  %3277 = vtanh.f32 %v1514_v25 }
 0x5e9   :  { %v1470_v46 = vadd.f32 0.5, %v1469_v27  ;;  %v1620_v47 = vmul.f32 %v1572_v13, %v3992_v15  ;;  %v4438_v13 = vld [vmem:[#allocation5_spill] sm:$0xff] }
 0x5ea   :  { %v3270_v19 = vpop.eup %3269 }
 0x5eb   :  { %v1546_v20 = vmul.f32 0.5, %v3270_v19  ;;  %v3272_v45 = vpop.eup %3271  ;;  %v1518_v49 = vmul.f32 %v1470_v46, %v3996_v31  ;;  %v4058_v31 = vld [vmem:[%s4420_s2 + $0x10] sm:$0xff] }
 0x5ec   :  { %v3274_v59 = vpop.eup %3273 }
 0x5ed   :  { %v1547_v44 = vadd.f32 0.5, %v1546_v20  ;;  %v3276_v4 = vpop.eup %3275  ;;  %v1519_v43 = vmul.f32 %v3274_v59, %v1445_v42 }
 0x5ee   :  { %v1618_v14 = vmul.f32 0.5, %v3276_v4  ;;  %v3278_v6 = vpop.eup %3277 }
 0x5ef   :  { %v1621_v50 = vmul.f32 %v3272_v45, %v1547_v44  ;;  %v4048_v11 = vadd.f32 %v1519_v43, %v1518_v49  ;;  %v1516_v26 = vmul.f32 0.5, %v3278_v6 }
 0x5f0   :  { %v1619_v48 = vadd.f32 0.5, %v1618_v14 }
 0x5f1   :  { %v4044_v1 = vadd.f32 %v1621_v50, %v1620_v47  ;;  %v1517_v29 = vadd.f32 0.5, %v1516_v26 }
 0x5f3   :  { %3279 = vtanh.f32 %v4044_v1 }
 0x5f4   :  { %3281 = vtanh.f32 %v4048_v11 }
 0x5f9   :  { %v3280_v58 = vpop.eup %3279 }
 0x5fa   :  { %v1624_v15 = vmul.f32 %v3280_v58, %v1619_v48  ;;  %v3282_v22 = vpop.eup %3281 }
 0x5fb   :  { %v1522_v12 = vmul.f32 %v3282_v22, %v1517_v29 }
 0x5fc   :  { %3080 = vmatmul.msk.f32.vlgmr.msra.gmra.mxu3 %vm648_vm10, %v1624_v15  ;;  %3081 = vmatmul.msk.f32.vlgmr.msra.gmra.mxu1 %vm648_vm10, %v1624_v15 }
 0x5fd   :  { %3082 = vmatmul.msk.f32.vlgmr.msrb.gmra.mxu2 %vm648_vm10, %v1624_v15  ;;  %3083 = vmatmul.msk.f32.vlgmr.msrb.gmra.mxu0 %vm648_vm10, %v1624_v15 }
 0x5fe   :  { %1827 = vmatpush.msra.mxu3 %v4058_v31  ;;  %1852 = vmatpush.msra.mxu1 %v4064_v38 }
 0x5ff   :  { %1877 = vmatpush.msrb.mxu2 %v4070_v61  ;;  %1899 = vmatpush.msrb.mxu0 %v4076_v37 }
 0x600   :  { %1828 = vmatpush.msra.mxu3 %v4082_v28  ;;  %1853 = vmatpush.msra.mxu1 %v4088_v32 }
 0x601   :  { %1878 = vmatpush.msrb.mxu2 %v4094_v33  ;;  %1900 = vmatpush.msrb.mxu0 %v4100_v7 }
 0x604   :  { %3084 = vmatmul.msk.f32.vlgmr.msrb.gmra.mxu3 %vm648_vm10, %v1522_v12  ;;  %3085 = vmatmul.msk.f32.vlgmr.msrb.gmra.mxu1 %vm648_vm10, %v1522_v12 }
 0x605   :  { %3086 = vmatmul.msk.f32.vlgmr.msra.gmra.mxu2 %vm648_vm10, %v1522_v12  ;;  %3087 = vmatmul.msk.f32.vlgmr.msra.gmra.mxu0 %vm648_vm10, %v1522_v12 }
 0x606   :  { %1932 = vmatpush.msrb.mxu3 %v3697_v40  ;;  %1952 = vmatpush.msrb.mxu1 %v3702_v41 }
 0x607   :  { %1972 = vmatpush.msra.mxu2 %v3692_v39  ;;  %1992 = vmatpush.msra.mxu0 %v3714_v55 }
 0x608   :  { %1933 = vmatpush.msrb.mxu3 %v3719_v56  ;;  %1953 = vmatpush.msrb.mxu1 %v3724_v57 }
 0x609   :  { %1973 = vmatpush.msra.mxu2 %v3735_v2  ;;  %1993 = vmatpush.msra.mxu0 %v3740_v3 }
 0x60c   :  { %3088 = vmatmul.msk.f32.vlgmr.msra.gmra.mxu3 %vm648_vm10, %v1624_v15  ;;  %3089 = vmatmul.msk.f32.vlgmr.msra.gmra.mxu1 %vm648_vm10, %v1624_v15 }
 0x60d   :  { %3090 = vmatmul.msk.f32.vlgmr.msrb.gmra.mxu2 %vm648_vm10, %v1624_v15  ;;  %3091 = vmatmul.msk.f32.vlgmr.msrb.gmra.mxu0 %vm648_vm10, %v1624_v15 }
 0x60e   :  { %2015 = vmatpush.msra.mxu3 %v3768_v16  ;;  %2040 = vmatpush.msra.mxu1 %v3773_v17 }
 0x60f   :  { %2065 = vmatpush.msrb.mxu2 %v3778_v18  ;;  %2087 = vmatpush.msrb.mxu0 %v3787_v24 }
 0x610   :  { %2016 = vmatpush.msra.mxu3 %v3792_v34  ;;  %2041 = vmatpush.msra.mxu1 %v3797_v35 }
 0x611   :  { %2066 = vmatpush.msrb.mxu2 %v3809_v53  ;;  %2088 = vmatpush.msrb.mxu0 %v3814_v54 }
 0x679   :  { %v1665_v39 = vpop.f32.mrf.mxu1 }
 0x67a   :  { %v1705_v40 = vpop.f32.mrf.mxu0  ;;  %v1666_v16 = vadd.f32 %v3920_v52, %v1665_v39 }
 0x67b   :  { %v1706_v46 = vadd.f32 %v3935_v51, %v1705_v40 }
 0x67f   :  { %v1645_v41 = vpop.f32.mrf.mxu3 }
 0x680   :  { %v1685_v55 = vpop.f32.mrf.mxu2  ;;  %v1646_v57 = vadd.f32 %v3915_v63, %v1645_v41 }
 0x681   :  { %v1753_v56 = vpop.f32.mrf.mxu1  ;;  %v1686_v27 = vadd.f32 %v3928_v21, %v1685_v55 }
 0x682   :  { %v1800_v2 = vpop.f32.mrf.mxu0  ;;  %v1756_v34 = vadd.f32 %v1753_v56, %v1666_v16 }
 0x683   :  { %v1803_v50 = vadd.f32 %v1800_v2, %v1706_v46 }
 0x684   :  { %v1757_v54 = vmul.f32 0.5, %v1756_v34  ;;  %v4180_v34 = vld [vmem:[%s4420_s2 + $0x100] sm:$0xff] }
 0x685   :  { %v1804_v6 = vmul.f32 0.5, %v1803_v50 }
 0x687   :  { %v1728_v3 = vpop.f32.mrf.mxu3 }
 0x688   :  { %v1731_v17 = vadd.f32 %v1728_v3, %v1646_v57  ;;  %v1778_v18 = vpop.f32.mrf.mxu2 }
 0x689   :  { %v1855_v24 = vpop.f32.mrf.mxu1  ;;  %v1781_v42 = vadd.f32 %v1778_v18, %v1686_v27  ;;  %v4168_v18 = vld [vmem:[%s4420_s2 + $0xb0] sm:$0xff]  ;;  %v4256_v27 = vld [vmem:[%s4420_s2 + $0x108] sm:$0xff] }
 0x68a   :  { %v1858_v35 = vadd.f32 %v1855_v24, %v3800_v36  ;;  %v1732_v53 = vmul.f32 0.5, %v1731_v17  ;;  %v1902_v10 = vpop.f32.mrf.mxu0  ;;  %v4162_v17 = vld [vmem:[%s4420_s2 + $0x88] sm:$0xff]  ;;  %v4174_v24 = vld [vmem:[%s4420_s2 + $0xd8] sm:$0xff] }
 0x68b   :  { %v1905_v19 = vadd.f32 %v1902_v10, %v3862_v9  ;;  %v4220_v10 = vld [vmem:[%s4420_s2 + $0xc0] sm:$0xff] }
 0x68c   :  { %v1859_v60 = vmul.f32 0.5, %v1858_v35  ;;  %v4186_v35 = vld [vmem:[%s4420_s2 + $0x80] sm:$0xff] }
 0x68d   :  { %v1906_v45 = vmul.f32 0.5, %v1905_v19  ;;  %v4244_v19 = vld [vmem:[%s4420_s2 + $0xb8] sm:$0xff] }
 0x68e   :  { %3283 = vtanh.f32 %v1859_v60  ;;  %v4198_v60 = vld [vmem:[%s4420_s2 + $0xd0] sm:$0xff] }
 0x68f   :  { %v1830_v5 = vpop.f32.mrf.mxu3  ;;  %3285 = vtanh.f32 %v1732_v53  ;;  %v4192_v53 = vld [vmem:[%s4420_s2 + $0xa8] sm:$0xff] }
 0x690   :  { %v1833_v23 = vadd.f32 %v1830_v5, %v3819_v30  ;;  %v1880_v0 = vpop.f32.mrf.mxu2  ;;  %3287 = vtanh.f32 %v1757_v54  ;;  %v4204_v54 = vld [vmem:[%s4420_s2 + $0xf8] sm:$0xff] }
 0x691   :  { %v1883_v36 = vadd.f32 %v1880_v0, %v4438_v13  ;;  %v4214_v5 = vld [vmem:[%s4420_s2 + $0x98] sm:$0xff]  ;;  %v4232_v0 = vld [vmem:[%s4420_s2 + $0x110] sm:$0xff] }
 0x692   :  { %v1834_v8 = vmul.f32 0.5, %v1833_v23  ;;  %v4226_v23 = vld [vmem:[%s4420_s2 + $0xe8] sm:$0xff] }
 0x694   :  { %v3284_v62 = vpop.eup %3283  ;;  %3289 = vtanh.f32 %v1834_v8  ;;  %v4238_v8 = vld [vmem:[%s4420_s2 + $0x90] sm:$0xff] }
 0x695   :  { %v3286_v20 = vpop.eup %3285  ;;  %v1861_v44 = vmul.f32 0.5, %v3284_v62  ;;  %3291 = vtanh.f32 %v1883_v36  ;;  %v4250_v62 = vld [vmem:[%s4420_s2 + $0xe0] sm:$0xff] }
 0x696   :  { %v3288_v25 = vpop.eup %3287  ;;  %v1734_v30 = vmul.f32 0.5, %v3286_v20  ;;  %3293 = vtanh.f32 %v1781_v42 }
 0x697   :  { %v1759_v59 = vmul.f32 0.5, %v3288_v25  ;;  %v1862_v9 = vadd.f32 0.5, %v1861_v44  ;;  %3295 = vtanh.f32 %v1906_v45 }
 0x698   :  { %v1735_v43 = vadd.f32 0.5, %v1734_v30  ;;  %3297 = vtanh.f32 %v1804_v6 }
 0x699   :  { %v1760_v48 = vadd.f32 0.5, %v1759_v59  ;;  %v1910_v58 = vmul.f32 %v1862_v9, %v4044_v1 }
 0x69a   :  { %v3290_v47 = vpop.eup %3289 }
 0x69b   :  { %v1836_v4 = vmul.f32 0.5, %v3290_v47  ;;  %v3292_v14 = vpop.eup %3291  ;;  %v1808_v39 = vmul.f32 %v1760_v48, %v4048_v11 }
 0x69c   :  { %v3294_v26 = vpop.eup %3293 }
 0x69d   :  { %v1837_v49 = vadd.f32 0.5, %v1836_v4  ;;  %v3296_v22 = vpop.eup %3295  ;;  %v1809_v29 = vmul.f32 %v3294_v26, %v1735_v43  ;;  %v4439_v4 = vld [vmem:[#allocation9_spill] sm:$0xff] }
 0x69e   :  { %v1908_v40 = vmul.f32 0.5, %v3296_v22  ;;  %v3298_v55 = vpop.eup %3297 }
 0x69f   :  { %v1911_v15 = vmul.f32 %v3292_v14, %v1837_v49  ;;  %v4140_v41 = vadd.f32 %v1809_v29, %v1808_v39  ;;  %v1806_v2 = vmul.f32 0.5, %v3298_v55  ;;  %v4441_v29 = vld [vmem:[#allocation15_spill] sm:$0xff]  ;;  %v4442_v55 = vld [vmem:[#allocation6_spill] sm:$0xff] }
 0x6a0   :  { %v1909_v56 = vadd.f32 0.5, %v1908_v40 }
 0x6a1   :  { %v4136_v12 = vadd.f32 %v1911_v15, %v1910_v58  ;;  %v1807_v3 = vadd.f32 0.5, %v1806_v2  ;;  %v4440_v15 = vld [vmem:[#allocation10_spill] sm:$0xff] }
 0x6a3   :  { %3299 = vtanh.f32 %v4136_v12 }
 0x6a4   :  { %3301 = vtanh.f32 %v4140_v41 }
 0x6a9   :  { %v3300_v57 = vpop.eup %3299 }
 0x6aa   :  { %v1914_v1 = vmul.f32 %v3300_v57, %v1909_v56  ;;  %v3302_v11 = vpop.eup %3301 }
 0x6ab   :  { %v1812_v16 = vmul.f32 %v3302_v11, %v1807_v3 }
 0x6ac   :  { %3092 = vmatmul.msk.f32.vlgmr.msrb.gmra.mxu3 %vm648_vm10, %v1914_v1  ;;  %3093 = vmatmul.msk.f32.vlgmr.msrb.gmra.mxu1 %vm648_vm10, %v1914_v1 }
 0x6ad   :  { %3094 = vmatmul.msk.f32.vlgmr.msra.gmra.mxu2 %vm648_vm10, %v1914_v1  ;;  %3095 = vmatmul.msk.f32.vlgmr.msra.gmra.mxu0 %vm648_vm10, %v1914_v1 }
 0x6ae   :  { %2117 = vmatpush.msrb.mxu3 %v4058_v31  ;;  %2142 = vmatpush.msrb.mxu1 %v4064_v38 }
 0x6af   :  { %2167 = vmatpush.msra.mxu2 %v4070_v61  ;;  %2189 = vmatpush.msra.mxu0 %v4076_v37 }
 0x6b0   :  { %2118 = vmatpush.msrb.mxu3 %v4082_v28  ;;  %2143 = vmatpush.msrb.mxu1 %v4088_v32 }
 0x6b1   :  { %2168 = vmatpush.msra.mxu2 %v4094_v33  ;;  %2190 = vmatpush.msra.mxu0 %v4100_v7 }
 0x6b4   :  { %3096 = vmatmul.msk.f32.vlgmr.msra.gmra.mxu3 %vm648_vm10, %v1812_v16  ;;  %3097 = vmatmul.msk.f32.vlgmr.msra.gmra.mxu1 %vm648_vm10, %v1812_v16 }
 0x6b5   :  { %3098 = vmatmul.msk.f32.vlgmr.msrb.gmra.mxu2 %vm648_vm10, %v1812_v16  ;;  %3099 = vmatmul.msk.f32.vlgmr.msrb.gmra.mxu0 %vm648_vm10, %v1812_v16 }
 0x6b6   :  { %2222 = vmatpush.msra.mxu3 %v4162_v17  ;;  %2242 = vmatpush.msra.mxu1 %v4168_v18 }
 0x6b7   :  { %2262 = vmatpush.msrb.mxu2 %v4174_v24  ;;  %2282 = vmatpush.msrb.mxu0 %v4180_v34 }
 0x6b8   :  { %2223 = vmatpush.msra.mxu3 %v4186_v35  ;;  %2243 = vmatpush.msra.mxu1 %v4192_v53 }
 0x6b9   :  { %2263 = vmatpush.msrb.mxu2 %v4198_v60  ;;  %2283 = vmatpush.msrb.mxu0 %v4204_v54 }
 0x6bc   :  { %3100 = vmatmul.msk.f32.vlgmr.msrb.gmra.mxu3 %vm648_vm10, %v1914_v1  ;;  %3101 = vmatmul.msk.f32.vlgmr.msrb.gmra.mxu1 %vm648_vm10, %v1914_v1 }
 0x6bd   :  { %3102 = vmatmul.msk.f32.vlgmr.msra.gmra.mxu2 %vm648_vm10, %v1914_v1  ;;  %3103 = vmatmul.msk.f32.vlgmr.msra.gmra.mxu0 %vm648_vm10, %v1914_v1 }
 0x6be   :  { %2305 = vmatpush.msrb.mxu3 %v4214_v5  ;;  %2330 = vmatpush.msrb.mxu1 %v4220_v10 }
 0x6bf   :  { %2355 = vmatpush.msra.mxu2 %v4226_v23  ;;  %2377 = vmatpush.msra.mxu0 %v4232_v0 }
 0x6c0   :  { %2306 = vmatpush.msrb.mxu3 %v4238_v8  ;;  %2331 = vmatpush.msrb.mxu1 %v4244_v19 }
 0x6c1   :  { %2356 = vmatpush.msra.mxu2 %v4250_v62  ;;  %2378 = vmatpush.msra.mxu0 %v4256_v27 }
 0x729   :  { %v1955_v13 = vpop.f32.mrf.mxu1 }
 0x72a   :  { %v1995_v36 = vpop.f32.mrf.mxu0  ;;  %v1956_v30 = vadd.f32 %v3920_v52, %v1955_v13 }
 0x72b   :  { %v1996_v16 = vadd.f32 %v3935_v51, %v1995_v36 }
 0x72f   :  { %v1935_v20 = vpop.f32.mrf.mxu3 }
 0x730   :  { %v1975_v42 = vpop.f32.mrf.mxu2  ;;  %v1936_v45 = vadd.f32 %v3915_v63, %v1935_v20 }
 0x731   :  { %v2043_v44 = vpop.f32.mrf.mxu1  ;;  %v1976_v40 = vadd.f32 %v3928_v21, %v1975_v42 }
 0x732   :  { %v2090_v25 = vpop.f32.mrf.mxu0  ;;  %v2046_v9 = vadd.f32 %v2043_v44, %v1956_v30 }
 0x733   :  { %v2093_v44 = vadd.f32 %v2090_v25, %v1996_v16 }
 0x734   :  { %v2047_v6 = vmul.f32 0.5, %v2046_v9 }
 0x737   :  { %v2018_v46 = vpop.f32.mrf.mxu3 }
 0x738   :  { %v2021_v47 = vadd.f32 %v2018_v46, %v1936_v45  ;;  %v2068_v50 = vpop.f32.mrf.mxu2 }
 0x739   :  { %v2145_v59 = vpop.f32.mrf.mxu1  ;;  %v2071_v1 = vadd.f32 %v2068_v50, %v1976_v40 }
 0x73a   :  { %v2148_v43 = vadd.f32 %v2145_v59, %v4439_v4  ;;  %v2022_v49 = vmul.f32 0.5, %v2021_v47  ;;  %v2192_v58 = vpop.f32.mrf.mxu0  ;;  %v2094_v59 = vmul.f32 0.5, %v2093_v44 }
 0x73b   :  { %v2195_v52 = vadd.f32 %v2192_v58, %v4441_v29 }
 0x73c   :  { %v2149_v14 = vmul.f32 0.5, %v2148_v43 }
 0x73d   :  { %v2196_v11 = vmul.f32 0.5, %v2195_v52 }
 0x73e   :  { %3303 = vtanh.f32 %v2149_v14 }
 0x73f   :  { %v2120_v48 = vpop.f32.mrf.mxu3  ;;  %3305 = vtanh.f32 %v2022_v49 }
 0x740   :  { %v2123_v26 = vadd.f32 %v2120_v48, %v4440_v15  ;;  %v2170_v63 = vpop.f32.mrf.mxu2  ;;  %3307 = vtanh.f32 %v2047_v6 }
 0x741   :  { %v2173_v56 = vadd.f32 %v2170_v63, %v4442_v55 }
 0x742   :  { %v2124_v22 = vmul.f32 0.5, %v2123_v26 }
 0x744   :  { %v3304_v39 = vpop.eup %3303  ;;  %3309 = vtanh.f32 %v2124_v22 }
 0x745   :  { %v3306_v57 = vpop.eup %3305  ;;  %v2151_v2 = vmul.f32 0.5, %v3304_v39  ;;  %3311 = vtanh.f32 %v2173_v56  ;;  %v4314_v56 = vld [vmem:[%s4420_s2 + $0xa0] ss:$0 sm:$0xff] }
 0x746   :  { %v3308_v3 = vpop.eup %3307  ;;  %v2024_v13 = vmul.f32 0.5, %v3306_v57  ;;  %3313 = vtanh.f32 %v2071_v1 }
 0x747   :  { %v2049_v45 = vmul.f32 0.5, %v3308_v3  ;;  %v2152_v46 = vadd.f32 0.5, %v2151_v2  ;;  %3315 = vtanh.f32 %v2196_v11  ;;  %v4320_v11 = vld [vmem:[%s4420_s2 + $0xc8] ss:$0 sm:$0xff] }
 0x748   :  { %v2025_v21 = vadd.f32 0.5, %v2024_v13  ;;  %3317 = vtanh.f32 %v2094_v59 }
 0x749   :  { %v2050_v9 = vadd.f32 0.5, %v2049_v45  ;;  %v2200_v50 = vmul.f32 %v2152_v46, %v4136_v12  ;;  %v4443_v45 = vld [vmem:[#allocation11_spill] sm:$0xff] }
 0x74a   :  { %v3310_v20 = vpop.eup %3309 }
 0x74b   :  { %v2126_v30 = vmul.f32 0.5, %v3310_v20  ;;  %v3312_v47 = vpop.eup %3311  ;;  %v2098_v25 = vmul.f32 %v2050_v9, %v4140_v41  ;;  %v4444_v9 = vld [vmem:[#allocation12_spill] sm:$0xff] }
 0x74c   :  { %v3314_v43 = vpop.eup %3313 }
 0x74d   :  { %v2127_v42 = vadd.f32 0.5, %v2126_v30  ;;  %v3316_v49 = vpop.eup %3315  ;;  %v2099_v51 = vmul.f32 %v3314_v43, %v2025_v21 }
 0x74e   :  { %v2198_v14 = vmul.f32 0.5, %v3316_v49  ;;  %v3318_v48 = vpop.eup %3317  ;;  %v4445_v49 = vld [vmem:[#allocation16_spill] sm:$0xff] }
 0x74f   :  { %v2201_v4 = vmul.f32 %v3312_v47, %v2127_v42  ;;  %v4272_v6 = vadd.f32 %v2099_v51, %v2098_v25  ;;  %v2096_v26 = vmul.f32 0.5, %v3318_v48 }
 0x750   :  { %v2199_v58 = vadd.f32 0.5, %v2198_v14  ;;  %v4329_v14 = vld [vmem:[%s4420_s2 + $0xf0] ss:$0 sm:$0xff] }
 0x751   :  { %v4268_v36 = vadd.f32 %v2201_v4, %v2200_v50  ;;  %v2097_v63 = vadd.f32 0.5, %v2096_v26 }
 0x753   :  { %3319 = vtanh.f32 %v4268_v36 }
 0x754   :  { %3321 = vtanh.f32 %v4272_v6 }
 0x759   :  { %v3320_v15 = vpop.eup %3319 }
 0x75a   :  { %v2204_v12 = vmul.f32 %v3320_v15, %v2199_v58  ;;  %v3322_v41 = vpop.eup %3321  ;;  %v4446_v58 = vld [vmem:[#allocation7_spill] sm:$0xff] }
 0x75b   :  { %v2102_v22 = vmul.f32 %v3322_v41, %v2097_v63 }
 0x75c   :  { %3104 = vmatmul.msk.f32.vlgmr.msra.gmra.mxu3 %vm648_vm10, %v2204_v12  ;;  %3105 = vmatmul.msk.f32.vlgmr.msra.gmra.mxu1 %vm648_vm10, %v2204_v12 }
 0x75d   :  { %3106 = vmatmul.msk.f32.vlgmr.msrb.gmra.mxu2 %vm648_vm10, %v2204_v12  ;;  %3107 = vmatmul.msk.f32.vlgmr.msrb.gmra.mxu0 %vm648_vm10, %v2204_v12 }
 0x75e   :  { %2407 = vmatpush.msra.mxu3 %v4058_v31  ;;  %2432 = vmatpush.msra.mxu1 %v4064_v38 }
 0x75f   :  { %2457 = vmatpush.msrb.mxu2 %v4070_v61  ;;  %2479 = vmatpush.msrb.mxu0 %v4076_v37 }
 0x760   :  { %2408 = vmatpush.msra.mxu3 %v4082_v28  ;;  %2433 = vmatpush.msra.mxu1 %v4088_v32 }
 0x761   :  { %2458 = vmatpush.msrb.mxu2 %v4094_v33  ;;  %2480 = vmatpush.msrb.mxu0 %v4100_v7 }
 0x764   :  { %3108 = vmatmul.msk.f32.vlgmr.msrb.gmra.mxu3 %vm648_vm10, %v2102_v22  ;;  %3109 = vmatmul.msk.f32.vlgmr.msrb.gmra.mxu1 %vm648_vm10, %v2102_v22 }
 0x765   :  { %3110 = vmatmul.msk.f32.vlgmr.msra.gmra.mxu2 %vm648_vm10, %v2102_v22  ;;  %3111 = vmatmul.msk.f32.vlgmr.msra.gmra.mxu0 %vm648_vm10, %v2102_v22 }
 0x766   :  { %2512 = vmatpush.msrb.mxu3 %v4162_v17  ;;  %2532 = vmatpush.msrb.mxu1 %v4168_v18 }
 0x767   :  { %2552 = vmatpush.msra.mxu2 %v4174_v24  ;;  %2572 = vmatpush.msra.mxu0 %v4180_v34 }
 0x768   :  { %2513 = vmatpush.msrb.mxu3 %v4186_v35  ;;  %2533 = vmatpush.msrb.mxu1 %v4192_v53 }
 0x769   :  { %2553 = vmatpush.msra.mxu2 %v4198_v60  ;;  %2573 = vmatpush.msra.mxu0 %v4204_v54 }
 0x76c   :  { %3112 = vmatmul.msk.f32.vlgmr.msra.gmra.mxu3 %vm648_vm10, %v2204_v12  ;;  %3113 = vmatmul.msk.f32.vlgmr.msra.gmra.mxu1 %vm648_vm10, %v2204_v12 }
 0x76d   :  { %3114 = vmatmul.msk.f32.vlgmr.msrb.gmra.mxu2 %vm648_vm10, %v2204_v12  ;;  %3115 = vmatmul.msk.f32.vlgmr.msrb.gmra.mxu0 %vm648_vm10, %v2204_v12 }
 0x76e   :  { %2595 = vmatpush.msra.mxu3 %v4214_v5  ;;  %2620 = vmatpush.msra.mxu1 %v4220_v10 }
 0x76f   :  { %2645 = vmatpush.msrb.mxu2 %v4226_v23  ;;  %2667 = vmatpush.msrb.mxu0 %v4232_v0 }
 0x770   :  { %2596 = vmatpush.msra.mxu3 %v4238_v8  ;;  %2621 = vmatpush.msra.mxu1 %v4244_v19 }
 0x771   :  { %2646 = vmatpush.msrb.mxu2 %v4250_v62  ;;  %2668 = vmatpush.msrb.mxu0 %v4256_v27 }
 0x7d9   :  { %v2245_v29 = vpop.f32.mrf.mxu1 }
 0x7da   :  { %v2285_v52 = vpop.f32.mrf.mxu0  ;;  %v2246_v3 = vadd.f32 %v4320_v11, %v2245_v29  ;;  %v4336_v29 = vld [vmem:[%s4420_s2 + $0x118] ss:$0 sm:$0xff] }
 0x7df   :  { %v2225_v39 = vpop.f32.mrf.mxu3 }
 0x7e0   :  { %v2265_v40 = vpop.f32.mrf.mxu2  ;;  %v2226_v57 = vadd.f32 %v4314_v56, %v2225_v39  ;;  %v2286_v39 = vadd.f32 %v4336_v29, %v2285_v52 }
 0x7e1   :  { %v2333_v55 = vpop.f32.mrf.mxu1  ;;  %v2266_v48 = vadd.f32 %v4329_v14, %v2265_v40 }
 0x7e2   :  { %v2380_v1 = vpop.f32.mrf.mxu0  ;;  %v2336_v44 = vadd.f32 %v2333_v55, %v2246_v3 }
 0x7e4   :  { %v2337_v42 = vmul.f32 0.5, %v2336_v44 }
 0x7e7   :  { %v2308_v2 = vpop.f32.mrf.mxu3 }
 0x7e8   :  { %v2311_v16 = vadd.f32 %v2308_v2, %v2226_v57  ;;  %v2358_v13 = vpop.f32.mrf.mxu2  ;;  %v2383_v2 = vadd.f32 %v2380_v1, %v2286_v39 }
 0x7e9   :  { %v2435_v20 = vpop.f32.mrf.mxu1  ;;  %v2361_v26 = vadd.f32 %v2358_v13, %v2266_v48 }
 0x7ea   :  { %v2438_v46 = vadd.f32 %v2435_v20, %v4443_v45  ;;  %v2312_v30 = vmul.f32 0.5, %v2311_v16  ;;  %v2482_v59 = vpop.f32.mrf.mxu0  ;;  %v2384_v45 = vmul.f32 0.5, %v2383_v2 }
 0x7eb   :  { %v2485_v51 = vadd.f32 %v2482_v59, %v4445_v49 }
 0x7ec   :  { %v2439_v21 = vmul.f32 0.5, %v2438_v46 }
 0x7ed   :  { %v2486_v63 = vmul.f32 0.5, %v2485_v51 }
 0x7ee   :  { %3323 = vtanh.f32 %v2439_v21 }
 0x7ef   :  { %v2410_v47 = vpop.f32.mrf.mxu3  ;;  %3325 = vtanh.f32 %v2312_v30 }
 0x7f0   :  { %v2413_v50 = vadd.f32 %v2410_v47, %v4444_v9  ;;  %v2460_v4 = vpop.f32.mrf.mxu2  ;;  %3327 = vtanh.f32 %v2337_v42 }
 0x7f1   :  { %v2463_v15 = vadd.f32 %v2460_v4, %v4446_v58  ;;  %v4449_v58 = vld [vmem:[#allocation17_spill] sm:$0xff] }
 0x7f2   :  { %v2414_v43 = vmul.f32 0.5, %v2413_v50 }
 0x7f4   :  { %v3324_v25 = vpop.eup %3323  ;;  %3329 = vtanh.f32 %v2414_v43 }
 0x7f5   :  { %v3326_v12 = vpop.eup %3325  ;;  %v2441_v41 = vmul.f32 0.5, %v3324_v25  ;;  %3331 = vtanh.f32 %v2463_v15 }
 0x7f6   :  { %v3328_v22 = vpop.eup %3327  ;;  %v2314_v55 = vmul.f32 0.5, %v3326_v12  ;;  %3333 = vtanh.f32 %v2361_v26 }
 0x7f7   :  { %v2339_v40 = vmul.f32 0.5, %v3328_v22  ;;  %v2442_v3 = vadd.f32 0.5, %v2441_v41  ;;  %3335 = vtanh.f32 %v2486_v63  ;;  %v4450_v41 = vld [vmem:[#allocation8_spill] sm:$0xff] }
 0x7f8   :  { %v2315_v13 = vadd.f32 0.5, %v2314_v55  ;;  %3337 = vtanh.f32 %v2384_v45 }
 0x7f9   :  { %v2340_v46 = vadd.f32 0.5, %v2339_v40  ;;  %v2490_v30 = vmul.f32 %v2442_v3, %v4268_v36 }
 0x7fa   :  { %v3330_v57 = vpop.eup %3329 }
 0x7fb   :  { %v2416_v16 = vmul.f32 0.5, %v3330_v57  ;;  %v3332_v44 = vpop.eup %3331  ;;  %v2388_v1 = vmul.f32 %v2340_v46, %v4272_v6 }
 0x7fc   :  { %v3334_v42 = vpop.eup %3333 }
 0x7fd   :  { %v2417_v20 = vadd.f32 0.5, %v2416_v16  ;;  %v3336_v47 = vpop.eup %3335  ;;  %v2389_v52 = vmul.f32 %v3334_v42, %v2315_v13 }
 0x7fe   :  { %v2488_v9 = vmul.f32 0.5, %v3336_v47  ;;  %v3338_v4 = vpop.eup %3337 }
 0x7ff   :  { %v2491_v21 = vmul.f32 %v3332_v44, %v2417_v20  ;;  %v4344_v50 = vadd.f32 %v2389_v52, %v2388_v1  ;;  %v2386_v51 = vmul.f32 0.5, %v3338_v4 }
 0x800   :  { %v2489_v43 = vadd.f32 0.5, %v2488_v9 }
 0x801   :  { %v4340_v59 = vadd.f32 %v2491_v21, %v2490_v30  ;;  %v2387_v25 = vadd.f32 0.5, %v2386_v51 }
 0x803   :  { %3339 = vtanh.f32 %v4340_v59 }
 0x804   :  { %3341 = vtanh.f32 %v4344_v50 }
 0x809   :  { %v3340_v49 = vpop.eup %3339 }
 0x80a   :  { %v2494_v36 = vmul.f32 %v3340_v49, %v2489_v43  ;;  %v3342_v6 = vpop.eup %3341 }
 0x80b   :  { %v2392_v48 = vmul.f32 %v3342_v6, %v2387_v25 }
 0x80c   :  { %3116 = vmatmul.msk.f32.vlgmr.msrb.gmra.mxu3 %vm648_vm10, %v2494_v36  ;;  %3117 = vmatmul.msk.f32.vlgmr.msrb.gmra.mxu1 %vm648_vm10, %v2494_v36 }
 0x80d   :  { %3118 = vmatmul.msk.f32.vlgmr.msra.gmra.mxu2 %vm648_vm10, %v2494_v36  ;;  %3119 = vmatmul.msk.f32.vlgmr.msra.gmra.mxu0 %vm648_vm10, %v2494_v36 }
 0x80e   :  { %2697 = vmatpush.msrb.mxu3 %v4058_v31  ;;  %2722 = vmatpush.msrb.mxu1 %v4064_v38 }
 0x80f   :  { %2747 = vmatpush.msra.mxu2 %v4070_v61  ;;  %2769 = vmatpush.msra.mxu0 %v4076_v37 }
 0x810   :  { %2698 = vmatpush.msrb.mxu3 %v4082_v28  ;;  %2723 = vmatpush.msrb.mxu1 %v4088_v32 }
 0x811   :  { %2748 = vmatpush.msra.mxu2 %v4094_v33  ;;  %2770 = vmatpush.msra.mxu0 %v4100_v7 }
 0x814   :  { %3120 = vmatmul.msk.f32.vlgmr.msra.gmra.mxu3 %vm648_vm10, %v2392_v48  ;;  %3121 = vmatmul.msk.f32.vlgmr.msra.gmra.mxu1 %vm648_vm10, %v2392_v48 }
 0x815   :  { %3122 = vmatmul.msk.f32.vlgmr.msrb.gmra.mxu2 %vm648_vm10, %v2392_v48  ;;  %3123 = vmatmul.msk.f32.vlgmr.msrb.gmra.mxu0 %vm648_vm10, %v2392_v48 }
 0x816   :  { %2802 = vmatpush.msra.mxu3 %v4162_v17  ;;  %2822 = vmatpush.msra.mxu1 %v4168_v18 }
 0x817   :  { %2842 = vmatpush.msrb.mxu2 %v4174_v24  ;;  %2862 = vmatpush.msrb.mxu0 %v4180_v34 }
 0x818   :  { %2803 = vmatpush.msra.mxu3 %v4186_v35  ;;  %2823 = vmatpush.msra.mxu1 %v4192_v53  ;;  %v4447_v53 = vld [vmem:[#allocation13_spill] sm:$0xff] }
 0x819   :  { %2843 = vmatpush.msrb.mxu2 %v4198_v60  ;;  %2863 = vmatpush.msrb.mxu0 %v4204_v54 }
 0x81c   :  { %3124 = vmatmul.msk.f32.vlgmr.msrb.gmra.mxu3 %vm648_vm10, %v2494_v36  ;;  %3125 = vmatmul.msk.f32.vlgmr.msrb.gmra.mxu1 %vm648_vm10, %v2494_v36 }
 0x81d   :  { %3126 = vmatmul.msk.f32.vlgmr.msra.gmra.mxu2 %vm648_vm10, %v2494_v36  ;;  %3127 = vmatmul.msk.f32.vlgmr.msra.gmra.mxu0 %vm648_vm10, %v2494_v36 }
 0x81e   :  { %2885 = vmatpush.msrb.mxu3 %v4214_v5  ;;  %2910 = vmatpush.msrb.mxu1 %v4220_v10 }
 0x81f   :  { %2935 = vmatpush.msra.mxu2 %v4226_v23  ;;  %2957 = vmatpush.msra.mxu0 %v4232_v0 }
 0x820   :  { %2886 = vmatpush.msrb.mxu3 %v4238_v8  ;;  %2911 = vmatpush.msrb.mxu1 %v4244_v19  ;;  %v4448_v8 = vld [vmem:[#allocation14_spill] sm:$0xff] }
 0x821   :  { %2936 = vmatpush.msra.mxu2 %v4250_v62  ;;  %2958 = vmatpush.msra.mxu0 %v4256_v27 }
 0x889   :  { %v2535_v31 = vpop.f32.mrf.mxu1 }
 0x88a   :  { %v2575_v38 = vpop.f32.mrf.mxu0  ;;  %v2536_v17 = vadd.f32 %v4320_v11, %v2535_v31 }
 0x88b   :  { %v2576_v40 = vadd.f32 %v4336_v29, %v2575_v38 }
 0x88f   :  { %v2515_v61 = vpop.f32.mrf.mxu3 }
 0x890   :  { %v2555_v37 = vpop.f32.mrf.mxu2  ;;  %v2516_v32 = vadd.f32 %v4314_v56, %v2515_v61 }
 0x891   :  { %v2623_v28 = vpop.f32.mrf.mxu1  ;;  %v2556_v26 = vadd.f32 %v4329_v14, %v2555_v37 }
 0x892   :  { %v2670_v33 = vpop.f32.mrf.mxu0  ;;  %v2626_v35 = vadd.f32 %v2623_v28, %v2536_v17 }
 0x893   :  { %v2673_v13 = vadd.f32 %v2670_v33, %v2576_v40  ;;  %v2973_v33 = vld [vmem:[%s4420_s2 + $0x120] sm:$0xff] }
 0x894   :  { %v2627_v10 = vmul.f32 0.5, %v2626_v35 }
 0x895   :  { %v2674_v42 = vmul.f32 0.5, %v2673_v13 }
 0x897   :  { %v2598_v7 = vpop.f32.mrf.mxu3 }
 0x898   :  { %v2601_v18 = vadd.f32 %v2598_v7, %v2516_v32  ;;  %v2648_v24 = vpop.f32.mrf.mxu2  ;;  %v2974_v32 = vld [vmem:[%s4420_s2 + $0x128] sm:$0xff] }
 0x899   :  { %v2725_v34 = vpop.f32.mrf.mxu1  ;;  %v2651_v39 = vadd.f32 %v2648_v24, %v2556_v26 }
 0x89a   :  { %v2728_v60 = vadd.f32 %v2725_v34, %v4447_v53  ;;  %v2602_v54 = vmul.f32 0.5, %v2601_v18  ;;  %v2772_v0 = vpop.f32.mrf.mxu0 }
 0x89b   :  { %v2775_v15 = vadd.f32 %v2772_v0, %v4449_v58 }
 0x89c   :  { %v2729_v5 = vmul.f32 0.5, %v2728_v60 }
 0x89d   :  { %v2776_v57 = vmul.f32 0.5, %v2775_v15 }
 0x89e   :  { %3343 = vtanh.f32 %v2729_v5 }
 0x89f   :  { %v2700_v23 = vpop.f32.mrf.mxu3  ;;  %3345 = vtanh.f32 %v2602_v54 }
 0x8a0   :  { %v2703_v19 = vadd.f32 %v2700_v23, %v4448_v8  ;;  %v2750_v62 = vpop.f32.mrf.mxu2  ;;  %3347 = vtanh.f32 %v2627_v10 }
 0x8a1   :  { %v2753_v63 = vadd.f32 %v2750_v62, %v4450_v41 }
 0x8a2   :  { %v2704_v27 = vmul.f32 0.5, %v2703_v19 }
 0x8a4   :  { %v3344_v12 = vpop.eup %3343  ;;  %3349 = vtanh.f32 %v2704_v27 }
 0x8a5   :  { %v3346_v22 = vpop.eup %3345  ;;  %v2731_v55 = vmul.f32 0.5, %v3344_v12  ;;  %3351 = vtanh.f32 %v2753_v63 }
 0x8a6   :  { %v3348_v2 = vpop.eup %3347  ;;  %v2604_v3 = vmul.f32 0.5, %v3346_v22  ;;  %3353 = vtanh.f32 %v2651_v39 }
 0x8a7   :  { %v2629_v20 = vmul.f32 0.5, %v3348_v2  ;;  %v2732_v44 = vadd.f32 0.5, %v2731_v55  ;;  %3355 = vtanh.f32 %v2776_v57 }
 0x8a8   :  { %v2605_v46 = vadd.f32 0.5, %v2604_v3  ;;  %3357 = vtanh.f32 %v2674_v42  ;;  %v3212_v3 = vld [vmem:[%s4420_s2 + $0x130] ss:$0 sm:$0xff] }
 0x8a9   :  { %v2630_v47 = vadd.f32 0.5, %v2629_v20  ;;  %v2780_v52 = vmul.f32 %v2732_v44, %v4340_v59 }
 0x8aa   :  { %v3350_v16 = vpop.eup %3349 }
 0x8ab   :  { %v2706_v45 = vmul.f32 0.5, %v3350_v16  ;;  %v3352_v21 = vpop.eup %3351  ;;  %v2678_v36 = vmul.f32 %v2630_v47, %v4344_v50 }
 0x8ac   :  { %v3354_v9 = vpop.eup %3353 }
 0x8ad   :  { %v2707_v30 = vadd.f32 0.5, %v2706_v45  ;;  %v3356_v4 = vpop.eup %3355  ;;  %v2679_v43 = vmul.f32 %v3354_v9, %v2605_v46 }
 0x8ae   :  { %v2778_v51 = vmul.f32 0.5, %v3356_v4  ;;  %v3358_v25 = vpop.eup %3357 }
 0x8af   :  { %v2781_v1 = vmul.f32 %v3352_v21, %v2707_v30  ;;  %v2680_v6 = vadd.f32 %v2679_v43, %v2678_v36  ;;  %v2676_v61 = vmul.f32 0.5, %v3358_v25 }
 0x8b0   :  { %v2779_v48 = vadd.f32 0.5, %v2778_v51 }
 0x8b1   :  { %v2782_v49 = vadd.f32 %v2781_v1, %v2780_v52  ;;  %v2677_v37 = vadd.f32 0.5, %v2676_v61 }
 0x8b3   :  { %3359 = vtanh.f32 %v2782_v49 }
 0x8b4   :  { %3361 = vtanh.f32 %v2680_v6 }
 0x8b9   :  { %v3360_v31 = vpop.eup %3359 }
 0x8ba   :  { %v2784_v38 = vmul.f32 %v3360_v31, %v2779_v48  ;;  %v3362_v59 = vpop.eup %3361 }
 0x8bb   :  { %v2682_v50 = vmul.f32 %v3362_v59, %v2677_v37 }
 0x8bc   :  { %3128 = vmatmul.msk.f32.vlgmr.msra.gmra.mxu3 %vm648_vm10, %v2784_v38  ;;  %3129 = vmatmul.msk.f32.vlgmr.msra.gmra.mxu1 %vm648_vm10, %v2784_v38 }
 0x8bd   :  { %3130 = vmatmul.msk.f32.vlgmr.msrb.gmra.mxu2 %vm648_vm10, %v2784_v38  ;;  %3131 = vmatmul.msk.f32.vlgmr.msrb.gmra.mxu0 %vm648_vm10, %v2784_v38 }
 0x8be   :  { %2994 = vmatpush.msra.mxu3 %v2974_v32 }
 0x8c0   :  { %2995 = vmatpush.msra.mxu3 %v2973_v33 }
 0x8c4   :  { %3132 = vmatmul.msk.f32.vlgmr.msrb.gmra.mxu3 %vm648_vm10, %v2682_v50  ;;  %3133 = vmatmul.msk.f32.vlgmr.msrb.gmra.mxu1 %vm648_vm10, %v2682_v50 }
 0x8c5   :  { %3134 = vmatmul.msk.f32.vlgmr.msra.gmra.mxu2 %vm648_vm10, %v2682_v50  ;;  %3135 = vmatmul.msk.f32.vlgmr.msra.gmra.mxu0 %vm648_vm10, %v2682_v50 }
 0x939   :  { %v2825_v28 = vpop.f32.mrf.mxu1 }
 0x93a   :  { %v2865_v7 = vpop.f32.mrf.mxu0  ;;  %v2826_v18 = vadd.f32 %v4320_v11, %v2825_v28 }
 0x93b   :  { %v2866_v23 = vadd.f32 %v4336_v29, %v2865_v7 }
 0x93f   :  { %v2805_v17 = vpop.f32.mrf.mxu3 }
 0x940   :  { %v2845_v24 = vpop.f32.mrf.mxu2  ;;  %v2806_v60 = vadd.f32 %v4314_v56, %v2805_v17 }
 0x941   :  { %v2913_v34 = vpop.f32.mrf.mxu1  ;;  %v2846_v8 = vadd.f32 %v4329_v14, %v2845_v24 }
 0x942   :  { %v2916_v35 = vadd.f32 %v2913_v34, %v2826_v18  ;;  %v2960_v5 = vpop.f32.mrf.mxu0 }
 0x943   :  { %v2963_v62 = vadd.f32 %v2960_v5, %v2866_v23 }
 0x944   :  { %v2917_v53 = vmul.f32 0.5, %v2916_v35 }
 0x945   :  { %v2964_v15 = vmul.f32 0.5, %v2963_v62 }
 0x946   :  { %3363 = vtanh.f32 %v2917_v53 }
 0x947   :  { %v2888_v54 = vpop.f32.mrf.mxu3 }
 0x948   :  { %v2891_v10 = vadd.f32 %v2888_v54, %v2806_v60  ;;  %v2938_v0 = vpop.f32.mrf.mxu2 }
 0x949   :  { %v2941_v11 = vadd.f32 %v2938_v0, %v2846_v8 }
 0x94a   :  { %v2892_v19 = vmul.f32 0.5, %v2891_v10 }
 0x94c   :  { %v3364_v27 = vpop.eup %3363  ;;  %3365 = vtanh.f32 %v2892_v19 }
 0x94d   :  { %v2919_v58 = vmul.f32 0.5, %v3364_v27  ;;  %3367 = vtanh.f32 %v2941_v11 }
 0x94e   :  { %3369 = vtanh.f32 %v2964_v15 }
 0x94f   :  { %v2920_v26 = vadd.f32 0.5, %v2919_v58 }
 0x951   :  { %v2968_v22 = vmul.f32 %v2920_v26, %v2680_v6 }
 0x952   :  { %v3366_v12 = vpop.eup %3365 }
 0x953   :  { %v2894_v56 = vmul.f32 0.5, %v3366_v12  ;;  %v3368_v63 = vpop.eup %3367 }
 0x954   :  { %v3370_v29 = vpop.eup %3369 }
 0x955   :  { %v2895_v41 = vadd.f32 0.5, %v2894_v56  ;;  %v2966_v14 = vmul.f32 0.5, %v3370_v29 }
 0x957   :  { %v2969_v39 = vmul.f32 %v3368_v63, %v2895_v41  ;;  %v2967_v57 = vadd.f32 0.5, %v2966_v14 }
 0x959   :  { %v2970_v55 = vadd.f32 %v2969_v39, %v2968_v22 }
 0x95b   :  { %3371 = vtanh.f32 %v2970_v55 }
 0x961   :  { %v3372_v2 = vpop.eup %3371 }
 0x962   :  { %v2972_v40 = vmul.f32 %v3372_v2, %v2967_v57 }
 0x964   :  { %3136 = vmatmul.msk.f32.vlgmr.msra.gmra.mxu3 %vm648_vm10, %v2972_v40 }
 0x9e7   :  { %v2997_v16 = vpop.f32.mrf.mxu3 }
 0x9e8   :  { %v2998_v13 = vadd.f32 %v3212_v3, %v2997_v16 }
 0x9ea   :  { %3001 = vst.msk [vmem:[#allocation2] sm:$0x3] %vm3000_vm11, %v2998_v13 }
 0x9eb   :  { %3012 = dma.vmem_to_hbm [thread:$0]  %s3008_s27, 32, %s3010_s30, [#allocation3]  }
 0x9ec   :  { %3425 = dma.done.wait [#allocation3], 32  }
 0x9ed   :  { %3426 = vsyncadd [#allocation3], 4294967264 }
 0x9ee   :  { %3017 = vsyncpa [#allocation3], 1 }

</bundles_post_ra>
